<compile_context>
chip_gen: v5e
topology: v5e:2x2
jax: 0.10.0
libtpu: 0.0.40
codegen_flags: <defaults>
</compile_context>

<pallas_src>
import functools
import numpy as np
import jax
import jax.numpy as jnp
from jax import lax
from jax.experimental import pallas as pl
from jax.experimental.pallas import tpu as pltpu

EPS = 1e-5      # torch.nn.BatchNorm2d default eps
CP = 128        # lane-padded channel count (lane-dense matmuls / stores)


# ---------------------------------------------------------------- kernel -----
def _down_fused_kernel(x_ref, mask_ref, w1_ref, g1_ref, b1_ref,
                       w2_ref, g2_ref, b2_ref, o_ref, bext_ref, a1ext_ref,
                       *, N, H, Ho, Wo, Cin, C1, Hp, Wp, R, S, Mvalid):
    # ---- 2x2 max-pool (input loaded once; horizontal partners packed on lanes)
    xv = x_ref[...]                                       # (N*H, Wo, 2*Cin)
    hmax = jnp.maximum(xv[..., :Cin], xv[..., Cin:])      # (N*H, Wo, Cin)

    # scatter pooled rows into the flat, spatially (pad=1) padded VMEM buffer
    bext_ref[...] = jnp.zeros_like(bext_ref)
    for n in range(N):
        for y in range(Ho):
            row = jnp.maximum(hmax[n * H + 2 * y], hmax[n * H + 2 * y + 1])  # (Wo, Cin)
            bext_ref[pl.ds(S + n * Hp * Wp + (y + 1) * Wp + 1, Wo), :] = row

    mask = mask_ref[...]                                  # (R, 1), 1.0 at real pixels
    inv_m = 1.0 / float(Mvalid)

    # ---- conv1: 9 accumulating matmuls over shifted flat views, out lanes = 128
    y1 = jnp.zeros((R, CP), jnp.float32)
    for ky in range(3):
        for kx in range(3):
            s = ky * 3 + kx
            start = S + (ky - 1) * Wp + (kx - 1)
            y1 = y1 + jnp.dot(bext_ref[pl.ds(start, R), :], w1_ref[s],
                              preferred_element_type=jnp.float32)

    # ---- BN1 (batch stats over valid rows only) folded to scale/shift, + ReLU
    mean1 = jnp.sum(y1 * mask, axis=0, keepdims=True) * inv_m
    var1 = jnp.sum(jnp.square(y1 - mean1) * mask, axis=0, keepdims=True) * inv_m
    scale1 = g1_ref[...] * lax.rsqrt(var1 + EPS)
    shift1 = b1_ref[...] - mean1 * scale1
    a1 = jnp.maximum(y1 * scale1 + shift1, 0.0) * mask    # mask -> exact zero pad for conv2

    # stage only the real C1 channels of a1 for conv2's shifted views (stays in VMEM)
    a1ext_ref[...] = jnp.zeros_like(a1ext_ref)
    a1ext_ref[pl.ds(S, R), :] = a1[:, :C1]

    # ---- conv2: same 9-shift accumulating matmuls
    y2 = jnp.zeros((R, CP), jnp.float32)
    for ky in range(3):
        for kx in range(3):
            s = ky * 3 + kx
            start = S + (ky - 1) * Wp + (kx - 1)
            y2 = y2 + jnp.dot(a1ext_ref[pl.ds(start, R), :], w2_ref[s],
                              preferred_element_type=jnp.float32)

    # ---- BN2 + ReLU
    mean2 = jnp.sum(y2 * mask, axis=0, keepdims=True) * inv_m
    var2 = jnp.sum(jnp.square(y2 - mean2) * mask, axis=0, keepdims=True) * inv_m
    scale2 = g2_ref[...] * lax.rsqrt(var2 + EPS)
    shift2 = b2_ref[...] - mean2 * scale2
    out = jnp.maximum(y2 * scale2 + shift2, 0.0)          # (R, 128)

    # ---- write only the valid rows -> lane/sublane-dense (M, 128) output slab
    for n in range(N):
        for y in range(Ho):
            src = n * Hp * Wp + (y + 1) * Wp + 1
            o_ref[pl.ds((n * Ho + y) * Wo, Wo), :] = out[src:src + Wo, :]


# ---------------------------------------------------------------- wrapper ----
def down_forward(x_nchw, params):
    w1, g1, b1, w2, g2, b2 = params               # w1: (C1, Cin, 3, 3), w2: (C2, C1, 3, 3)
    N, Cin, H, W = x_nchw.shape
    C1 = w1.shape[0]
    C2 = w2.shape[0]
    Ho, Wo = H // 2, W // 2
    Hp, Wp = Ho + 2, Wo + 2                       # pad=1 spatial grid
    R = N * Hp * Wp                               # flat padded-grid rows
    S = Wp + 1                                    # max |flat shift| for a 3x3 tap
    Mvalid = N * Ho * Wo

    # layout plumbing (cheap, contiguous): NCHW -> NHWC, pack the 2x2-pool's
    # horizontal partner channels onto the lane axis.
    x_nhwc = jnp.transpose(x_nchw, (0, 2, 3, 1))
    x_packed = x_nhwc.reshape(N * H, Wo, 2 * Cin)

    # weights: (Cout, Cin, ky, kx) -> (tap, Cin, Cout), zero-pad Cout -> 128 lanes
    w1p = jnp.pad(jnp.transpose(w1, (2, 3, 1, 0)).reshape(9, Cin, C1),
                  ((0, 0), (0, 0), (0, CP - C1)))
    w2p = jnp.pad(jnp.transpose(w2, (2, 3, 1, 0)).reshape(9, C1, C2),
                  ((0, 0), (0, 0), (0, CP - C2)))
    # BN affine params zero-padded so padded channels stay exactly zero.
    g1p = jnp.pad(g1.reshape(1, C1), ((0, 0), (0, CP - C1)))
    b1p = jnp.pad(b1.reshape(1, C1), ((0, 0), (0, CP - C1)))
    g2p = jnp.pad(g2.reshape(1, C2), ((0, 0), (0, CP - C2)))
    b2p = jnp.pad(b2.reshape(1, C2), ((0, 0), (0, CP - C2)))

    # compile-time validity mask over the flat padded grid (real output pixels)
    rr = np.arange(R)
    yp = (rr % (Hp * Wp)) // Wp
    xp = rr % Wp
    mask = jnp.asarray(((yp >= 1) & (yp <= Ho) & (xp >= 1) & (xp <= Wo))
                       .astype(np.float32).reshape(R, 1))

    kernel = functools.partial(
        _down_fused_kernel, N=N, H=H, Ho=Ho, Wo=Wo, Cin=Cin, C1=C1,
        Hp=Hp, Wp=Wp, R=R, S=S, Mvalid=Mvalid)

    vmem = lambda: pl.BlockSpec(memory_space=pltpu.MemorySpace.VMEM)
    out2d = pl.pallas_call(
        kernel,
        out_shape=jax.ShapeDtypeStruct((Mvalid, CP), jnp.float32),
        in_specs=[vmem() for _ in range(8)],
        out_specs=vmem(),
        scratch_shapes=[pltpu.VMEM((R + 2 * S, Cin), jnp.float32),   # padded pooled input
                        pltpu.VMEM((R + 2 * S, C1), jnp.float32)],   # padded conv1 act
    )(x_packed, mask, w1p, g1p, b1p, w2p, g2p, b2p)

    out = out2d[:, :C2].reshape(N, Ho, Wo, C2)
    return jnp.transpose(out, (0, 3, 1, 2))                          # NHWC -> NCHW


# ------------------------------------------------------------ pure-JAX ref ---
def _ref_conv_bn_relu(x, w_oihw, g, b):
    y = lax.conv_general_dilated(
        x, jnp.transpose(w_oihw, (2, 3, 1, 0)),
        window_strides=(1, 1), padding="SAME",
        dimension_numbers=("NHWC", "HWIO", "NHWC"))
    m = jnp.mean(y, axis=(0, 1, 2))
    v = jnp.mean((y - m) ** 2, axis=(0, 1, 2))
    return jnp.maximum((y - m) * lax.rsqrt(v + EPS) * g + b, 0.0)


def ref_forward(x_nchw, params):
    w1, g1, b1, w2, g2, b2 = params
    x = jnp.transpose(x_nchw, (0, 2, 3, 1))
    x = lax.reduce_window(x, -jnp.inf, lax.max, (1, 2, 2, 1), (1, 2, 2, 1), "VALID")
    x = _ref_conv_bn_relu(x, w1, g1, b1)
    x = _ref_conv_bn_relu(x, w2, g2, b2)
    return jnp.transpose(x, (0, 3, 1, 2))


# ----------------------------------------------------------------- driver ----
if __name__ == "__main__":
    N, C_IN, C_OUT, H, W = 2, 4, 8, 16, 16  # Down(4, 8), input (2, 4, 16, 16)

    key = jax.random.PRNGKey(0)
    kx, kw1, kg1, kb1, kw2, kg2, kb2 = jax.random.split(key, 7)

    x = jax.random.normal(kx, (N, C_IN, H, W), dtype=jnp.float32)

    # DoubleConv(in=4, out=8): mid_channels == out_channels == 8
    w1 = 0.2 * jax.random.normal(kw1, (C_OUT, C_IN, 3, 3), dtype=jnp.float32)
    g1 = 1.0 + 0.1 * jax.random.normal(kg1, (C_OUT,), dtype=jnp.float32)
    b1 = 0.1 * jax.random.normal(kb1, (C_OUT,), dtype=jnp.float32)
    w2 = 0.2 * jax.random.normal(kw2, (C_OUT, C_OUT, 3, 3), dtype=jnp.float32)
    g2 = 1.0 + 0.1 * jax.random.normal(kg2, (C_OUT,), dtype=jnp.float32)
    b2 = 0.1 * jax.random.normal(kb2, (C_OUT,), dtype=jnp.float32)

    params = (w1, g1, b1, w2, g2, b2)

    fwd = jax.jit(down_forward)
    out = jax.block_until_ready(fwd(x, params))
    ref = jax.block_until_ready(ref_forward(x, params))

    assert out.shape == (N, C_OUT, H // 2, W // 2), out.shape
    np.testing.assert_allclose(np.asarray(out), np.asarray(ref), rtol=1e-4, atol=1e-4)

    print("KERNEL_OK")
</pallas_src>

<mosaic_0001>
module attributes {stable_mosaic.version = 11 : i64} {
  func.func @_down_fused_kernel(%arg0: memref<32x8x8xf32, #tpu.memory_space<vmem>>, %arg1: memref<200x1xf32, #tpu.memory_space<vmem>>, %arg2: memref<9x4x128xf32, #tpu.memory_space<vmem>>, %arg3: memref<1x128xf32, #tpu.memory_space<vmem>>, %arg4: memref<1x128xf32, #tpu.memory_space<vmem>>, %arg5: memref<9x8x128xf32, #tpu.memory_space<vmem>>, %arg6: memref<1x128xf32, #tpu.memory_space<vmem>>, %arg7: memref<1x128xf32, #tpu.memory_space<vmem>>, %arg8: memref<128x128xf32, #tpu.memory_space<vmem>>, %arg9: memref<222x4xf32, #tpu.memory_space<vmem>>, %arg10: memref<222x8xf32, #tpu.memory_space<vmem>>) attributes {dimension_semantics = [], scalar_prefetch = 0 : i64, scratch_operands = 2 : i64, tpu.core_type = #tpu.core_type<tc>} {
    %c0 = arith.constant 0 : index
    %c0_0 = arith.constant 0 : index
    %c0_1 = arith.constant 0 : index
    %0 = vector.load %arg0[%c0, %c0_0, %c0_1] : memref<32x8x8xf32, #tpu.memory_space<vmem>>, vector<32x8x8xf32>
    %1 = vector.extract_strided_slice %0 {offsets = [0, 0, 0], sizes = [32, 8, 4], strides = [1, 1, 1]} : vector<32x8x8xf32> to vector<32x8x4xf32>
    %2 = vector.extract_strided_slice %0 {offsets = [0, 0, 4], sizes = [32, 8, 4], strides = [1, 1, 1]} : vector<32x8x8xf32> to vector<32x8x4xf32>
    %3 = arith.maximumf %1, %2 : vector<32x8x4xf32>
    %cst = arith.constant 0.000000e+00 : f32
    %4 = vector.broadcast %cst : f32 to vector<222x4xf32>
    %c0_2 = arith.constant 0 : index
    %c0_3 = arith.constant 0 : index
    %5 = vector.load %arg9[%c0_2, %c0_3] : memref<222x4xf32, #tpu.memory_space<vmem>>, vector<222x4xf32>
    tpu.vector_store %arg9[%c0_2, %c0_3], %4 {strides = array<i32>} : memref<222x4xf32, #tpu.memory_space<vmem>>, vector<222x4xf32>,
    %6 = vector.extract_strided_slice %3 {offsets = [0, 0, 0], sizes = [1, 8, 4], strides = [1, 1, 1]} : vector<32x8x4xf32> to vector<1x8x4xf32>
    %7 = vector.shape_cast %6 : vector<1x8x4xf32> to vector<8x4xf32>
    %8 = vector.extract_strided_slice %3 {offsets = [1, 0, 0], sizes = [1, 8, 4], strides = [1, 1, 1]} : vector<32x8x4xf32> to vector<1x8x4xf32>
    %9 = vector.shape_cast %8 : vector<1x8x4xf32> to vector<8x4xf32>
    %10 = arith.maximumf %7, %9 : vector<8x4xf32>
    %c22 = arith.constant 22 : index
    %c0_4 = arith.constant 0 : index
    %11 = vector.load %arg9[%c22, %c0_4] : memref<222x4xf32, #tpu.memory_space<vmem>>, vector<8x4xf32>
    tpu.vector_store %arg9[%c22, %c0_4], %10 {strides = array<i32>} : memref<222x4xf32, #tpu.memory_space<vmem>>, vector<8x4xf32>,
    %12 = vector.extract_strided_slice %3 {offsets = [2, 0, 0], sizes = [1, 8, 4], strides = [1, 1, 1]} : vector<32x8x4xf32> to vector<1x8x4xf32>
    %13 = vector.shape_cast %12 : vector<1x8x4xf32> to vector<8x4xf32>
    %14 = vector.extract_strided_slice %3 {offsets = [3, 0, 0], sizes = [1, 8, 4], strides = [1, 1, 1]} : vector<32x8x4xf32> to vector<1x8x4xf32>
    %15 = vector.shape_cast %14 : vector<1x8x4xf32> to vector<8x4xf32>
    %16 = arith.maximumf %13, %15 : vector<8x4xf32>
    %c32 = arith.constant 32 : index
    %c0_5 = arith.constant 0 : index
    %17 = vector.load %arg9[%c32, %c0_5] : memref<222x4xf32, #tpu.memory_space<vmem>>, vector<8x4xf32>
    tpu.vector_store %arg9[%c32, %c0_5], %16 {strides = array<i32>} : memref<222x4xf32, #tpu.memory_space<vmem>>, vector<8x4xf32>,
    %18 = vector.extract_strided_slice %3 {offsets = [4, 0, 0], sizes = [1, 8, 4], strides = [1, 1, 1]} : vector<32x8x4xf32> to vector<1x8x4xf32>
    %19 = vector.shape_cast %18 : vector<1x8x4xf32> to vector<8x4xf32>
    %20 = vector.extract_strided_slice %3 {offsets = [5, 0, 0], sizes = [1, 8, 4], strides = [1, 1, 1]} : vector<32x8x4xf32> to vector<1x8x4xf32>
    %21 = vector.shape_cast %20 : vector<1x8x4xf32> to vector<8x4xf32>
    %22 = arith.maximumf %19, %21 : vector<8x4xf32>
    %c42 = arith.constant 42 : index
    %c0_6 = arith.constant 0 : index
    %23 = vector.load %arg9[%c42, %c0_6] : memref<222x4xf32, #tpu.memory_space<vmem>>, vector<8x4xf32>
    tpu.vector_store %arg9[%c42, %c0_6], %22 {strides = array<i32>} : memref<222x4xf32, #tpu.memory_space<vmem>>, vector<8x4xf32>,
    %24 = vector.extract_strided_slice %3 {offsets = [6, 0, 0], sizes = [1, 8, 4], strides = [1, 1, 1]} : vector<32x8x4xf32> to vector<1x8x4xf32>
    %25 = vector.shape_cast %24 : vector<1x8x4xf32> to vector<8x4xf32>
    %26 = vector.extract_strided_slice %3 {offsets = [7, 0, 0], sizes = [1, 8, 4], strides = [1, 1, 1]} : vector<32x8x4xf32> to vector<1x8x4xf32>
    %27 = vector.shape_cast %26 : vector<1x8x4xf32> to vector<8x4xf32>
    %28 = arith.maximumf %25, %27 : vector<8x4xf32>
    %c52 = arith.constant 52 : index
    %c0_7 = arith.constant 0 : index
    %29 = vector.load %arg9[%c52, %c0_7] : memref<222x4xf32, #tpu.memory_space<vmem>>, vector<8x4xf32>
    tpu.vector_store %arg9[%c52, %c0_7], %28 {strides = array<i32>} : memref<222x4xf32, #tpu.memory_space<vmem>>, vector<8x4xf32>,
    %30 = vector.extract_strided_slice %3 {offsets = [8, 0, 0], sizes = [1, 8, 4], strides = [1, 1, 1]} : vector<32x8x4xf32> to vector<1x8x4xf32>
    %31 = vector.shape_cast %30 : vector<1x8x4xf32> to vector<8x4xf32>
    %32 = vector.extract_strided_slice %3 {offsets = [9, 0, 0], sizes = [1, 8, 4], strides = [1, 1, 1]} : vector<32x8x4xf32> to vector<1x8x4xf32>
    %33 = vector.shape_cast %32 : vector<1x8x4xf32> to vector<8x4xf32>
    %34 = arith.maximumf %31, %33 : vector<8x4xf32>
    %c62 = arith.constant 62 : index
    %c0_8 = arith.constant 0 : index
    %35 = vector.load %arg9[%c62, %c0_8] : memref<222x4xf32, #tpu.memory_space<vmem>>, vector<8x4xf32>
    tpu.vector_store %arg9[%c62, %c0_8], %34 {strides = array<i32>} : memref<222x4xf32, #tpu.memory_space<vmem>>, vector<8x4xf32>,
    %36 = vector.extract_strided_slice %3 {offsets = [10, 0, 0], sizes = [1, 8, 4], strides = [1, 1, 1]} : vector<32x8x4xf32> to vector<1x8x4xf32>
    %37 = vector.shape_cast %36 : vector<1x8x4xf32> to vector<8x4xf32>
    %38 = vector.extract_strided_slice %3 {offsets = [11, 0, 0], sizes = [1, 8, 4], strides = [1, 1, 1]} : vector<32x8x4xf32> to vector<1x8x4xf32>
    %39 = vector.shape_cast %38 : vector<1x8x4xf32> to vector<8x4xf32>
    %40 = arith.maximumf %37, %39 : vector<8x4xf32>
    %c72 = arith.constant 72 : index
    %c0_9 = arith.constant 0 : index
    %41 = vector.load %arg9[%c72, %c0_9] : memref<222x4xf32, #tpu.memory_space<vmem>>, vector<8x4xf32>
    tpu.vector_store %arg9[%c72, %c0_9], %40 {strides = array<i32>} : memref<222x4xf32, #tpu.memory_space<vmem>>, vector<8x4xf32>,
    %42 = vector.extract_strided_slice %3 {offsets = [12, 0, 0], sizes = [1, 8, 4], strides = [1, 1, 1]} : vector<32x8x4xf32> to vector<1x8x4xf32>
    %43 = vector.shape_cast %42 : vector<1x8x4xf32> to vector<8x4xf32>
    %44 = vector.extract_strided_slice %3 {offsets = [13, 0, 0], sizes = [1, 8, 4], strides = [1, 1, 1]} : vector<32x8x4xf32> to vector<1x8x4xf32>
    %45 = vector.shape_cast %44 : vector<1x8x4xf32> to vector<8x4xf32>
    %46 = arith.maximumf %43, %45 : vector<8x4xf32>
    %c82 = arith.constant 82 : index
    %c0_10 = arith.constant 0 : index
    %47 = vector.load %arg9[%c82, %c0_10] : memref<222x4xf32, #tpu.memory_space<vmem>>, vector<8x4xf32>
    tpu.vector_store %arg9[%c82, %c0_10], %46 {strides = array<i32>} : memref<222x4xf32, #tpu.memory_space<vmem>>, vector<8x4xf32>,
    %48 = vector.extract_strided_slice %3 {offsets = [14, 0, 0], sizes = [1, 8, 4], strides = [1, 1, 1]} : vector<32x8x4xf32> to vector<1x8x4xf32>
    %49 = vector.shape_cast %48 : vector<1x8x4xf32> to vector<8x4xf32>
    %50 = vector.extract_strided_slice %3 {offsets = [15, 0, 0], sizes = [1, 8, 4], strides = [1, 1, 1]} : vector<32x8x4xf32> to vector<1x8x4xf32>
    %51 = vector.shape_cast %50 : vector<1x8x4xf32> to vector<8x4xf32>
    %52 = arith.maximumf %49, %51 : vector<8x4xf32>
    %c92 = arith.constant 92 : index
    %c0_11 = arith.constant 0 : index
    %53 = vector.load %arg9[%c92, %c0_11] : memref<222x4xf32, #tpu.memory_space<vmem>>, vector<8x4xf32>
    tpu.vector_store %arg9[%c92, %c0_11], %52 {strides = array<i32>} : memref<222x4xf32, #tpu.memory_space<vmem>>, vector<8x4xf32>,
    %54 = vector.extract_strided_slice %3 {offsets = [16, 0, 0], sizes = [1, 8, 4], strides = [1, 1, 1]} : vector<32x8x4xf32> to vector<1x8x4xf32>
    %55 = vector.shape_cast %54 : vector<1x8x4xf32> to vector<8x4xf32>
    %56 = vector.extract_strided_slice %3 {offsets = [17, 0, 0], sizes = [1, 8, 4], strides = [1, 1, 1]} : vector<32x8x4xf32> to vector<1x8x4xf32>
    %57 = vector.shape_cast %56 : vector<1x8x4xf32> to vector<8x4xf32>
    %58 = arith.maximumf %55, %57 : vector<8x4xf32>
    %c122 = arith.constant 122 : index
    %c0_12 = arith.constant 0 : index
    %59 = vector.load %arg9[%c122, %c0_12] : memref<222x4xf32, #tpu.memory_space<vmem>>, vector<8x4xf32>
    tpu.vector_store %arg9[%c122, %c0_12], %58 {strides = array<i32>} : memref<222x4xf32, #tpu.memory_space<vmem>>, vector<8x4xf32>,
    %60 = vector.extract_strided_slice %3 {offsets = [18, 0, 0], sizes = [1, 8, 4], strides = [1, 1, 1]} : vector<32x8x4xf32> to vector<1x8x4xf32>
    %61 = vector.shape_cast %60 : vector<1x8x4xf32> to vector<8x4xf32>
    %62 = vector.extract_strided_slice %3 {offsets = [19, 0, 0], sizes = [1, 8, 4], strides = [1, 1, 1]} : vector<32x8x4xf32> to vector<1x8x4xf32>
    %63 = vector.shape_cast %62 : vector<1x8x4xf32> to vector<8x4xf32>
    %64 = arith.maximumf %61, %63 : vector<8x4xf32>
    %c132 = arith.constant 132 : index
    %c0_13 = arith.constant 0 : index
    %65 = vector.load %arg9[%c132, %c0_13] : memref<222x4xf32, #tpu.memory_space<vmem>>, vector<8x4xf32>
    tpu.vector_store %arg9[%c132, %c0_13], %64 {strides = array<i32>} : memref<222x4xf32, #tpu.memory_space<vmem>>, vector<8x4xf32>,
    %66 = vector.extract_strided_slice %3 {offsets = [20, 0, 0], sizes = [1, 8, 4], strides = [1, 1, 1]} : vector<32x8x4xf32> to vector<1x8x4xf32>
    %67 = vector.shape_cast %66 : vector<1x8x4xf32> to vector<8x4xf32>
    %68 = vector.extract_strided_slice %3 {offsets = [21, 0, 0], sizes = [1, 8, 4], strides = [1, 1, 1]} : vector<32x8x4xf32> to vector<1x8x4xf32>
    %69 = vector.shape_cast %68 : vector<1x8x4xf32> to vector<8x4xf32>
    %70 = arith.maximumf %67, %69 : vector<8x4xf32>
    %c142 = arith.constant 142 : index
    %c0_14 = arith.constant 0 : index
    %71 = vector.load %arg9[%c142, %c0_14] : memref<222x4xf32, #tpu.memory_space<vmem>>, vector<8x4xf32>
    tpu.vector_store %arg9[%c142, %c0_14], %70 {strides = array<i32>} : memref<222x4xf32, #tpu.memory_space<vmem>>, vector<8x4xf32>,
    %72 = vector.extract_strided_slice %3 {offsets = [22, 0, 0], sizes = [1, 8, 4], strides = [1, 1, 1]} : vector<32x8x4xf32> to vector<1x8x4xf32>
    %73 = vector.shape_cast %72 : vector<1x8x4xf32> to vector<8x4xf32>
    %74 = vector.extract_strided_slice %3 {offsets = [23, 0, 0], sizes = [1, 8, 4], strides = [1, 1, 1]} : vector<32x8x4xf32> to vector<1x8x4xf32>
    %75 = vector.shape_cast %74 : vector<1x8x4xf32> to vector<8x4xf32>
    %76 = arith.maximumf %73, %75 : vector<8x4xf32>
    %c152 = arith.constant 152 : index
    %c0_15 = arith.constant 0 : index
    %77 = vector.load %arg9[%c152, %c0_15] : memref<222x4xf32, #tpu.memory_space<vmem>>, vector<8x4xf32>
    tpu.vector_store %arg9[%c152, %c0_15], %76 {strides = array<i32>} : memref<222x4xf32, #tpu.memory_space<vmem>>, vector<8x4xf32>,
    %78 = vector.extract_strided_slice %3 {offsets = [24, 0, 0], sizes = [1, 8, 4], strides = [1, 1, 1]} : vector<32x8x4xf32> to vector<1x8x4xf32>
    %79 = vector.shape_cast %78 : vector<1x8x4xf32> to vector<8x4xf32>
    %80 = vector.extract_strided_slice %3 {offsets = [25, 0, 0], sizes = [1, 8, 4], strides = [1, 1, 1]} : vector<32x8x4xf32> to vector<1x8x4xf32>
    %81 = vector.shape_cast %80 : vector<1x8x4xf32> to vector<8x4xf32>
    %82 = arith.maximumf %79, %81 : vector<8x4xf32>
    %c162 = arith.constant 162 : index
    %c0_16 = arith.constant 0 : index
    %83 = vector.load %arg9[%c162, %c0_16] : memref<222x4xf32, #tpu.memory_space<vmem>>, vector<8x4xf32>
    tpu.vector_store %arg9[%c162, %c0_16], %82 {strides = array<i32>} : memref<222x4xf32, #tpu.memory_space<vmem>>, vector<8x4xf32>,
    %84 = vector.extract_strided_slice %3 {offsets = [26, 0, 0], sizes = [1, 8, 4], strides = [1, 1, 1]} : vector<32x8x4xf32> to vector<1x8x4xf32>
    %85 = vector.shape_cast %84 : vector<1x8x4xf32> to vector<8x4xf32>
    %86 = vector.extract_strided_slice %3 {offsets = [27, 0, 0], sizes = [1, 8, 4], strides = [1, 1, 1]} : vector<32x8x4xf32> to vector<1x8x4xf32>
    %87 = vector.shape_cast %86 : vector<1x8x4xf32> to vector<8x4xf32>
    %88 = arith.maximumf %85, %87 : vector<8x4xf32>
    %c172 = arith.constant 172 : index
    %c0_17 = arith.constant 0 : index
    %89 = vector.load %arg9[%c172, %c0_17] : memref<222x4xf32, #tpu.memory_space<vmem>>, vector<8x4xf32>
    tpu.vector_store %arg9[%c172, %c0_17], %88 {strides = array<i32>} : memref<222x4xf32, #tpu.memory_space<vmem>>, vector<8x4xf32>,
    %90 = vector.extract_strided_slice %3 {offsets = [28, 0, 0], sizes = [1, 8, 4], strides = [1, 1, 1]} : vector<32x8x4xf32> to vector<1x8x4xf32>
    %91 = vector.shape_cast %90 : vector<1x8x4xf32> to vector<8x4xf32>
    %92 = vector.extract_strided_slice %3 {offsets = [29, 0, 0], sizes = [1, 8, 4], strides = [1, 1, 1]} : vector<32x8x4xf32> to vector<1x8x4xf32>
    %93 = vector.shape_cast %92 : vector<1x8x4xf32> to vector<8x4xf32>
    %94 = arith.maximumf %91, %93 : vector<8x4xf32>
    %c182 = arith.constant 182 : index
    %c0_18 = arith.constant 0 : index
    %95 = vector.load %arg9[%c182, %c0_18] : memref<222x4xf32, #tpu.memory_space<vmem>>, vector<8x4xf32>
    tpu.vector_store %arg9[%c182, %c0_18], %94 {strides = array<i32>} : memref<222x4xf32, #tpu.memory_space<vmem>>, vector<8x4xf32>,
    %96 = vector.extract_strided_slice %3 {offsets = [30, 0, 0], sizes = [1, 8, 4], strides = [1, 1, 1]} : vector<32x8x4xf32> to vector<1x8x4xf32>
    %97 = vector.shape_cast %96 : vector<1x8x4xf32> to vector<8x4xf32>
    %98 = vector.extract_strided_slice %3 {offsets = [31, 0, 0], sizes = [1, 8, 4], strides = [1, 1, 1]} : vector<32x8x4xf32> to vector<1x8x4xf32>
    %99 = vector.shape_cast %98 : vector<1x8x4xf32> to vector<8x4xf32>
    %100 = arith.maximumf %97, %99 : vector<8x4xf32>
    %c192 = arith.constant 192 : index
    %c0_19 = arith.constant 0 : index
    %101 = vector.load %arg9[%c192, %c0_19] : memref<222x4xf32, #tpu.memory_space<vmem>>, vector<8x4xf32>
    tpu.vector_store %arg9[%c192, %c0_19], %100 {strides = array<i32>} : memref<222x4xf32, #tpu.memory_space<vmem>>, vector<8x4xf32>,
    %c0_20 = arith.constant 0 : index
    %c0_21 = arith.constant 0 : index
    %102 = vector.load %arg1[%c0_20, %c0_21] : memref<200x1xf32, #tpu.memory_space<vmem>>, vector<200x1xf32>
    %cst_22 = arith.constant 0.000000e+00 : f32
    %103 = vector.broadcast %cst_22 : f32 to vector<200x128xf32>
    %c0_23 = arith.constant 0 : index
    %c0_24 = arith.constant 0 : index
    %104 = vector.load %arg9[%c0_23, %c0_24] : memref<222x4xf32, #tpu.memory_space<vmem>>, vector<200x4xf32>
    %c0_25 = arith.constant 0 : index
    %c0_26 = arith.constant 0 : index
    %c0_27 = arith.constant 0 : index
    %105 = vector.load %arg2[%c0_25, %c0_26, %c0_27] : memref<9x4x128xf32, #tpu.memory_space<vmem>>, vector<1x4x128xf32>
    %106 = vector.shape_cast %105 : vector<1x4x128xf32> to vector<4x128xf32>
    %cst_28 = arith.constant dense<0.000000e+00> : vector<200x128xf32>
    %107 = tpu.matmul %104, %106, %cst_28 {dimension_numbers = #tpu.dot_dimension_numbers<[1], [0], [0], [1], [0, 0, 1, 1], [], []>} : vector<200x4xf32>, vector<4x128xf32>, vector<200x128xf32> -> vector<200x128xf32>
    %108 = arith.addf %103, %107 : vector<200x128xf32>
    %c1 = arith.constant 1 : index
    %c0_29 = arith.constant 0 : index
    %109 = vector.load %arg9[%c1, %c0_29] : memref<222x4xf32, #tpu.memory_space<vmem>>, vector<200x4xf32>
    %c1_30 = arith.constant 1 : index
    %c0_31 = arith.constant 0 : index
    %c0_32 = arith.constant 0 : index
    %110 = vector.load %arg2[%c1_30, %c0_31, %c0_32] : memref<9x4x128xf32, #tpu.memory_space<vmem>>, vector<1x4x128xf32>
    %111 = vector.shape_cast %110 : vector<1x4x128xf32> to vector<4x128xf32>
    %cst_33 = arith.constant dense<0.000000e+00> : vector<200x128xf32>
    %112 = tpu.matmul %109, %111, %cst_33 {dimension_numbers = #tpu.dot_dimension_numbers<[1], [0], [0], [1], [0, 0, 1, 1], [], []>} : vector<200x4xf32>, vector<4x128xf32>, vector<200x128xf32> -> vector<200x128xf32>
    %113 = arith.addf %108, %112 : vector<200x128xf32>
    %c2 = arith.constant 2 : index
    %c0_34 = arith.constant 0 : index
    %114 = vector.load %arg9[%c2, %c0_34] : memref<222x4xf32, #tpu.memory_space<vmem>>, vector<200x4xf32>
    %c2_35 = arith.constant 2 : index
    %c0_36 = arith.constant 0 : index
    %c0_37 = arith.constant 0 : index
    %115 = vector.load %arg2[%c2_35, %c0_36, %c0_37] : memref<9x4x128xf32, #tpu.memory_space<vmem>>, vector<1x4x128xf32>
    %116 = vector.shape_cast %115 : vector<1x4x128xf32> to vector<4x128xf32>
    %cst_38 = arith.constant dense<0.000000e+00> : vector<200x128xf32>
    %117 = tpu.matmul %114, %116, %cst_38 {dimension_numbers = #tpu.dot_dimension_numbers<[1], [0], [0], [1], [0, 0, 1, 1], [], []>} : vector<200x4xf32>, vector<4x128xf32>, vector<200x128xf32> -> vector<200x128xf32>
    %118 = arith.addf %113, %117 : vector<200x128xf32>
    %c10 = arith.constant 10 : index
    %c0_39 = arith.constant 0 : index
    %119 = vector.load %arg9[%c10, %c0_39] : memref<222x4xf32, #tpu.memory_space<vmem>>, vector<200x4xf32>
    %c3 = arith.constant 3 : index
    %c0_40 = arith.constant 0 : index
    %c0_41 = arith.constant 0 : index
    %120 = vector.load %arg2[%c3, %c0_40, %c0_41] : memref<9x4x128xf32, #tpu.memory_space<vmem>>, vector<1x4x128xf32>
    %121 = vector.shape_cast %120 : vector<1x4x128xf32> to vector<4x128xf32>
    %cst_42 = arith.constant dense<0.000000e+00> : vector<200x128xf32>
    %122 = tpu.matmul %119, %121, %cst_42 {dimension_numbers = #tpu.dot_dimension_numbers<[1], [0], [0], [1], [0, 0, 1, 1], [], []>} : vector<200x4xf32>, vector<4x128xf32>, vector<200x128xf32> -> vector<200x128xf32>
    %123 = arith.addf %118, %122 : vector<200x128xf32>
    %c11 = arith.constant 11 : index
    %c0_43 = arith.constant 0 : index
    %124 = vector.load %arg9[%c11, %c0_43] : memref<222x4xf32, #tpu.memory_space<vmem>>, vector<200x4xf32>
    %c4 = arith.constant 4 : index
    %c0_44 = arith.constant 0 : index
    %c0_45 = arith.constant 0 : index
    %125 = vector.load %arg2[%c4, %c0_44, %c0_45] : memref<9x4x128xf32, #tpu.memory_space<vmem>>, vector<1x4x128xf32>
    %126 = vector.shape_cast %125 : vector<1x4x128xf32> to vector<4x128xf32>
    %cst_46 = arith.constant dense<0.000000e+00> : vector<200x128xf32>
    %127 = tpu.matmul %124, %126, %cst_46 {dimension_numbers = #tpu.dot_dimension_numbers<[1], [0], [0], [1], [0, 0, 1, 1], [], []>} : vector<200x4xf32>, vector<4x128xf32>, vector<200x128xf32> -> vector<200x128xf32>
    %128 = arith.addf %123, %127 : vector<200x128xf32>
    %c12 = arith.constant 12 : index
    %c0_47 = arith.constant 0 : index
    %129 = vector.load %arg9[%c12, %c0_47] : memref<222x4xf32, #tpu.memory_space<vmem>>, vector<200x4xf32>
    %c5 = arith.constant 5 : index
    %c0_48 = arith.constant 0 : index
    %c0_49 = arith.constant 0 : index
    %130 = vector.load %arg2[%c5, %c0_48, %c0_49] : memref<9x4x128xf32, #tpu.memory_space<vmem>>, vector<1x4x128xf32>
    %131 = vector.shape_cast %130 : vector<1x4x128xf32> to vector<4x128xf32>
    %cst_50 = arith.constant dense<0.000000e+00> : vector<200x128xf32>
    %132 = tpu.matmul %129, %131, %cst_50 {dimension_numbers = #tpu.dot_dimension_numbers<[1], [0], [0], [1], [0, 0, 1, 1], [], []>} : vector<200x4xf32>, vector<4x128xf32>, vector<200x128xf32> -> vector<200x128xf32>
    %133 = arith.addf %128, %132 : vector<200x128xf32>
    %c20 = arith.constant 20 : index
    %c0_51 = arith.constant 0 : index
    %134 = vector.load %arg9[%c20, %c0_51] : memref<222x4xf32, #tpu.memory_space<vmem>>, vector<200x4xf32>
    %c6 = arith.constant 6 : index
    %c0_52 = arith.constant 0 : index
    %c0_53 = arith.constant 0 : index
    %135 = vector.load %arg2[%c6, %c0_52, %c0_53] : memref<9x4x128xf32, #tpu.memory_space<vmem>>, vector<1x4x128xf32>
    %136 = vector.shape_cast %135 : vector<1x4x128xf32> to vector<4x128xf32>
    %cst_54 = arith.constant dense<0.000000e+00> : vector<200x128xf32>
    %137 = tpu.matmul %134, %136, %cst_54 {dimension_numbers = #tpu.dot_dimension_numbers<[1], [0], [0], [1], [0, 0, 1, 1], [], []>} : vector<200x4xf32>, vector<4x128xf32>, vector<200x128xf32> -> vector<200x128xf32>
    %138 = arith.addf %133, %137 : vector<200x128xf32>
    %c21 = arith.constant 21 : index
    %c0_55 = arith.constant 0 : index
    %139 = vector.load %arg9[%c21, %c0_55] : memref<222x4xf32, #tpu.memory_space<vmem>>, vector<200x4xf32>
    %c7 = arith.constant 7 : index
    %c0_56 = arith.constant 0 : index
    %c0_57 = arith.constant 0 : index
    %140 = vector.load %arg2[%c7, %c0_56, %c0_57] : memref<9x4x128xf32, #tpu.memory_space<vmem>>, vector<1x4x128xf32>
    %141 = vector.shape_cast %140 : vector<1x4x128xf32> to vector<4x128xf32>
    %cst_58 = arith.constant dense<0.000000e+00> : vector<200x128xf32>
    %142 = tpu.matmul %139, %141, %cst_58 {dimension_numbers = #tpu.dot_dimension_numbers<[1], [0], [0], [1], [0, 0, 1, 1], [], []>} : vector<200x4xf32>, vector<4x128xf32>, vector<200x128xf32> -> vector<200x128xf32>
    %143 = arith.addf %138, %142 : vector<200x128xf32>
    %c22_59 = arith.constant 22 : index
    %c0_60 = arith.constant 0 : index
    %144 = vector.load %arg9[%c22_59, %c0_60] : memref<222x4xf32, #tpu.memory_space<vmem>>, vector<200x4xf32>
    %c8 = arith.constant 8 : index
    %c0_61 = arith.constant 0 : index
    %c0_62 = arith.constant 0 : index
    %145 = vector.load %arg2[%c8, %c0_61, %c0_62] : memref<9x4x128xf32, #tpu.memory_space<vmem>>, vector<1x4x128xf32>
    %146 = vector.shape_cast %145 : vector<1x4x128xf32> to vector<4x128xf32>
    %cst_63 = arith.constant dense<0.000000e+00> : vector<200x128xf32>
    %147 = tpu.matmul %144, %146, %cst_63 {dimension_numbers = #tpu.dot_dimension_numbers<[1], [0], [0], [1], [0, 0, 1, 1], [], []>} : vector<200x4xf32>, vector<4x128xf32>, vector<200x128xf32> -> vector<200x128xf32>
    %148 = arith.addf %143, %147 : vector<200x128xf32>
    %149 = vector.broadcast %102 : vector<200x1xf32> to vector<200x128xf32>
    %150 = arith.mulf %148, %149 : vector<200x128xf32>
    %cst_64 = arith.constant dense<0.000000e+00> : vector<128xf32>
    %151 = vector.multi_reduction <add>, %150, %cst_64 [0] : vector<200x128xf32> to vector<128xf32>
    %152 = vector.shape_cast %151 : vector<128xf32> to vector<1x128xf32>
    %cst_65 = arith.constant 7.812500e-03 : f32
    %153 = vector.broadcast %cst_65 : f32 to vector<1x128xf32>
    %154 = arith.mulf %152, %153 : vector<1x128xf32>
    %155 = vector.broadcast %154 : vector<1x128xf32> to vector<200x128xf32>
    %156 = arith.subf %148, %155 : vector<200x128xf32>
    %157 = arith.mulf %156, %156 : vector<200x128xf32>
    %158 = vector.broadcast %102 : vector<200x1xf32> to vector<200x128xf32>
    %159 = arith.mulf %157, %158 : vector<200x128xf32>
    %cst_66 = arith.constant dense<0.000000e+00> : vector<128xf32>
    %160 = vector.multi_reduction <add>, %159, %cst_66 [0] : vector<200x128xf32> to vector<128xf32>
    %161 = vector.shape_cast %160 : vector<128xf32> to vector<1x128xf32>
    %cst_67 = arith.constant 7.812500e-03 : f32
    %162 = vector.broadcast %cst_67 : f32 to vector<1x128xf32>
    %163 = arith.mulf %161, %162 : vector<1x128xf32>
    %c0_68 = arith.constant 0 : index
    %c0_69 = arith.constant 0 : index
    %164 = vector.load %arg3[%c0_68, %c0_69] : memref<1x128xf32, #tpu.memory_space<vmem>>, vector<1x128xf32>
    %cst_70 = arith.constant 9.99999974E-6 : f32
    %165 = vector.broadcast %cst_70 : f32 to vector<1x128xf32>
    %166 = arith.addf %163, %165 : vector<1x128xf32>
    %167 = math.rsqrt %166 : vector<1x128xf32>
    %168 = arith.mulf %164, %167 : vector<1x128xf32>
    %c0_71 = arith.constant 0 : index
    %c0_72 = arith.constant 0 : index
    %169 = vector.load %arg4[%c0_71, %c0_72] : memref<1x128xf32, #tpu.memory_space<vmem>>, vector<1x128xf32>
    %170 = arith.mulf %154, %168 : vector<1x128xf32>
    %171 = arith.subf %169, %170 : vector<1x128xf32>
    %172 = vector.broadcast %168 : vector<1x128xf32> to vector<200x128xf32>
    %173 = arith.mulf %148, %172 : vector<200x128xf32>
    %174 = vector.broadcast %171 : vector<1x128xf32> to vector<200x128xf32>
    %175 = arith.addf %173, %174 : vector<200x128xf32>
    %cst_73 = arith.constant 0.000000e+00 : f32
    %176 = vector.broadcast %cst_73 : f32 to vector<200x128xf32>
    %177 = arith.maximumf %175, %176 : vector<200x128xf32>
    %178 = vector.broadcast %102 : vector<200x1xf32> to vector<200x128xf32>
    %179 = arith.mulf %177, %178 : vector<200x128xf32>
    %cst_74 = arith.constant 0.000000e+00 : f32
    %180 = vector.broadcast %cst_74 : f32 to vector<222x8xf32>
    %c0_75 = arith.constant 0 : index
    %c0_76 = arith.constant 0 : index
    %181 = vector.load %arg10[%c0_75, %c0_76] : memref<222x8xf32, #tpu.memory_space<vmem>>, vector<222x8xf32>
    tpu.vector_store %arg10[%c0_75, %c0_76], %180 {strides = array<i32>} : memref<222x8xf32, #tpu.memory_space<vmem>>, vector<222x8xf32>,
    %182 = vector.extract_strided_slice %179 {offsets = [0, 0], sizes = [200, 8], strides = [1, 1]} : vector<200x128xf32> to vector<200x8xf32>
    %c11_77 = arith.constant 11 : index
    %c0_78 = arith.constant 0 : index
    %183 = vector.load %arg10[%c11_77, %c0_78] : memref<222x8xf32, #tpu.memory_space<vmem>>, vector<200x8xf32>
    tpu.vector_store %arg10[%c11_77, %c0_78], %182 {strides = array<i32>} : memref<222x8xf32, #tpu.memory_space<vmem>>, vector<200x8xf32>,
    %cst_79 = arith.constant 0.000000e+00 : f32
    %184 = vector.broadcast %cst_79 : f32 to vector<200x128xf32>
    %c0_80 = arith.constant 0 : index
    %c0_81 = arith.constant 0 : index
    %185 = vector.load %arg10[%c0_80, %c0_81] : memref<222x8xf32, #tpu.memory_space<vmem>>, vector<200x8xf32>
    %c0_82 = arith.constant 0 : index
    %c0_83 = arith.constant 0 : index
    %c0_84 = arith.constant 0 : index
    %186 = vector.load %arg5[%c0_82, %c0_83, %c0_84] : memref<9x8x128xf32, #tpu.memory_space<vmem>>, vector<1x8x128xf32>
    %187 = vector.shape_cast %186 : vector<1x8x128xf32> to vector<8x128xf32>
    %cst_85 = arith.constant dense<0.000000e+00> : vector<200x128xf32>
    %188 = tpu.matmul %185, %187, %cst_85 {dimension_numbers = #tpu.dot_dimension_numbers<[1], [0], [0], [1], [0, 0, 1, 1], [], []>} : vector<200x8xf32>, vector<8x128xf32>, vector<200x128xf32> -> vector<200x128xf32>
    %189 = arith.addf %184, %188 : vector<200x128xf32>
    %c1_86 = arith.constant 1 : index
    %c0_87 = arith.constant 0 : index
    %190 = vector.load %arg10[%c1_86, %c0_87] : memref<222x8xf32, #tpu.memory_space<vmem>>, vector<200x8xf32>
    %c1_88 = arith.constant 1 : index
    %c0_89 = arith.constant 0 : index
    %c0_90 = arith.constant 0 : index
    %191 = vector.load %arg5[%c1_88, %c0_89, %c0_90] : memref<9x8x128xf32, #tpu.memory_space<vmem>>, vector<1x8x128xf32>
    %192 = vector.shape_cast %191 : vector<1x8x128xf32> to vector<8x128xf32>
    %cst_91 = arith.constant dense<0.000000e+00> : vector<200x128xf32>
    %193 = tpu.matmul %190, %192, %cst_91 {dimension_numbers = #tpu.dot_dimension_numbers<[1], [0], [0], [1], [0, 0, 1, 1], [], []>} : vector<200x8xf32>, vector<8x128xf32>, vector<200x128xf32> -> vector<200x128xf32>
    %194 = arith.addf %189, %193 : vector<200x128xf32>
    %c2_92 = arith.constant 2 : index
    %c0_93 = arith.constant 0 : index
    %195 = vector.load %arg10[%c2_92, %c0_93] : memref<222x8xf32, #tpu.memory_space<vmem>>, vector<200x8xf32>
    %c2_94 = arith.constant 2 : index
    %c0_95 = arith.constant 0 : index
    %c0_96 = arith.constant 0 : index
    %196 = vector.load %arg5[%c2_94, %c0_95, %c0_96] : memref<9x8x128xf32, #tpu.memory_space<vmem>>, vector<1x8x128xf32>
    %197 = vector.shape_cast %196 : vector<1x8x128xf32> to vector<8x128xf32>
    %cst_97 = arith.constant dense<0.000000e+00> : vector<200x128xf32>
    %198 = tpu.matmul %195, %197, %cst_97 {dimension_numbers = #tpu.dot_dimension_numbers<[1], [0], [0], [1], [0, 0, 1, 1], [], []>} : vector<200x8xf32>, vector<8x128xf32>, vector<200x128xf32> -> vector<200x128xf32>
    %199 = arith.addf %194, %198 : vector<200x128xf32>
    %c10_98 = arith.constant 10 : index
    %c0_99 = arith.constant 0 : index
    %200 = vector.load %arg10[%c10_98, %c0_99] : memref<222x8xf32, #tpu.memory_space<vmem>>, vector<200x8xf32>
    %c3_100 = arith.constant 3 : index
    %c0_101 = arith.constant 0 : index
    %c0_102 = arith.constant 0 : index
    %201 = vector.load %arg5[%c3_100, %c0_101, %c0_102] : memref<9x8x128xf32, #tpu.memory_space<vmem>>, vector<1x8x128xf32>
    %202 = vector.shape_cast %201 : vector<1x8x128xf32> to vector<8x128xf32>
    %cst_103 = arith.constant dense<0.000000e+00> : vector<200x128xf32>
    %203 = tpu.matmul %200, %202, %cst_103 {dimension_numbers = #tpu.dot_dimension_numbers<[1], [0], [0], [1], [0, 0, 1, 1], [], []>} : vector<200x8xf32>, vector<8x128xf32>, vector<200x128xf32> -> vector<200x128xf32>
    %204 = arith.addf %199, %203 : vector<200x128xf32>
    %c11_104 = arith.constant 11 : index
    %c0_105 = arith.constant 0 : index
    %205 = vector.load %arg10[%c11_104, %c0_105] : memref<222x8xf32, #tpu.memory_space<vmem>>, vector<200x8xf32>
    %c4_106 = arith.constant 4 : index
    %c0_107 = arith.constant 0 : index
    %c0_108 = arith.constant 0 : index
    %206 = vector.load %arg5[%c4_106, %c0_107, %c0_108] : memref<9x8x128xf32, #tpu.memory_space<vmem>>, vector<1x8x128xf32>
    %207 = vector.shape_cast %206 : vector<1x8x128xf32> to vector<8x128xf32>
    %cst_109 = arith.constant dense<0.000000e+00> : vector<200x128xf32>
    %208 = tpu.matmul %205, %207, %cst_109 {dimension_numbers = #tpu.dot_dimension_numbers<[1], [0], [0], [1], [0, 0, 1, 1], [], []>} : vector<200x8xf32>, vector<8x128xf32>, vector<200x128xf32> -> vector<200x128xf32>
    %209 = arith.addf %204, %208 : vector<200x128xf32>
    %c12_110 = arith.constant 12 : index
    %c0_111 = arith.constant 0 : index
    %210 = vector.load %arg10[%c12_110, %c0_111] : memref<222x8xf32, #tpu.memory_space<vmem>>, vector<200x8xf32>
    %c5_112 = arith.constant 5 : index
    %c0_113 = arith.constant 0 : index
    %c0_114 = arith.constant 0 : index
    %211 = vector.load %arg5[%c5_112, %c0_113, %c0_114] : memref<9x8x128xf32, #tpu.memory_space<vmem>>, vector<1x8x128xf32>
    %212 = vector.shape_cast %211 : vector<1x8x128xf32> to vector<8x128xf32>
    %cst_115 = arith.constant dense<0.000000e+00> : vector<200x128xf32>
    %213 = tpu.matmul %210, %212, %cst_115 {dimension_numbers = #tpu.dot_dimension_numbers<[1], [0], [0], [1], [0, 0, 1, 1], [], []>} : vector<200x8xf32>, vector<8x128xf32>, vector<200x128xf32> -> vector<200x128xf32>
    %214 = arith.addf %209, %213 : vector<200x128xf32>
    %c20_116 = arith.constant 20 : index
    %c0_117 = arith.constant 0 : index
    %215 = vector.load %arg10[%c20_116, %c0_117] : memref<222x8xf32, #tpu.memory_space<vmem>>, vector<200x8xf32>
    %c6_118 = arith.constant 6 : index
    %c0_119 = arith.constant 0 : index
    %c0_120 = arith.constant 0 : index
    %216 = vector.load %arg5[%c6_118, %c0_119, %c0_120] : memref<9x8x128xf32, #tpu.memory_space<vmem>>, vector<1x8x128xf32>
    %217 = vector.shape_cast %216 : vector<1x8x128xf32> to vector<8x128xf32>
    %cst_121 = arith.constant dense<0.000000e+00> : vector<200x128xf32>
    %218 = tpu.matmul %215, %217, %cst_121 {dimension_numbers = #tpu.dot_dimension_numbers<[1], [0], [0], [1], [0, 0, 1, 1], [], []>} : vector<200x8xf32>, vector<8x128xf32>, vector<200x128xf32> -> vector<200x128xf32>
    %219 = arith.addf %214, %218 : vector<200x128xf32>
    %c21_122 = arith.constant 21 : index
    %c0_123 = arith.constant 0 : index
    %220 = vector.load %arg10[%c21_122, %c0_123] : memref<222x8xf32, #tpu.memory_space<vmem>>, vector<200x8xf32>
    %c7_124 = arith.constant 7 : index
    %c0_125 = arith.constant 0 : index
    %c0_126 = arith.constant 0 : index
    %221 = vector.load %arg5[%c7_124, %c0_125, %c0_126] : memref<9x8x128xf32, #tpu.memory_space<vmem>>, vector<1x8x128xf32>
    %222 = vector.shape_cast %221 : vector<1x8x128xf32> to vector<8x128xf32>
    %cst_127 = arith.constant dense<0.000000e+00> : vector<200x128xf32>
    %223 = tpu.matmul %220, %222, %cst_127 {dimension_numbers = #tpu.dot_dimension_numbers<[1], [0], [0], [1], [0, 0, 1, 1], [], []>} : vector<200x8xf32>, vector<8x128xf32>, vector<200x128xf32> -> vector<200x128xf32>
    %224 = arith.addf %219, %223 : vector<200x128xf32>
    %c22_128 = arith.constant 22 : index
    %c0_129 = arith.constant 0 : index
    %225 = vector.load %arg10[%c22_128, %c0_129] : memref<222x8xf32, #tpu.memory_space<vmem>>, vector<200x8xf32>
    %c8_130 = arith.constant 8 : index
    %c0_131 = arith.constant 0 : index
    %c0_132 = arith.constant 0 : index
    %226 = vector.load %arg5[%c8_130, %c0_131, %c0_132] : memref<9x8x128xf32, #tpu.memory_space<vmem>>, vector<1x8x128xf32>
    %227 = vector.shape_cast %226 : vector<1x8x128xf32> to vector<8x128xf32>
    %cst_133 = arith.constant dense<0.000000e+00> : vector<200x128xf32>
    %228 = tpu.matmul %225, %227, %cst_133 {dimension_numbers = #tpu.dot_dimension_numbers<[1], [0], [0], [1], [0, 0, 1, 1], [], []>} : vector<200x8xf32>, vector<8x128xf32>, vector<200x128xf32> -> vector<200x128xf32>
    %229 = arith.addf %224, %228 : vector<200x128xf32>
    %230 = vector.broadcast %102 : vector<200x1xf32> to vector<200x128xf32>
    %231 = arith.mulf %229, %230 : vector<200x128xf32>
    %cst_134 = arith.constant dense<0.000000e+00> : vector<128xf32>
    %232 = vector.multi_reduction <add>, %231, %cst_134 [0] : vector<200x128xf32> to vector<128xf32>
    %233 = vector.shape_cast %232 : vector<128xf32> to vector<1x128xf32>
    %cst_135 = arith.constant 7.812500e-03 : f32
    %234 = vector.broadcast %cst_135 : f32 to vector<1x128xf32>
    %235 = arith.mulf %233, %234 : vector<1x128xf32>
    %236 = vector.broadcast %235 : vector<1x128xf32> to vector<200x128xf32>
    %237 = arith.subf %229, %236 : vector<200x128xf32>
    %238 = arith.mulf %237, %237 : vector<200x128xf32>
    %239 = vector.broadcast %102 : vector<200x1xf32> to vector<200x128xf32>
    %240 = arith.mulf %238, %239 : vector<200x128xf32>
    %cst_136 = arith.constant dense<0.000000e+00> : vector<128xf32>
    %241 = vector.multi_reduction <add>, %240, %cst_136 [0] : vector<200x128xf32> to vector<128xf32>
    %242 = vector.shape_cast %241 : vector<128xf32> to vector<1x128xf32>
    %cst_137 = arith.constant 7.812500e-03 : f32
    %243 = vector.broadcast %cst_137 : f32 to vector<1x128xf32>
    %244 = arith.mulf %242, %243 : vector<1x128xf32>
    %c0_138 = arith.constant 0 : index
    %c0_139 = arith.constant 0 : index
    %245 = vector.load %arg6[%c0_138, %c0_139] : memref<1x128xf32, #tpu.memory_space<vmem>>, vector<1x128xf32>
    %cst_140 = arith.constant 9.99999974E-6 : f32
    %246 = vector.broadcast %cst_140 : f32 to vector<1x128xf32>
    %247 = arith.addf %244, %246 : vector<1x128xf32>
    %248 = math.rsqrt %247 : vector<1x128xf32>
    %249 = arith.mulf %245, %248 : vector<1x128xf32>
    %c0_141 = arith.constant 0 : index
    %c0_142 = arith.constant 0 : index
    %250 = vector.load %arg7[%c0_141, %c0_142] : memref<1x128xf32, #tpu.memory_space<vmem>>, vector<1x128xf32>
    %251 = arith.mulf %235, %249 : vector<1x128xf32>
    %252 = arith.subf %250, %251 : vector<1x128xf32>
    %253 = vector.broadcast %249 : vector<1x128xf32> to vector<200x128xf32>
    %254 = arith.mulf %229, %253 : vector<200x128xf32>
    %255 = vector.broadcast %252 : vector<1x128xf32> to vector<200x128xf32>
    %256 = arith.addf %254, %255 : vector<200x128xf32>
    %cst_143 = arith.constant 0.000000e+00 : f32
    %257 = vector.broadcast %cst_143 : f32 to vector<200x128xf32>
    %258 = arith.maximumf %256, %257 : vector<200x128xf32>
    %259 = vector.extract_strided_slice %258 {offsets = [11, 0], sizes = [8, 128], strides = [1, 1]} : vector<200x128xf32> to vector<8x128xf32>
    %c0_144 = arith.constant 0 : index
    %c0_145 = arith.constant 0 : index
    %260 = vector.load %arg8[%c0_144, %c0_145] : memref<128x128xf32, #tpu.memory_space<vmem>>, vector<8x128xf32>
    tpu.vector_store %arg8[%c0_144, %c0_145], %259 {strides = array<i32>} : memref<128x128xf32, #tpu.memory_space<vmem>>, vector<8x128xf32>,
    %261 = vector.extract_strided_slice %258 {offsets = [21, 0], sizes = [8, 128], strides = [1, 1]} : vector<200x128xf32> to vector<8x128xf32>
    %c8_146 = arith.constant 8 : index
    %c0_147 = arith.constant 0 : index
    %262 = vector.load %arg8[%c8_146, %c0_147] : memref<128x128xf32, #tpu.memory_space<vmem>>, vector<8x128xf32>
    tpu.vector_store %arg8[%c8_146, %c0_147], %261 {strides = array<i32>} : memref<128x128xf32, #tpu.memory_space<vmem>>, vector<8x128xf32>,
    %263 = vector.extract_strided_slice %258 {offsets = [31, 0], sizes = [8, 128], strides = [1, 1]} : vector<200x128xf32> to vector<8x128xf32>
    %c16 = arith.constant 16 : index
    %c0_148 = arith.constant 0 : index
    %264 = vector.load %arg8[%c16, %c0_148] : memref<128x128xf32, #tpu.memory_space<vmem>>, vector<8x128xf32>
    tpu.vector_store %arg8[%c16, %c0_148], %263 {strides = array<i32>} : memref<128x128xf32, #tpu.memory_space<vmem>>, vector<8x128xf32>,
    %265 = vector.extract_strided_slice %258 {offsets = [41, 0], sizes = [8, 128], strides = [1, 1]} : vector<200x128xf32> to vector<8x128xf32>
    %c24 = arith.constant 24 : index
    %c0_149 = arith.constant 0 : index
    %266 = vector.load %arg8[%c24, %c0_149] : memref<128x128xf32, #tpu.memory_space<vmem>>, vector<8x128xf32>
    tpu.vector_store %arg8[%c24, %c0_149], %265 {strides = array<i32>} : memref<128x128xf32, #tpu.memory_space<vmem>>, vector<8x128xf32>,
    %267 = vector.extract_strided_slice %258 {offsets = [51, 0], sizes = [8, 128], strides = [1, 1]} : vector<200x128xf32> to vector<8x128xf32>
    %c32_150 = arith.constant 32 : index
    %c0_151 = arith.constant 0 : index
    %268 = vector.load %arg8[%c32_150, %c0_151] : memref<128x128xf32, #tpu.memory_space<vmem>>, vector<8x128xf32>
    tpu.vector_store %arg8[%c32_150, %c0_151], %267 {strides = array<i32>} : memref<128x128xf32, #tpu.memory_space<vmem>>, vector<8x128xf32>,
    %269 = vector.extract_strided_slice %258 {offsets = [61, 0], sizes = [8, 128], strides = [1, 1]} : vector<200x128xf32> to vector<8x128xf32>
    %c40 = arith.constant 40 : index
    %c0_152 = arith.constant 0 : index
    %270 = vector.load %arg8[%c40, %c0_152] : memref<128x128xf32, #tpu.memory_space<vmem>>, vector<8x128xf32>
    tpu.vector_store %arg8[%c40, %c0_152], %269 {strides = array<i32>} : memref<128x128xf32, #tpu.memory_space<vmem>>, vector<8x128xf32>,
    %271 = vector.extract_strided_slice %258 {offsets = [71, 0], sizes = [8, 128], strides = [1, 1]} : vector<200x128xf32> to vector<8x128xf32>
    %c48 = arith.constant 48 : index
    %c0_153 = arith.constant 0 : index
    %272 = vector.load %arg8[%c48, %c0_153] : memref<128x128xf32, #tpu.memory_space<vmem>>, vector<8x128xf32>
    tpu.vector_store %arg8[%c48, %c0_153], %271 {strides = array<i32>} : memref<128x128xf32, #tpu.memory_space<vmem>>, vector<8x128xf32>,
    %273 = vector.extract_strided_slice %258 {offsets = [81, 0], sizes = [8, 128], strides = [1, 1]} : vector<200x128xf32> to vector<8x128xf32>
    %c56 = arith.constant 56 : index
    %c0_154 = arith.constant 0 : index
    %274 = vector.load %arg8[%c56, %c0_154] : memref<128x128xf32, #tpu.memory_space<vmem>>, vector<8x128xf32>
    tpu.vector_store %arg8[%c56, %c0_154], %273 {strides = array<i32>} : memref<128x128xf32, #tpu.memory_space<vmem>>, vector<8x128xf32>,
    %275 = vector.extract_strided_slice %258 {offsets = [111, 0], sizes = [8, 128], strides = [1, 1]} : vector<200x128xf32> to vector<8x128xf32>
    %c64 = arith.constant 64 : index
    %c0_155 = arith.constant 0 : index
    %276 = vector.load %arg8[%c64, %c0_155] : memref<128x128xf32, #tpu.memory_space<vmem>>, vector<8x128xf32>
    tpu.vector_store %arg8[%c64, %c0_155], %275 {strides = array<i32>} : memref<128x128xf32, #tpu.memory_space<vmem>>, vector<8x128xf32>,
    %277 = vector.extract_strided_slice %258 {offsets = [121, 0], sizes = [8, 128], strides = [1, 1]} : vector<200x128xf32> to vector<8x128xf32>
    %c72_156 = arith.constant 72 : index
    %c0_157 = arith.constant 0 : index
    %278 = vector.load %arg8[%c72_156, %c0_157] : memref<128x128xf32, #tpu.memory_space<vmem>>, vector<8x128xf32>
    tpu.vector_store %arg8[%c72_156, %c0_157], %277 {strides = array<i32>} : memref<128x128xf32, #tpu.memory_space<vmem>>, vector<8x128xf32>,
    %279 = vector.extract_strided_slice %258 {offsets = [131, 0], sizes = [8, 128], strides = [1, 1]} : vector<200x128xf32> to vector<8x128xf32>
    %c80 = arith.constant 80 : index
    %c0_158 = arith.constant 0 : index
    %280 = vector.load %arg8[%c80, %c0_158] : memref<128x128xf32, #tpu.memory_space<vmem>>, vector<8x128xf32>
    tpu.vector_store %arg8[%c80, %c0_158], %279 {strides = array<i32>} : memref<128x128xf32, #tpu.memory_space<vmem>>, vector<8x128xf32>,
    %281 = vector.extract_strided_slice %258 {offsets = [141, 0], sizes = [8, 128], strides = [1, 1]} : vector<200x128xf32> to vector<8x128xf32>
    %c88 = arith.constant 88 : index
    %c0_159 = arith.constant 0 : index
    %282 = vector.load %arg8[%c88, %c0_159] : memref<128x128xf32, #tpu.memory_space<vmem>>, vector<8x128xf32>
    tpu.vector_store %arg8[%c88, %c0_159], %281 {strides = array<i32>} : memref<128x128xf32, #tpu.memory_space<vmem>>, vector<8x128xf32>,
    %283 = vector.extract_strided_slice %258 {offsets = [151, 0], sizes = [8, 128], strides = [1, 1]} : vector<200x128xf32> to vector<8x128xf32>
    %c96 = arith.constant 96 : index
    %c0_160 = arith.constant 0 : index
    %284 = vector.load %arg8[%c96, %c0_160] : memref<128x128xf32, #tpu.memory_space<vmem>>, vector<8x128xf32>
    tpu.vector_store %arg8[%c96, %c0_160], %283 {strides = array<i32>} : memref<128x128xf32, #tpu.memory_space<vmem>>, vector<8x128xf32>,
    %285 = vector.extract_strided_slice %258 {offsets = [161, 0], sizes = [8, 128], strides = [1, 1]} : vector<200x128xf32> to vector<8x128xf32>
    %c104 = arith.constant 104 : index
    %c0_161 = arith.constant 0 : index
    %286 = vector.load %arg8[%c104, %c0_161] : memref<128x128xf32, #tpu.memory_space<vmem>>, vector<8x128xf32>
    tpu.vector_store %arg8[%c104, %c0_161], %285 {strides = array<i32>} : memref<128x128xf32, #tpu.memory_space<vmem>>, vector<8x128xf32>,
    %287 = vector.extract_strided_slice %258 {offsets = [171, 0], sizes = [8, 128], strides = [1, 1]} : vector<200x128xf32> to vector<8x128xf32>
    %c112 = arith.constant 112 : index
    %c0_162 = arith.constant 0 : index
    %288 = vector.load %arg8[%c112, %c0_162] : memref<128x128xf32, #tpu.memory_space<vmem>>, vector<8x128xf32>
    tpu.vector_store %arg8[%c112, %c0_162], %287 {strides = array<i32>} : memref<128x128xf32, #tpu.memory_space<vmem>>, vector<8x128xf32>,
    %289 = vector.extract_strided_slice %258 {offsets = [181, 0], sizes = [8, 128], strides = [1, 1]} : vector<200x128xf32> to vector<8x128xf32>
    %c120 = arith.constant 120 : index
    %c0_163 = arith.constant 0 : index
    %290 = vector.load %arg8[%c120, %c0_163] : memref<128x128xf32, #tpu.memory_space<vmem>>, vector<8x128xf32>
    tpu.vector_store %arg8[%c120, %c0_163], %289 {strides = array<i32>} : memref<128x128xf32, #tpu.memory_space<vmem>>, vector<8x128xf32>,
    return
  }
}

</mosaic_0001>

<bundles_post_ra>
// kernel: down_forward.1
= control target key start
LH: loop header
LB: loop body
LE: loop exit
PB: predicated region body
PF: predicated region fallthrough
CT: control target
= control target key end

     0   :  { %s5413_s9 = smov 124   ;;  %vm221_vm0 = vcmask 31744   ;;  %v8028_v32 = vmov 0.0   ;;  %vm436_vm1 = vcmask 1043456   ;;  %vm249_vm2 = vcmask 29696   ;;  %s8019_s0 = inlined_call_operand.vmem [shape: f32[32,8,8], index: 0, kind: input, shape index: {}]   ;;  %s8020_s2 = inlined_call_operand.vmem [shape: f32[9,4,128], index: 2, kind: input, shape index: {}]   ;;  %s8021_s1 = inlined_call_operand.vmem [shape: f32[200,1], index: 1, kind: input, shape index: {}]   ;;  %s8022_s5 = inlined_call_operand.vmem [shape: f32[9,8,128], index: 5, kind: input, shape index: {}]   ;;  %s8023_s3 = inlined_call_operand.vmem [shape: f32[1,128], index: 3, kind: input, shape index: {}]   ;;  %s8024_s4 = inlined_call_operand.vmem [shape: f32[1,128], index: 4, kind: input, shape index: {}]   ;;  %s8025_s6 = inlined_call_operand.vmem [shape: f32[1,128], index: 6, kind: input, shape index: {}]   ;;  %s8026_s7 = inlined_call_operand.vmem [shape: f32[1,128], index: 7, kind: input, shape index: {}]   ;;  %s8027_s8 = inlined_call_operand.vmem [shape: f32[128,128], index: 8, kind: output, shape index: {}]  }
   0x1   :  { %v5464_v0 = vld [vmem:[%s8019_s0 + $0x80] sm:$0xff]  ;;  %v5478_v2 = vld [vmem:[%s8019_s0 + $0x90] sm:$0xff]  ;;  %v5485_v3 = vld [vmem:[%s8019_s0 + $0x88] sm:$0xff]  ;;  %238 = vst.msk [vmem:[#allocation2 + $0x80] sm:$0xff] %vm221_vm0, %v8028_v32  ;;  %vm2665_vm3 = vcmask 64512   ;;  %vm2693_vm7 = vcmask 62464  }
   0x2   :  { %v5469_v1 = vld [vmem:[%s8019_s0] sm:$0xff]  ;;  %125 = vrot.lane.b32.xlu0 %v5464_v0, %s5413_s9  ;;  %129 = vrot.lane.b32.xlu2 %v5478_v2, %s5413_s9  ;;  %v5490_v4 = vld [vmem:[%s8019_s0 + $0x8] sm:$0xff]  ;;  %239 = vst.msk [vmem:[#allocation2 + $0x88] sm:$0xff] %vm221_vm0, %v8028_v32 }
   0x3   :  { %93 = vrot.lane.b32.xlu1 %v5469_v1, %s5413_s9  ;;  %v5495_v5 = vld [vmem:[%s8019_s0 + $0x98] sm:$0xff]  ;;  %v5506_v6 = vld [vmem:[%s8019_s0 + $0x10] sm:$0xff]  ;;  %v5516_v8 = vld [vmem:[%s8019_s0 + $0xa0] sm:$0xff]  ;;  %222 = vst.msk [vmem:[#allocation2] sm:$0xff] %vm221_vm0, %v8028_v32 }
   0x4   :  { %v5511_v7 = vld [vmem:[%s8019_s0 + $0x18] sm:$0xff]  ;;  %v5527_v9 = vld [vmem:[%s8019_s0 + $0xa8] sm:$0xff]  ;;  %v5532_v10 = vld [vmem:[%s8019_s0 + $0xb0] sm:$0xff]  ;;  %223 = vst.msk [vmem:[#allocation2 + $0x8] sm:$0xff] %vm221_vm0, %v8028_v32 }
   0x5   :  { %v5537_v11 = vld [vmem:[%s8019_s0 + $0xb8] sm:$0xff]  ;;  %v5548_v12 = vld [vmem:[%s8019_s0 + $0x20] sm:$0xff]  ;;  %v5553_v13 = vld [vmem:[%s8019_s0 + $0x28] sm:$0xff]  ;;  %224 = vst.msk [vmem:[#allocation2 + $0x10] sm:$0xff] %vm221_vm0, %v8028_v32 }
   0x6   :  { %v5558_v14 = vld [vmem:[%s8019_s0 + $0x30] sm:$0xff]  ;;  %v5569_v15 = vld [vmem:[%s8019_s0 + $0x38] sm:$0xff]  ;;  %v5574_v16 = vld [vmem:[%s8019_s0 + $0xc0] sm:$0xff]  ;;  %225 = vst.msk [vmem:[#allocation2 + $0x18] sm:$0xff] %vm221_vm0, %v8028_v32 }
   0x7   :  { %v5579_v17 = vld [vmem:[%s8019_s0 + $0xc8] sm:$0xff]  ;;  %v5590_v18 = vld [vmem:[%s8019_s0 + $0x40] sm:$0xff]  ;;  %v5600_v20 = vld [vmem:[%s8019_s0 + $0xd0] sm:$0xff]  ;;  %226 = vst.msk [vmem:[#allocation2 + $0x20] sm:$0xff] %vm221_vm0, %v8028_v32 }
   0x8   :  { %v5595_v19 = vld [vmem:[%s8019_s0 + $0x48] sm:$0xff]  ;;  %v5611_v21 = vld [vmem:[%s8019_s0 + $0xd8] sm:$0xff]  ;;  %v5616_v22 = vld [vmem:[%s8019_s0 + $0x50] sm:$0xff]  ;;  %227 = vst.msk [vmem:[#allocation2 + $0x28] sm:$0xff] %vm221_vm0, %v8028_v32 }
   0x9   :  { %v5621_v23 = vld [vmem:[%s8019_s0 + $0x58] sm:$0xff]  ;;  %v5632_v24 = vld [vmem:[%s8019_s0 + $0xe0] sm:$0xff]  ;;  %v5637_v25 = vld [vmem:[%s8019_s0 + $0xe8] sm:$0xff]  ;;  %228 = vst.msk [vmem:[#allocation2 + $0x30] sm:$0xff] %vm221_vm0, %v8028_v32 }
   0xa   :  { %127 = vrot.lane.b32.xlu0 %v5485_v3, %s5413_s9  ;;  %131 = vrot.lane.b32.xlu2 %v5495_v5, %s5413_s9  ;;  %v5642_v26 = vld [vmem:[%s8019_s0 + $0xf0] sm:$0xff]  ;;  %v5653_v27 = vld [vmem:[%s8019_s0 + $0xf8] sm:$0xff]  ;;  %229 = vst.msk [vmem:[#allocation2 + $0x38] sm:$0xff] %vm221_vm0, %v8028_v32  ;;  %v308_v38 = vld [vmem:[#allocation2] sm:$0xff] }
   0xb   :  { %95 = vrot.lane.b32.xlu1 %v5490_v4, %s5413_s9  ;;  %v5658_v28 = vld [vmem:[%s8019_s0 + $0x60] sm:$0xff]  ;;  %v5663_v29 = vld [vmem:[%s8019_s0 + $0x68] sm:$0xff]  ;;  %v5674_v30 = vld [vmem:[%s8019_s0 + $0x70] sm:$0xff]  ;;  %230 = vst.msk [vmem:[#allocation2 + $0x40] sm:$0xff] %vm221_vm0, %v8028_v32 }
   0xc   :  { %v5679_v31 = vld [vmem:[%s8019_s0 + $0x78] sm:$0xff]  ;;  %v4926_v33 = vld [vmem:[%s8020_s2 + $0x4] sm:$0xf]  ;;  %v333_v34 = vld [vmem:[%s8020_s2] sm:$0xf]  ;;  %231 = vst.msk [vmem:[#allocation2 + $0x48] sm:$0xff] %vm221_vm0, %v8028_v32 }
   0xd   :  { %4927 = vmatpush.msk.msra.mxu0 %vm436_vm1, %v4926_v33  ;;  %5401 = vmatpush.msk.msra.mxu2 %vm436_vm1, %v4926_v33  ;;  %v4979_v35 = vld [vmem:[%s8020_s2 + $0x8] sm:$0xf]  ;;  %v5006_v36 = vld [vmem:[%s8020_s2 + $0xc] sm:$0xf]  ;;  %v5033_v37 = vld [vmem:[%s8020_s2 + $0x10] sm:$0xf] }
   0xe   :  { %4953 = vmatpush.msk.msra.mxu1 %vm436_vm1, %v333_v34  ;;  %5402 = vmatpush.msk.msra.mxu3 %vm436_vm1, %v333_v34  ;;  %v334_v39 = vld [vmem:[#allocation2 + $0x1] sm:$0xff]  ;;  %232 = vst.msk [vmem:[#allocation2 + $0x50] sm:$0xff] %vm221_vm0, %v8028_v32  ;;  %v335_v41 = vld [vmem:[#allocation2 + $0x9] sm:$0xff] }
   0xf   :  { %4980 = vmatpush.msk.msrb.mxu2 %vm436_vm1, %v4979_v35  ;;  %5034 = vmatpush.msk.msrb.mxu0 %vm436_vm1, %v5033_v37  ;;  %233 = vst.msk [vmem:[#allocation2 + $0x58] sm:$0xff] %vm221_vm0, %v8028_v32  ;;  %v309_v42 = vld [vmem:[#allocation2 + $0x8] sm:$0xff] }
  0x10   :  { %5007 = vmatpush.msk.msrb.mxu3 %vm436_vm1, %v5006_v36  ;;  %4954 = vmatmul.msk.f32.vlgmr.msra.gmra.mxu1 %vm221_vm0, %v308_v38  ;;  %234 = vst.msk [vmem:[#allocation2 + $0x60] sm:$0xff] %vm221_vm0, %v8028_v32 }
  0x11   :  { %4928 = vmatmul.msk.f32.vlgmr.msra.gmra.mxu0 %vm221_vm0, %v334_v39  ;;  %235 = vst.msk [vmem:[#allocation2 + $0x68] sm:$0xff] %vm221_vm0, %v8028_v32 }
  0x12   :  { %97 = vrot.lane.b32.xlu0 %v5506_v6, %s5413_s9  ;;  %133 = vrot.lane.b32.xlu2 %v5516_v8, %s5413_s9  ;;  %236 = vst.msk [vmem:[#allocation2 + $0x70] sm:$0xff] %vm221_vm0, %v8028_v32 }
  0x13   :  { %99 = vrot.lane.b32.xlu1 %v5511_v7, %s5413_s9  ;;  %237 = vst.msk [vmem:[#allocation2 + $0x78] sm:$0xff] %vm221_vm0, %v8028_v32 }
  0x14   :  { %240 = vst.msk [vmem:[#allocation2 + $0x90] sm:$0xff] %vm221_vm0, %v8028_v32 }
  0x15   :  { %241 = vst.msk [vmem:[#allocation2 + $0x98] sm:$0xff] %vm221_vm0, %v8028_v32 }
  0x16   :  { %242 = vst.msk [vmem:[#allocation2 + $0xa0] sm:$0xff] %vm221_vm0, %v8028_v32 }
  0x17   :  { %243 = vst.msk [vmem:[#allocation2 + $0xa8] sm:$0xff] %vm221_vm0, %v8028_v32 }
  0x18   :  { %4955 = vmatmul.msk.f32.gmra.mxu1 %vm221_vm0, %v309_v42  ;;  %244 = vst.msk [vmem:[#allocation2 + $0xb0] sm:$0xff] %vm221_vm0, %v8028_v32  ;;  %v321_v46 = vld [vmem:[#allocation2 + $0x68] sm:$0xff] }
  0x19   :  { %4929 = vmatmul.msk.f32.gmra.mxu0 %vm221_vm0, %v335_v41  ;;  %245 = vst.msk [vmem:[#allocation2 + $0xb8] sm:$0xff] %vm221_vm0, %v8028_v32  ;;  %v347_v47 = vld [vmem:[#allocation2 + $0x69] sm:$0xff]  ;;  %4967 = vmatmul.msk.f32.vlgmr.msra.gmra.mxu3 %vm221_vm0, %v321_v46 }
  0x1a   :  { %135 = vrot.lane.b32.xlu0 %v5527_v9, %s5413_s9  ;;  %139 = vrot.lane.b32.xlu2 %v5537_v11, %s5413_s9  ;;  %246 = vst.msk [vmem:[#allocation2 + $0xc0] sm:$0xff] %vm221_vm0, %v8028_v32  ;;  %v322_v49 = vld [vmem:[#allocation2 + $0x70] sm:$0xff] }
  0x1b   :  { %137 = vrot.lane.b32.xlu1 %v5532_v10, %s5413_s9  ;;  %4941 = vmatmul.msk.f32.vlgmr.msra.gmra.mxu2 %vm221_vm0, %v347_v47  ;;  %247 = vst.msk [vmem:[#allocation2 + $0xc8] sm:$0xff] %vm221_vm0, %v8028_v32  ;;  %v348_v50 = vld [vmem:[#allocation2 + $0x71] sm:$0xff] }
  0x1c   :  { %248 = vst.msk [vmem:[#allocation2 + $0xd0] sm:$0xff] %vm221_vm0, %v8028_v32 }
  0x21   :  { %4968 = vmatmul.msk.f32.gmra.mxu3 %vm221_vm0, %v322_v49 }
  0x22   :  { %101 = vrot.lane.b32.xlu0 %v5548_v12, %s5413_s9  ;;  %105 = vrot.lane.b32.xlu2 %v5558_v14, %s5413_s9 }
  0x23   :  { %103 = vrot.lane.b32.xlu1 %v5553_v13, %s5413_s9  ;;  %4942 = vmatmul.msk.f32.gmra.mxu2 %vm221_vm0, %v348_v50 }
  0x2a   :  { %107 = vrot.lane.b32.xlu0 %v5569_v15, %s5413_s9  ;;  %143 = vrot.lane.b32.xlu2 %v5579_v17, %s5413_s9 }
  0x2b   :  { %141 = vrot.lane.b32.xlu1 %v5574_v16, %s5413_s9 }
  0x32   :  { %109 = vrot.lane.b32.xlu0 %v5590_v18, %s5413_s9  ;;  %145 = vrot.lane.b32.xlu2 %v5600_v20, %s5413_s9 }
  0x33   :  { %111 = vrot.lane.b32.xlu1 %v5595_v19, %s5413_s9 }
  0x3a   :  { %147 = vrot.lane.b32.xlu0 %v5611_v21, %s5413_s9  ;;  %115 = vrot.lane.b32.xlu2 %v5621_v23, %s5413_s9 }
  0x3b   :  { %113 = vrot.lane.b32.xlu1 %v5616_v22, %s5413_s9 }
  0x42   :  { %149 = vrot.lane.b32.xlu0 %v5632_v24, %s5413_s9  ;;  %153 = vrot.lane.b32.xlu2 %v5642_v26, %s5413_s9 }
  0x43   :  { %151 = vrot.lane.b32.xlu1 %v5637_v25, %s5413_s9 }
  0x4a   :  { %155 = vrot.lane.b32.xlu0 %v5653_v27, %s5413_s9  ;;  %119 = vrot.lane.b32.xlu2 %v5663_v29, %s5413_s9 }
  0x4b   :  { %117 = vrot.lane.b32.xlu1 %v5658_v28, %s5413_s9 }
  0x52   :  { %121 = vrot.lane.b32.xlu0 %v5674_v30, %s5413_s9 }
  0x53   :  { %123 = vrot.lane.b32.xlu1 %v5679_v31, %s5413_s9 }
  0x5c   :  { %v130_v40 = vpop.permute.xlu2 %129 }
  0x5d   :  { %v207_v43 = vmax.f32 %v5478_v2, %v130_v40 }
  0x64   :  { %v132_v44 = vpop.permute.xlu2 %131 }
  0x65   :  { %v208_v45 = vmax.f32 %v5495_v5, %v132_v44 }
  0x67   :  { %v269_v48 = vmax.f32 %v207_v43, %v208_v45 }
  0x69   :  { %270 = vst.msk [vmem:[#allocation2 + $0x84] sm:$0xff] %vm221_vm0, %v269_v48 }
  0x6c   :  { %v134_v51 = vpop.permute.xlu2 %133 }
  0x6d   :  { %v209_v37 = vmax.f32 %v5516_v8, %v134_v51 }
  0x74   :  { %v126_v52 = vpop.permute.xlu0 %125  ;;  %v140_v54 = vpop.permute.xlu2 %139 }
  0x75   :  { %v94_v53 = vpop.permute.xlu1 %93  ;;  %v205_v57 = vmax.f32 %v5464_v0, %v126_v52 }
  0x76   :  { %v189_v58 = vmax.f32 %v5469_v1, %v94_v53 }
  0x7c   :  { %v128_v55 = vpop.permute.xlu0 %127  ;;  %v106_v34 = vpop.permute.xlu2 %105 }
  0x7d   :  { %v96_v56 = vpop.permute.xlu1 %95  ;;  %v206_v59 = vmax.f32 %v5485_v3, %v128_v55 }
  0x7e   :  { %v190_v60 = vmax.f32 %v5490_v4, %v96_v56 }
  0x7f   :  { %v267_v61 = vmax.f32 %v205_v57, %v206_v59 }
  0x80   :  { %v251_v62 = vmax.f32 %v189_v58, %v190_v60 }
  0x81   :  { %268 = vst.msk [vmem:[#allocation2 + $0x7a] sm:$0xff] %vm221_vm0, %v267_v61 }
  0x82   :  { %252 = vst.msk [vmem:[#allocation2 + $0x16] sm:$0xff] %vm221_vm0, %v251_v62 }
  0x84   :  { %v98_v63 = vpop.permute.xlu0 %97  ;;  %v144_v42 = vpop.permute.xlu2 %143 }
  0x85   :  { %v100_v2 = vpop.permute.xlu1 %99  ;;  %v191_v5 = vmax.f32 %v5506_v6, %v98_v63  ;;  %v212_v6 = vmax.f32 %v5537_v11, %v140_v54  ;;  %v195_v54 = vmax.f32 %v5558_v14, %v106_v34 }
  0x86   :  { %v192_v33 = vmax.f32 %v5511_v7, %v100_v2 }
  0x88   :  { %v253_v0 = vmax.f32 %v191_v5, %v192_v33  ;;  %v349_v35 = vld [vmem:[#allocation2 + $0x79] sm:$0xff]  ;;  %v350_v44 = vld [vmem:[#allocation2 + $0x81] sm:$0xff] }
  0x89   :  { %v323_v1 = vld [vmem:[#allocation2 + $0x78] sm:$0xff]  ;;  %4943 = vmatmul.msk.f32.gmra.mxu2 %vm221_vm0, %v349_v35  ;;  %v310_v4 = vld [vmem:[#allocation2 + $0x10] sm:$0xff]  ;;  %v324_v45 = vld [vmem:[#allocation2 + $0x80] sm:$0xff] }
  0x8a   :  { %254 = vst.msk [vmem:[#allocation2 + $0x20] sm:$0xff] %vm221_vm0, %v253_v0  ;;  %v336_v3 = vld [vmem:[#allocation2 + $0x11] sm:$0xff]  ;;  %4969 = vmatmul.msk.f32.gmra.mxu3 %vm221_vm0, %v323_v1  ;;  %4956 = vmatmul.msk.f32.gmra.mxu1 %vm221_vm0, %v310_v4 }
  0x8b   :  { %4930 = vmatmul.msk.f32.gmra.mxu0 %vm221_vm0, %v336_v3  ;;  %v311_v46 = vld [vmem:[#allocation2 + $0x18] sm:$0xff] }
  0x8c   :  { %v136_v36 = vpop.permute.xlu0 %135  ;;  %v146_v52 = vpop.permute.xlu2 %145 }
  0x8d   :  { %v138_v7 = vpop.permute.xlu1 %137  ;;  %v210_v38 = vmax.f32 %v5527_v9, %v136_v36 }
  0x8e   :  { %v211_v39 = vmax.f32 %v5532_v10, %v138_v7 }
  0x8f   :  { %v271_v40 = vmax.f32 %v209_v37, %v210_v38 }
  0x90   :  { %v273_v41 = vmax.f32 %v211_v39, %v212_v6 }
  0x91   :  { %v337_v43 = vld [vmem:[#allocation2 + $0x19] sm:$0xff]  ;;  %272 = vst.msk [vmem:[#allocation2 + $0x8e] sm:$0xff] %vm221_vm0, %v271_v40  ;;  %4944 = vmatmul.msk.f32.gmra.mxu2 %vm221_vm0, %v350_v44  ;;  %v338_v50 = vld [vmem:[#allocation2 + $0x21] sm:$0xff] }
  0x92   :  { %4970 = vmatmul.msk.f32.gmra.mxu3 %vm221_vm0, %v324_v45  ;;  %274 = vst.msk [vmem:[#allocation2 + $0x98] sm:$0xff] %vm221_vm0, %v273_v41  ;;  %4957 = vmatmul.msk.f32.gmra.mxu1 %vm221_vm0, %v311_v46  ;;  %v312_v51 = vld [vmem:[#allocation2 + $0x20] sm:$0xff] }
  0x93   :  { %4931 = vmatmul.msk.f32.gmra.mxu0 %vm221_vm0, %v337_v43 }
  0x94   :  { %v102_v8 = vpop.permute.xlu0 %101  ;;  %v116_v14 = vpop.permute.xlu2 %115 }
  0x95   :  { %v104_v9 = vpop.permute.xlu1 %103  ;;  %v193_v10 = vmax.f32 %v5548_v12, %v102_v8  ;;  %v214_v12 = vmax.f32 %v5579_v17, %v144_v42  ;;  %v200_v35 = vmax.f32 %v5621_v23, %v116_v14  ;;  %v5114_v8 = vld [vmem:[%s8020_s2 + $0x1c] sm:$0xf]  ;;  %v924_v14 = vld [vmem:[#allocation2 + $0xa] sm:$0xff] }
  0x96   :  { %v194_v11 = vmax.f32 %v5553_v13, %v104_v9  ;;  %v5060_v9 = vld [vmem:[%s8020_s2 + $0x14] sm:$0xf]  ;;  %5115 = vmatpush.msk.msra.mxu3 %vm436_vm1, %v5114_v8 }
  0x97   :  { %5061 = vmatpush.msk.msrb.mxu1 %vm436_vm1, %v5060_v9 }
  0x98   :  { %v255_v47 = vmax.f32 %v193_v10, %v194_v11  ;;  %v351_v48 = vld [vmem:[#allocation2 + $0x89] sm:$0xff] }
  0x99   :  { %v325_v49 = vld [vmem:[#allocation2 + $0x88] sm:$0xff]  ;;  %4945 = vmatmul.msk.f32.gmra.mxu2 %vm221_vm0, %v351_v48  ;;  %v326_v59 = vld [vmem:[#allocation2 + $0x90] sm:$0xff]  ;;  %v353_v5 = vld [vmem:[#allocation2 + $0x99] sm:$0xff] }
  0x9a   :  { %256 = vst.msk [vmem:[#allocation2 + $0x2a] sm:$0xff] %vm221_vm0, %v255_v47  ;;  %4971 = vmatmul.msk.f32.gmra.mxu3 %vm221_vm0, %v325_v49  ;;  %4958 = vmatmul.msk.f32.gmra.mxu1 %vm221_vm0, %v312_v51  ;;  %v352_v61 = vld [vmem:[#allocation2 + $0x91] sm:$0xff] }
  0x9b   :  { %4932 = vmatmul.msk.f32.gmra.mxu0 %vm221_vm0, %v338_v50  ;;  %v327_v0 = vld [vmem:[#allocation2 + $0x98] sm:$0xff] }
  0x9c   :  { %v108_v53 = vpop.permute.xlu0 %107  ;;  %v154_v6 = vpop.permute.xlu2 %153 }
  0x9d   :  { %v142_v13 = vpop.permute.xlu1 %141  ;;  %v196_v55 = vmax.f32 %v5569_v15, %v108_v53  ;;  %v219_v47 = vmax.f32 %v5642_v26, %v154_v6  ;;  %v5141_v26 = vld [vmem:[%s8020_s2 + $0x20] sm:$0xf]  ;;  %v5901_v6 = vpop.f32.mrf.mxu3 }
  0x9e   :  { %v213_v56 = vmax.f32 %v5574_v16, %v142_v13  ;;  %5142 = vmatpush.msk.msra.mxu0 %vm436_vm1, %v5141_v26 }
  0x9f   :  { %v257_v57 = vmax.f32 %v195_v54, %v196_v55 }
  0xa0   :  { %v275_v58 = vmax.f32 %v213_v56, %v214_v12 }
  0xa1   :  { %v339_v60 = vld [vmem:[#allocation2 + $0x29] sm:$0xff]  ;;  %258 = vst.msk [vmem:[#allocation2 + $0x34] sm:$0xff] %vm221_vm0, %v257_v57  ;;  %4946 = vmatmul.msk.f32.gmra.mxu2 %vm221_vm0, %v352_v61 }
  0xa2   :  { %v313_v62 = vld [vmem:[#allocation2 + $0x28] sm:$0xff]  ;;  %4972 = vmatmul.msk.f32.gmra.mxu3 %vm221_vm0, %v326_v59  ;;  %276 = vst.msk [vmem:[#allocation2 + $0xa2] sm:$0xff] %vm221_vm0, %v275_v58 }
  0xa3   :  { %4933 = vmatmul.msk.f32.gmra.mxu0 %vm221_vm0, %v339_v60  ;;  %4959 = vmatmul.msk.f32.gmra.mxu1 %vm221_vm0, %v313_v62 }
  0xa4   :  { %v110_v15 = vpop.permute.xlu0 %109  ;;  %v120_v44 = vpop.permute.xlu2 %119 }
  0xa5   :  { %v112_v16 = vpop.permute.xlu1 %111  ;;  %v197_v17 = vmax.f32 %v5590_v18, %v110_v15 }
  0xa6   :  { %v198_v63 = vmax.f32 %v5595_v19, %v112_v16  ;;  %v215_v19 = vmax.f32 %v5600_v20, %v146_v52 }
  0xa8   :  { %v259_v2 = vmax.f32 %v197_v17, %v198_v63  ;;  %v340_v33 = vld [vmem:[#allocation2 + $0x31] sm:$0xff] }
  0xa9   :  { %v314_v34 = vld [vmem:[#allocation2 + $0x30] sm:$0xff]  ;;  %4947 = vmatmul.msk.f32.gmra.mxu2 %vm221_vm0, %v353_v5  ;;  %v354_v37 = vld [vmem:[#allocation2 + $0xa1] sm:$0xff] }
  0xaa   :  { %260 = vst.msk [vmem:[#allocation2 + $0x3e] sm:$0xff] %vm221_vm0, %v259_v2  ;;  %4973 = vmatmul.msk.f32.gmra.mxu3 %vm221_vm0, %v327_v0  ;;  %v328_v40 = vld [vmem:[#allocation2 + $0xa0] sm:$0xff]  ;;  %v1146_v17 = vld [vmem:[#allocation2 + $0xb] sm:$0xff] }
  0xab   :  { %4934 = vmatmul.msk.f32.gmra.mxu0 %vm221_vm0, %v340_v33  ;;  %4960 = vmatmul.msk.f32.gmra.mxu1 %vm221_vm0, %v314_v34  ;;  %v1368_v63 = vld [vmem:[#allocation2 + $0xc] sm:$0xff]  ;;  %v926_v5 = vld [vmem:[#allocation2 + $0x1a] sm:$0xff]  ;;  %v927_v0 = vld [vmem:[#allocation2 + $0x22] sm:$0xff] }
  0xac   :  { %v148_v18 = vpop.permute.xlu0 %147  ;;  %v925_v2 = vld [vmem:[#allocation2 + $0x12] sm:$0xff] }
  0xad   :  { %v114_v1 = vpop.permute.xlu1 %113  ;;  %v216_v3 = vmax.f32 %v5611_v21, %v148_v18  ;;  %v1147_v33 = vld [vmem:[#allocation2 + $0x13] sm:$0xff]  ;;  %v5890_v18 = vld [vmem:[#allocation2 + $0x1c] sm:$0xff] }
  0xae   :  { %v199_v4 = vmax.f32 %v5616_v22, %v114_v1  ;;  %v5883_v34 = vld [vmem:[#allocation2 + $0x14] sm:$0xff]  ;;  %v5895_v1 = vpop.f32.mrf.mxu0 }
  0xaf   :  { %v277_v36 = vmax.f32 %v215_v19, %v216_v3  ;;  %v5897_v19 = vpop.f32.mrf.mxu1  ;;  %v928_v3 = vld [vmem:[#allocation2 + $0x2a] sm:$0xff] }
  0xb0   :  { %v261_v7 = vmax.f32 %v199_v4, %v200_v35  ;;  %v1148_v35 = vld [vmem:[#allocation2 + $0x1b] sm:$0xff]  ;;  %v5899_v4 = vpop.f32.mrf.mxu2 }
  0xb1   :  { %v341_v38 = vld [vmem:[#allocation2 + $0x39] sm:$0xff]  ;;  %278 = vst.msk [vmem:[#allocation2 + $0xac] sm:$0xff] %vm221_vm0, %v277_v36  ;;  %4948 = vmatmul.msk.f32.gmra.mxu2 %vm221_vm0, %v354_v37  ;;  %v1149_v36 = vld [vmem:[#allocation2 + $0x23] sm:$0xff] }
  0xb2   :  { %v315_v39 = vld [vmem:[#allocation2 + $0x38] sm:$0xff]  ;;  %4974 = vmatmul.msk.f32.gmra.mxu3 %vm221_vm0, %v328_v40  ;;  %262 = vst.msk [vmem:[#allocation2 + $0x48] sm:$0xff] %vm221_vm0, %v261_v7  ;;  %v316_v46 = vld [vmem:[#allocation2 + $0x40] sm:$0xff]  ;;  %v1150_v40 = vld [vmem:[#allocation2 + $0x2b] sm:$0xff] }
  0xb3   :  { %4935 = vmatmul.msk.f32.gmra.mxu0 %vm221_vm0, %v341_v38  ;;  %4961 = vmatmul.msk.f32.gmra.mxu1 %vm221_vm0, %v315_v39  ;;  %v5905_v7 = vld [vmem:[#allocation2 + $0x24] sm:$0xff]  ;;  %v929_v39 = vld [vmem:[#allocation2 + $0x32] sm:$0xff] }
  0xb4   :  { %v150_v20 = vpop.permute.xlu0 %149 }
  0xb5   :  { %v152_v21 = vpop.permute.xlu1 %151  ;;  %v217_v22 = vmax.f32 %v5632_v24, %v150_v20  ;;  %v5087_v24 = vld [vmem:[%s8020_s2 + $0x18] sm:$0xf]  ;;  %v5916_v20 = vld [vmem:[#allocation2 + $0x2c] sm:$0xff] }
  0xb6   :  { %v218_v23 = vmax.f32 %v5637_v25, %v152_v21  ;;  %v202_v25 = vmax.f32 %v5663_v29, %v120_v44  ;;  %5088 = vmatpush.msk.msra.mxu2 %vm436_vm1, %v5087_v24  ;;  %v5910_v37 = vpop.f32.mrf.mxu0  ;;  %v5931_v44 = vld [vmem:[#allocation2 + $0x34] sm:$0xff] }
  0xb7   :  { %v5912_v38 = vpop.f32.mrf.mxu1 }
  0xb8   :  { %v279_v41 = vmax.f32 %v217_v22, %v218_v23  ;;  %v355_v42 = vld [vmem:[#allocation2 + $0xa9] sm:$0xff]  ;;  %v5921_v21 = vpop.f32.mrf.mxu2  ;;  %v5923_v22 = vpop.f32.mrf.mxu3 }
  0xb9   :  { %v329_v43 = vld [vmem:[#allocation2 + $0xa8] sm:$0xff]  ;;  %4949 = vmatmul.msk.f32.gmra.mxu2 %vm221_vm0, %v355_v42  ;;  %v930_v42 = vld [vmem:[#allocation2 + $0x3a] sm:$0xff] }
  0xba   :  { %280 = vst.msk [vmem:[#allocation2 + $0xb6] sm:$0xff] %vm221_vm0, %v279_v41  ;;  %v342_v45 = vld [vmem:[#allocation2 + $0x41] sm:$0xff]  ;;  %4975 = vmatmul.msk.f32.gmra.mxu3 %vm221_vm0, %v329_v43  ;;  %v343_v12 = vld [vmem:[#allocation2 + $0x49] sm:$0xff]  ;;  %v1151_v43 = vld [vmem:[#allocation2 + $0x33] sm:$0xff] }
  0xbb   :  { %4936 = vmatmul.msk.f32.gmra.mxu0 %vm221_vm0, %v342_v45  ;;  %4962 = vmatmul.msk.f32.gmra.mxu1 %vm221_vm0, %v316_v46  ;;  %v317_v53 = vld [vmem:[#allocation2 + $0x48] sm:$0xff] }
  0xbc   :  { %v156_v10 = vpop.permute.xlu0 %155  ;;  %v931_v9 = vld [vmem:[#allocation2 + $0x42] sm:$0xff] }
  0xbd   :  { %v118_v11 = vpop.permute.xlu1 %117  ;;  %v220_v29 = vmax.f32 %v5653_v27, %v156_v10  ;;  %v1152_v10 = vld [vmem:[#allocation2 + $0x3b] sm:$0xff] }
  0xbe   :  { %v201_v48 = vmax.f32 %v5658_v28, %v118_v11  ;;  %v5944_v11 = vld [vmem:[#allocation2 + $0x3c] sm:$0xff] }
  0xbf   :  { %v281_v49 = vmax.f32 %v219_v47, %v220_v29 }
  0xc0   :  { %v263_v50 = vmax.f32 %v201_v48, %v202_v25 }
  0xc1   :  { %v356_v51 = vld [vmem:[#allocation2 + $0xb1] sm:$0xff]  ;;  %282 = vst.msk [vmem:[#allocation2 + $0xc0] sm:$0xff] %vm221_vm0, %v281_v49 }
  0xc2   :  { %v330_v52 = vld [vmem:[#allocation2 + $0xb0] sm:$0xff]  ;;  %4950 = vmatmul.msk.f32.gmra.mxu2 %vm221_vm0, %v356_v51  ;;  %264 = vst.msk [vmem:[#allocation2 + $0x52] sm:$0xff] %vm221_vm0, %v263_v50  ;;  %v331_v57 = vld [vmem:[#allocation2 + $0xb8] sm:$0xff] }
  0xc3   :  { %4976 = vmatmul.msk.f32.gmra.mxu3 %vm221_vm0, %v330_v52  ;;  %4937 = vmatmul.msk.f32.gmra.mxu0 %vm221_vm0, %v343_v12  ;;  %v932_v51 = vld [vmem:[#allocation2 + $0x4a] sm:$0xff] }
  0xc4   :  { %4963 = vmatmul.msk.f32.gmra.mxu1 %vm221_vm0, %v317_v53  ;;  %v122_v27 = vpop.permute.xlu0 %121  ;;  %v1153_v52 = vld [vmem:[#allocation2 + $0x43] sm:$0xff] }
  0xc5   :  { %v124_v28 = vpop.permute.xlu1 %123  ;;  %v203_v13 = vmax.f32 %v5674_v30, %v122_v27  ;;  %v5957_v12 = vld [vmem:[#allocation2 + $0x44] sm:$0xff] }
  0xc6   :  { %v204_v54 = vmax.f32 %v5679_v31, %v124_v28  ;;  %v702_v31 = vld [vmem:[#allocation2 + $0x2] sm:$0xff] }
  0xc8   :  { %v265_v55 = vmax.f32 %v203_v13, %v204_v54  ;;  %v357_v56 = vld [vmem:[#allocation2 + $0xb9] sm:$0xff]  ;;  %v358_v60 = vld [vmem:[#allocation2 + $0xc1] sm:$0xff] }
  0xc9   :  { %v344_v58 = vld [vmem:[#allocation2 + $0x51] sm:$0xff]  ;;  %v332_v62 = vld [vmem:[#allocation2 + $0xc0] sm:$0xff] }
  0xca   :  { %266 = vst.msk [vmem:[#allocation2 + $0x5c] sm:$0xff] %vm221_vm0, %v265_v55  ;;  %4951 = vmatmul.msk.f32.gmra.mxu2 %vm221_vm0, %v357_v56  ;;  %v318_v59 = vld [vmem:[#allocation2 + $0x50] sm:$0xff] }
  0xcb   :  { %4977 = vmatmul.msk.f32.gmra.mxu3 %vm221_vm0, %v331_v57  ;;  %4938 = vmatmul.msk.f32.gmra.mxu0 %vm221_vm0, %v344_v58  ;;  %v933_v54 = vld [vmem:[#allocation2 + $0x52] sm:$0xff] }
  0xcc   :  { %4964 = vmatmul.msk.f32.gmra.mxu1 %vm221_vm0, %v318_v59  ;;  %v1154_v55 = vld [vmem:[#allocation2 + $0x4b] sm:$0xff] }
  0xcd   :  { %v5970_v56 = vld [vmem:[#allocation2 + $0x4c] sm:$0xff] }
  0xd1   :  { %v345_v61 = vld [vmem:[#allocation2 + $0x59] sm:$0xff]  ;;  %v346_v15 = vld [vmem:[#allocation2 + $0x61] sm:$0xff] }
  0xd2   :  { %v319_v30 = vld [vmem:[#allocation2 + $0x58] sm:$0xff]  ;;  %4952 = vmatmul.msk.f32.gmra.mxu2 %vm221_vm0, %v358_v60  ;;  %v320_v16 = vld [vmem:[#allocation2 + $0x60] sm:$0xff] }
  0xd3   :  { %4978 = vmatmul.msk.f32.gmra.mxu3 %vm221_vm0, %v332_v62  ;;  %4939 = vmatmul.msk.f32.gmra.mxu0 %vm221_vm0, %v345_v61  ;;  %v1155_v62 = vld [vmem:[#allocation2 + $0x53] sm:$0xff] }
  0xd4   :  { %4965 = vmatmul.msk.f32.gmra.mxu1 %vm221_vm0, %v319_v30  ;;  %v934_v30 = vld [vmem:[#allocation2 + $0x5a] sm:$0xff] }
  0xda   :  { %4981 = vmatmul.msk.f32.vlgmr.msrb.gmra.mxu2 %vm221_vm0, %v702_v31  ;;  %v5983_v31 = vld [vmem:[#allocation2 + $0x54] sm:$0xff] }
  0xdb   :  { %5008 = vmatmul.msk.f32.vlgmr.msrb.gmra.mxu3 %vm221_vm0, %v924_v14  ;;  %4940 = vmatmul.msk.f32.gmra.mxu0 %vm221_vm0, %v346_v15 }
  0xdc   :  { %4966 = vmatmul.msk.f32.gmra.mxu1 %vm221_vm0, %v320_v16 }
  0xe2   :  { %4982 = vmatmul.msk.f32.gmra.mxu2 %vm221_vm0, %v924_v14 }
  0xe3   :  { %5009 = vmatmul.msk.f32.gmra.mxu3 %vm221_vm0, %v925_v2  ;;  %5035 = vmatmul.msk.f32.vlgmr.msrb.gmra.mxu0 %vm221_vm0, %v1146_v17 }
  0xe4   :  { %5062 = vmatmul.msk.f32.vlgmr.msrb.gmra.mxu1 %vm221_vm0, %v1368_v63 }
  0xea   :  { %4983 = vmatmul.msk.f32.gmra.mxu2 %vm221_vm0, %v925_v2  ;;  %v935_v2 = vld [vmem:[#allocation2 + $0x62] sm:$0xff] }
  0xeb   :  { %5010 = vmatmul.msk.f32.gmra.mxu3 %vm221_vm0, %v926_v5  ;;  %5036 = vmatmul.msk.f32.gmra.mxu0 %vm221_vm0, %v1147_v33  ;;  %v5996_v33 = vld [vmem:[#allocation2 + $0x5c] sm:$0xff] }
  0xec   :  { %5063 = vmatmul.msk.f32.gmra.mxu1 %vm221_vm0, %v5883_v34 }
  0xf2   :  { %4984 = vmatmul.msk.f32.gmra.mxu2 %vm221_vm0, %v926_v5  ;;  %v1156_v5 = vld [vmem:[#allocation2 + $0x5b] sm:$0xff] }
  0xf3   :  { %5011 = vmatmul.msk.f32.gmra.mxu3 %vm221_vm0, %v927_v0  ;;  %5037 = vmatmul.msk.f32.gmra.mxu0 %vm221_vm0, %v1148_v35 }
  0xf4   :  { %5064 = vmatmul.msk.f32.gmra.mxu1 %vm221_vm0, %v5890_v18 }
  0xfa   :  { %4985 = vmatmul.msk.f32.gmra.mxu2 %vm221_vm0, %v927_v0 }
  0xfb   :  { %5012 = vmatmul.msk.f32.gmra.mxu3 %vm221_vm0, %v928_v3  ;;  %5038 = vmatmul.msk.f32.gmra.mxu0 %vm221_vm0, %v1149_v36  ;;  %v936_v36 = vld [vmem:[#allocation2 + $0x6a] sm:$0xff] }
  0xfc   :  { %5065 = vmatmul.msk.f32.gmra.mxu1 %vm221_vm0, %v5905_v7 }
 0x102   :  { %4986 = vmatmul.msk.f32.gmra.mxu2 %vm221_vm0, %v928_v3 }
 0x103   :  { %5013 = vmatmul.msk.f32.gmra.mxu3 %vm221_vm0, %v929_v39  ;;  %5039 = vmatmul.msk.f32.gmra.mxu0 %vm221_vm0, %v1150_v40 }
 0x104   :  { %5066 = vmatmul.msk.f32.gmra.mxu1 %vm221_vm0, %v5916_v20 }
 0x107   :  { %v5927_v41 = vpop.f32.mrf.mxu1 }
 0x108   :  { %v5925_v23 = vpop.f32.mrf.mxu0 }
 0x10a   :  { %4987 = vmatmul.msk.f32.gmra.mxu2 %vm221_vm0, %v929_v39 }
 0x10b   :  { %5014 = vmatmul.msk.f32.gmra.mxu3 %vm221_vm0, %v930_v42  ;;  %5040 = vmatmul.msk.f32.gmra.mxu0 %vm221_vm0, %v1151_v43  ;;  %v1157_v43 = vld [vmem:[#allocation2 + $0x63] sm:$0xff] }
 0x10c   :  { %5067 = vmatmul.msk.f32.gmra.mxu1 %vm221_vm0, %v5931_v44  ;;  %v502_v45 = vpop.f32.mrf.mxu2 }
 0x10d   :  { %v672_v46 = vpop.f32.mrf.mxu3 }
 0x10e   :  { %v5936_v24 = vadd.f32 %v672_v46, %v502_v45 }
 0x10f   :  { %v5940_v8 = vpop.f32.mrf.mxu1 }
 0x110   :  { %v5938_v25 = vpop.f32.mrf.mxu0 }
 0x112   :  { %4988 = vmatmul.msk.f32.gmra.mxu2 %vm221_vm0, %v930_v42  ;;  %v6007_v42 = vld [vmem:[#allocation2 + $0x64] sm:$0xff] }
 0x113   :  { %5015 = vmatmul.msk.f32.gmra.mxu3 %vm221_vm0, %v931_v9  ;;  %5041 = vmatmul.msk.f32.gmra.mxu0 %vm221_vm0, %v1152_v10  ;;  %v937_v10 = vld [vmem:[#allocation2 + $0x72] sm:$0xff] }
 0x114   :  { %5068 = vmatmul.msk.f32.gmra.mxu1 %vm221_vm0, %v5944_v11  ;;  %v505_v47 = vpop.f32.mrf.mxu2 }
 0x115   :  { %v675_v29 = vpop.f32.mrf.mxu3 }
 0x116   :  { %v5949_v48 = vadd.f32 %v675_v29, %v505_v47 }
 0x117   :  { %v5953_v50 = vpop.f32.mrf.mxu1 }
 0x118   :  { %v5951_v49 = vpop.f32.mrf.mxu0 }
 0x11a   :  { %4989 = vmatmul.msk.f32.gmra.mxu2 %vm221_vm0, %v931_v9 }
 0x11b   :  { %5016 = vmatmul.msk.f32.gmra.mxu3 %vm221_vm0, %v932_v51  ;;  %5042 = vmatmul.msk.f32.gmra.mxu0 %vm221_vm0, %v1153_v52  ;;  %v6020_v52 = vld [vmem:[#allocation2 + $0x6c] sm:$0xff] }
 0x11c   :  { %5069 = vmatmul.msk.f32.gmra.mxu1 %vm221_vm0, %v5957_v12  ;;  %v508_v53 = vpop.f32.mrf.mxu2 }
 0x11d   :  { %v678_v26 = vpop.f32.mrf.mxu3 }
 0x11e   :  { %v5962_v27 = vadd.f32 %v678_v26, %v508_v53 }
 0x120   :  { %v5964_v28 = vpop.f32.mrf.mxu0  ;;  %v5966_v13 = vpop.f32.mrf.mxu1 }
 0x122   :  { %4990 = vmatmul.msk.f32.gmra.mxu2 %vm221_vm0, %v932_v51  ;;  %v1158_v51 = vld [vmem:[#allocation2 + $0x6b] sm:$0xff] }
 0x123   :  { %5017 = vmatmul.msk.f32.gmra.mxu3 %vm221_vm0, %v933_v54  ;;  %5043 = vmatmul.msk.f32.gmra.mxu0 %vm221_vm0, %v1154_v55 }
 0x124   :  { %5070 = vmatmul.msk.f32.gmra.mxu1 %vm221_vm0, %v5970_v56  ;;  %v511_v57 = vpop.f32.mrf.mxu2 }
 0x125   :  { %v681_v58 = vpop.f32.mrf.mxu3 }
 0x126   :  { %v5975_v59 = vadd.f32 %v681_v58, %v511_v57  ;;  %v938_v58 = vld [vmem:[#allocation2 + $0x7a] sm:$0xff] }
 0x128   :  { %v5977_v60 = vpop.f32.mrf.mxu0  ;;  %v5979_v61 = vpop.f32.mrf.mxu1 }
 0x12a   :  { %4991 = vmatmul.msk.f32.gmra.mxu2 %vm221_vm0, %v933_v54 }
 0x12b   :  { %5018 = vmatmul.msk.f32.gmra.mxu3 %vm221_vm0, %v934_v30  ;;  %5044 = vmatmul.msk.f32.gmra.mxu0 %vm221_vm0, %v1155_v62  ;;  %v6035_v62 = vld [vmem:[#allocation2 + $0x74] sm:$0xff] }
 0x12c   :  { %5071 = vmatmul.msk.f32.gmra.mxu1 %vm221_vm0, %v5983_v31  ;;  %v514_v14 = vpop.f32.mrf.mxu2 }
 0x12d   :  { %v684_v15 = vpop.f32.mrf.mxu3 }
 0x12e   :  { %v5988_v16 = vadd.f32 %v684_v15, %v514_v14 }
 0x130   :  { %v5990_v17 = vpop.f32.mrf.mxu0  ;;  %v5992_v63 = vpop.f32.mrf.mxu1 }
 0x132   :  { %4992 = vmatmul.msk.f32.gmra.mxu2 %vm221_vm0, %v934_v30  ;;  %v1159_v30 = vld [vmem:[#allocation2 + $0x73] sm:$0xff] }
 0x133   :  { %5019 = vmatmul.msk.f32.gmra.mxu3 %vm221_vm0, %v935_v2  ;;  %5045 = vmatmul.msk.f32.gmra.mxu0 %vm221_vm0, %v1156_v5 }
 0x134   :  { %5072 = vmatmul.msk.f32.gmra.mxu1 %vm221_vm0, %v5996_v33  ;;  %v517_v0 = vpop.f32.mrf.mxu2 }
 0x135   :  { %v687_v35 = vpop.f32.mrf.mxu3 }
 0x136   :  { %v6001_v3 = vadd.f32 %v687_v35, %v517_v0  ;;  %v939_v35 = vld [vmem:[#allocation2 + $0x82] sm:$0xff] }
 0x138   :  { %v6003_v39 = vpop.f32.mrf.mxu0  ;;  %v6005_v40 = vpop.f32.mrf.mxu1 }
 0x13a   :  { %4993 = vmatmul.msk.f32.gmra.mxu2 %vm221_vm0, %v935_v2 }
 0x13b   :  { %5020 = vmatmul.msk.f32.gmra.mxu3 %vm221_vm0, %v936_v36  ;;  %5046 = vmatmul.msk.f32.gmra.mxu0 %vm221_vm0, %v1157_v43  ;;  %v6048_v43 = vld [vmem:[#allocation2 + $0x7c] sm:$0xff] }
 0x13c   :  { %5073 = vmatmul.msk.f32.gmra.mxu1 %vm221_vm0, %v6007_v42  ;;  %v520_v45 = vpop.f32.mrf.mxu2 }
 0x13d   :  { %v690_v46 = vpop.f32.mrf.mxu3 }
 0x13e   :  { %v6014_v9 = vadd.f32 %v690_v46, %v520_v45 }
 0x140   :  { %v6016_v47 = vpop.f32.mrf.mxu0 }
 0x141   :  { %v6018_v29 = vpop.f32.mrf.mxu1 }
 0x142   :  { %4994 = vmatmul.msk.f32.gmra.mxu2 %vm221_vm0, %v936_v36  ;;  %v1160_v36 = vld [vmem:[#allocation2 + $0x7b] sm:$0xff] }
 0x143   :  { %5021 = vmatmul.msk.f32.gmra.mxu3 %vm221_vm0, %v937_v10  ;;  %5047 = vmatmul.msk.f32.gmra.mxu0 %vm221_vm0, %v1158_v51 }
 0x144   :  { %5074 = vmatmul.msk.f32.gmra.mxu1 %vm221_vm0, %v6020_v52 }
 0x145   :  { %v523_v53 = vpop.f32.mrf.mxu2 }
 0x146   :  { %v693_v26 = vpop.f32.mrf.mxu3 }
 0x147   :  { %v6027_v54 = vadd.f32 %v693_v26, %v523_v53  ;;  %v940_v26 = vld [vmem:[#allocation2 + $0x8a] sm:$0xff] }
 0x148   :  { %v6029_v55 = vpop.f32.mrf.mxu0 }
 0x149   :  { %8113 = vst [vmem:[#allocation4_spill] sm:$0xff] %v6027_v54  ;;  %v6031_v57 = vpop.f32.mrf.mxu1  ;;  %v6070_v54 = vld [vmem:[#allocation2 + $0x8c] sm:$0xff] }
 0x14a   :  { %4995 = vmatmul.msk.f32.gmra.mxu2 %vm221_vm0, %v937_v10 }
 0x14b   :  { %5022 = vmatmul.msk.f32.gmra.mxu3 %vm221_vm0, %v938_v58  ;;  %5048 = vmatmul.msk.f32.gmra.mxu0 %vm221_vm0, %v1159_v30  ;;  %v6061_v30 = vld [vmem:[#allocation2 + $0x84] sm:$0xff] }
 0x14c   :  { %5075 = vmatmul.msk.f32.gmra.mxu1 %vm221_vm0, %v6035_v62 }
 0x14d   :  { %v526_v14 = vpop.f32.mrf.mxu2 }
 0x14e   :  { %v696_v15 = vpop.f32.mrf.mxu3 }
 0x14f   :  { %v6040_v2 = vadd.f32 %v696_v15, %v526_v14  ;;  %v628_v14 = vadd.f32 %v5897_v19, %v5895_v1  ;;  %v631_v1 = vadd.f32 %v5912_v38, %v5910_v37  ;;  %v634_v37 = vadd.f32 %v5927_v41, %v5925_v23 }
 0x150   :  { %v6042_v5 = vpop.f32.mrf.mxu0  ;;  %v637_v23 = vadd.f32 %v5940_v8, %v5938_v25  ;;  %v640_v25 = vadd.f32 %v5953_v50, %v5951_v49  ;;  %v643_v49 = vadd.f32 %v5966_v13, %v5964_v28  ;;  %v646_v28 = vadd.f32 %v5979_v61, %v5977_v60 }
 0x151   :  { %8114 = vst [vmem:[#allocation5_spill] sm:$0xff] %v6040_v2  ;;  %v6044_v0 = vpop.f32.mrf.mxu1  ;;  %v1162_v2 = vld [vmem:[#allocation2 + $0x8b] sm:$0xff]  ;;  %v649_v60 = vadd.f32 %v5992_v63, %v5990_v17  ;;  %v652_v17 = vadd.f32 %v6005_v40, %v6003_v39  ;;  %v655_v39 = vadd.f32 %v6018_v29, %v6016_v47  ;;  %v2034_v47 = vld [vmem:[#allocation2 + $0x16] sm:$0xff]  ;;  %v658_v29 = vadd.f32 %v6031_v57, %v6029_v55  ;;  %v283_v57 = vld [vmem:[%s8021_s1] sm:$0xff] }
 0x152   :  { %4996 = vmatmul.msk.f32.gmra.mxu2 %vm221_vm0, %v938_v58  ;;  %v1161_v58 = vld [vmem:[#allocation2 + $0x83] sm:$0xff]  ;;  %v661_v55 = vadd.f32 %v6044_v0, %v6042_v5 }
 0x153   :  { %5023 = vmatmul.msk.f32.gmra.mxu3 %vm221_vm0, %v939_v35  ;;  %5049 = vmatmul.msk.f32.gmra.mxu0 %vm221_vm0, %v1160_v36  ;;  %v284_v40 = vld [vmem:[%s8021_s1 + $0x8] sm:$0xff]  ;;  %v287_v0 = vld [vmem:[%s8021_s1 + $0x20] sm:$0xff] }
 0x154   :  { %5076 = vmatmul.msk.f32.gmra.mxu1 %vm221_vm0, %v6048_v43 }
 0x155   :  { %v529_v45 = vpop.f32.mrf.mxu2 }
 0x156   :  { %v699_v46 = vpop.f32.mrf.mxu3 }
 0x157   :  { %v6053_v10 = vadd.f32 %v699_v46, %v529_v45 }
 0x158   :  { %v6055_v51 = vpop.f32.mrf.mxu0 }
 0x159   :  { %8115 = vst [vmem:[#allocation6_spill] sm:$0xff] %v6053_v10  ;;  %v6057_v53 = vpop.f32.mrf.mxu1  ;;  %v941_v10 = vld [vmem:[#allocation2 + $0x92] sm:$0xff] }
 0x15a   :  { %4997 = vmatmul.msk.f32.gmra.mxu2 %vm221_vm0, %v939_v35  ;;  %v664_v5 = vadd.f32 %v6057_v53, %v6055_v51  ;;  %v667_v51 = vadd.f32 %v5901_v6, %v5899_v4  ;;  %v286_v4 = vld [vmem:[%s8021_s1 + $0x18] sm:$0xff]  ;;  %v289_v6 = vld [vmem:[%s8021_s1 + $0x30] sm:$0xff] }
 0x15b   :  { %5024 = vmatmul.msk.f32.gmra.mxu3 %vm221_vm0, %v940_v26  ;;  %5050 = vmatmul.msk.f32.gmra.mxu0 %vm221_vm0, %v1161_v58 }
 0x15c   :  { %5077 = vmatmul.msk.f32.gmra.mxu1 %vm221_vm0, %v6061_v30 }
 0x15d   :  { %v824_v15 = vpop.f32.mrf.mxu2 }
 0x15e   :  { %v1046_v36 = vpop.f32.mrf.mxu3  ;;  %v899_v45 = vadd.f32 %v824_v15, %v628_v14 }
 0x160   :  { %v1121_v46 = vadd.f32 %v1046_v36, %v899_v45  ;;  %v1268_v32 = vpop.f32.mrf.mxu0  ;;  %v942_v45 = vld [vmem:[#allocation2 + $0x9a] sm:$0xff] }
 0x161   :  { %v1490_v58 = vpop.f32.mrf.mxu1 }
 0x162   :  { %v1343_v35 = vadd.f32 %v1268_v32, %v1121_v46  ;;  %4998 = vmatmul.msk.f32.gmra.mxu2 %vm221_vm0, %v940_v26  ;;  %v6085_v46 = vld [vmem:[#allocation2 + $0x94] sm:$0xff] }
 0x163   :  { %5025 = vmatmul.msk.f32.gmra.mxu3 %vm221_vm0, %v941_v10  ;;  %5051 = vmatmul.msk.f32.gmra.mxu0 %vm221_vm0, %v1162_v2  ;;  %v1163_v2 = vld [vmem:[#allocation2 + $0x93] sm:$0xff] }
 0x164   :  { %5078 = vmatmul.msk.f32.gmra.mxu1 %vm221_vm0, %v6070_v54  ;;  %v6077_v19 = vadd.f32 %v1490_v58, %v1343_v35 }
 0x165   :  { %v827_v14 = vpop.f32.mrf.mxu2 }
 0x166   :  { %v1049_v32 = vpop.f32.mrf.mxu3  ;;  %v900_v15 = vadd.f32 %v827_v14, %v631_v1 }
 0x168   :  { %v6079_v26 = vadd.f32 %v1049_v32, %v900_v15  ;;  %v6081_v36 = vpop.f32.mrf.mxu0  ;;  %v1164_v32 = vld [vmem:[#allocation2 + $0x9b] sm:$0xff] }
 0x169   :  { %v6098_v15 = vld [vmem:[#allocation2 + $0x9c] sm:$0xff] }
 0x16a   :  { %4999 = vmatmul.msk.f32.gmra.mxu2 %vm221_vm0, %v941_v10  ;;  %v943_v10 = vld [vmem:[#allocation2 + $0xa2] sm:$0xff] }
 0x16b   :  { %5026 = vmatmul.msk.f32.gmra.mxu3 %vm221_vm0, %v942_v45  ;;  %5052 = vmatmul.msk.f32.gmra.mxu0 %vm221_vm0, %v1163_v2 }
 0x16c   :  { %5079 = vmatmul.msk.f32.gmra.mxu1 %vm221_vm0, %v6085_v46 }
 0x16d   :  { %v830_v38 = vpop.f32.mrf.mxu2 }
 0x16e   :  { %v1052_v35 = vpop.f32.mrf.mxu3  ;;  %v901_v58 = vadd.f32 %v830_v38, %v634_v37 }
 0x170   :  { %v6092_v1 = vadd.f32 %v1052_v35, %v901_v58  ;;  %v6094_v14 = vpop.f32.mrf.mxu0  ;;  %v1165_v58 = vld [vmem:[#allocation2 + $0xa3] sm:$0xff] }
 0x172   :  { %5000 = vmatmul.msk.f32.gmra.mxu2 %vm221_vm0, %v942_v45  ;;  %v944_v45 = vld [vmem:[#allocation2 + $0xaa] sm:$0xff] }
 0x173   :  { %5027 = vmatmul.msk.f32.gmra.mxu3 %vm221_vm0, %v943_v10  ;;  %5053 = vmatmul.msk.f32.gmra.mxu0 %vm221_vm0, %v1164_v32  ;;  %v6111_v32 = vld [vmem:[#allocation2 + $0xa4] sm:$0xff] }
 0x174   :  { %5080 = vmatmul.msk.f32.gmra.mxu1 %vm221_vm0, %v6098_v15 }
 0x175   :  { %v833_v41 = vpop.f32.mrf.mxu2 }
 0x176   :  { %v1055_v2 = vpop.f32.mrf.mxu3  ;;  %v902_v37 = vadd.f32 %v833_v41, %v637_v23 }
 0x178   :  { %v6105_v38 = vadd.f32 %v1055_v2, %v902_v37  ;;  %v6107_v35 = vpop.f32.mrf.mxu0 }
 0x179   :  { %8116 = vst [vmem:[#allocation7_spill] sm:$0xff] %v6107_v35  ;;  %v1166_v35 = vld [vmem:[#allocation2 + $0xab] sm:$0xff] }
 0x17a   :  { %5001 = vmatmul.msk.f32.gmra.mxu2 %vm221_vm0, %v943_v10  ;;  %v945_v10 = vld [vmem:[#allocation2 + $0xb2] sm:$0xff] }
 0x17b   :  { %5028 = vmatmul.msk.f32.gmra.mxu3 %vm221_vm0, %v944_v45  ;;  %5054 = vmatmul.msk.f32.gmra.mxu0 %vm221_vm0, %v1165_v58  ;;  %v6124_v58 = vld [vmem:[#allocation2 + $0xac] sm:$0xff] }
 0x17c   :  { %5081 = vmatmul.msk.f32.gmra.mxu1 %vm221_vm0, %v6111_v32 }
 0x17d   :  { %v836_v8 = vpop.f32.mrf.mxu2 }
 0x17e   :  { %v1058_v23 = vpop.f32.mrf.mxu3  ;;  %v903_v41 = vadd.f32 %v836_v8, %v640_v25 }
 0x180   :  { %v6118_v2 = vadd.f32 %v1058_v23, %v903_v41  ;;  %v6120_v37 = vpop.f32.mrf.mxu0 }
 0x181   :  { %8117 = vst [vmem:[#allocation8_spill] sm:$0xff] %v6120_v37  ;;  %v1167_v37 = vld [vmem:[#allocation2 + $0xb3] sm:$0xff] }
 0x182   :  { %5002 = vmatmul.msk.f32.gmra.mxu2 %vm221_vm0, %v944_v45  ;;  %v946_v45 = vld [vmem:[#allocation2 + $0xba] sm:$0xff] }
 0x183   :  { %5029 = vmatmul.msk.f32.gmra.mxu3 %vm221_vm0, %v945_v10  ;;  %5055 = vmatmul.msk.f32.gmra.mxu0 %vm221_vm0, %v1166_v35  ;;  %v6137_v35 = vld [vmem:[#allocation2 + $0xb4] sm:$0xff] }
 0x184   :  { %5082 = vmatmul.msk.f32.gmra.mxu1 %vm221_vm0, %v6124_v58 }
 0x185   :  { %v839_v50 = vpop.f32.mrf.mxu2 }
 0x186   :  { %v1061_v25 = vpop.f32.mrf.mxu3  ;;  %v904_v8 = vadd.f32 %v839_v50, %v643_v49 }
 0x188   :  { %v6131_v23 = vadd.f32 %v1061_v25, %v904_v8  ;;  %v6133_v41 = vpop.f32.mrf.mxu0 }
 0x189   :  { %8118 = vst [vmem:[#allocation9_spill] sm:$0xff] %v6133_v41  ;;  %v1168_v41 = vld [vmem:[#allocation2 + $0xbb] sm:$0xff] }
 0x18a   :  { %5003 = vmatmul.msk.f32.gmra.mxu2 %vm221_vm0, %v945_v10  ;;  %v947_v10 = vld [vmem:[#allocation2 + $0xc2] sm:$0xff] }
 0x18b   :  { %5030 = vmatmul.msk.f32.gmra.mxu3 %vm221_vm0, %v946_v45  ;;  %5056 = vmatmul.msk.f32.gmra.mxu0 %vm221_vm0, %v1167_v37  ;;  %v6150_v37 = vld [vmem:[#allocation2 + $0xbc] sm:$0xff] }
 0x18c   :  { %5083 = vmatmul.msk.f32.gmra.mxu1 %vm221_vm0, %v6137_v35 }
 0x18d   :  { %v842_v13 = vpop.f32.mrf.mxu2 }
 0x18e   :  { %v1064_v49 = vpop.f32.mrf.mxu3  ;;  %v905_v50 = vadd.f32 %v842_v13, %v646_v28 }
 0x190   :  { %v6144_v25 = vadd.f32 %v1064_v49, %v905_v50  ;;  %v6146_v8 = vpop.f32.mrf.mxu0  ;;  %v948_v49 = vld [vmem:[#allocation2 + $0xca] sm:$0xff] }
 0x191   :  { %8119 = vst [vmem:[#allocation10_spill] sm:$0xff] %v6146_v8  ;;  %v1169_v8 = vld [vmem:[#allocation2 + $0xc3] sm:$0xff] }
 0x192   :  { %5004 = vmatmul.msk.f32.gmra.mxu2 %vm221_vm0, %v946_v45 }
 0x193   :  { %5031 = vmatmul.msk.f32.gmra.mxu3 %vm221_vm0, %v947_v10  ;;  %5057 = vmatmul.msk.f32.gmra.mxu0 %vm221_vm0, %v1168_v41  ;;  %v6163_v41 = vld [vmem:[#allocation2 + $0xc4] sm:$0xff] }
 0x194   :  { %5084 = vmatmul.msk.f32.gmra.mxu1 %vm221_vm0, %v6150_v37 }
 0x195   :  { %v845_v61 = vpop.f32.mrf.mxu2 }
 0x196   :  { %v1067_v28 = vpop.f32.mrf.mxu3  ;;  %v906_v13 = vadd.f32 %v845_v61, %v649_v60 }
 0x198   :  { %v6157_v50 = vadd.f32 %v1067_v28, %v906_v13  ;;  %v6159_v45 = vpop.f32.mrf.mxu0 }
 0x199   :  { %8120 = vst [vmem:[#allocation11_spill] sm:$0xff] %v6159_v45  ;;  %v1812_v45 = vld [vmem:[#allocation2 + $0x15] sm:$0xff] }
 0x19a   :  { %5005 = vmatmul.msk.f32.gmra.mxu2 %vm221_vm0, %v947_v10  ;;  %v1170_v10 = vld [vmem:[#allocation2 + $0xcb] sm:$0xff] }
 0x19b   :  { %5032 = vmatmul.msk.f32.gmra.mxu3 %vm221_vm0, %v948_v49  ;;  %5058 = vmatmul.msk.f32.gmra.mxu0 %vm221_vm0, %v1169_v8  ;;  %v6174_v49 = vld [vmem:[#allocation2 + $0xcc] sm:$0xff] }
 0x19c   :  { %5085 = vmatmul.msk.f32.gmra.mxu1 %vm221_vm0, %v6163_v41 }
 0x19d   :  { %v848_v63 = vpop.f32.mrf.mxu2 }
 0x19e   :  { %v1070_v60 = vpop.f32.mrf.mxu3  ;;  %v907_v61 = vadd.f32 %v848_v63, %v652_v17  ;;  %v5415_v63 = vmov 0  }
 0x19f   :  { %5407 = vset.pattern.permute.xlu0 %v5415_v63  ;;  %5408 = vset.pattern.permute.xlu1 %v5415_v63 }
 0x1a0   :  { %v6170_v28 = vadd.f32 %v1070_v60, %v907_v61  ;;  %v6172_v13 = vpop.f32.mrf.mxu0  ;;  %2263 = vperm.xlu0 %5407, %v284_v40   ;;  %5406 = vset.pattern.permute.xlu2 %v5415_v63  ;;  %v1813_v61 = vld [vmem:[#allocation2 + $0x1d] sm:$0xff] }
 0x1a1   :  { %2258 = vperm.xlu2 %5406, %v283_v57  }
 0x1a2   :  { %5089 = vmatmul.msk.f32.vlgmr.msra.gmra.mxu2 %vm221_vm0, %v5883_v34 }
 0x1a3   :  { %5116 = vmatmul.msk.f32.vlgmr.msra.gmra.mxu3 %vm221_vm0, %v1812_v45  ;;  %5059 = vmatmul.msk.f32.gmra.mxu0 %vm221_vm0, %v1170_v10  ;;  %v285_v10 = vld [vmem:[%s8021_s1 + $0x10] sm:$0xff] }
 0x1a4   :  { %5086 = vmatmul.msk.f32.gmra.mxu1 %vm221_vm0, %v6174_v49  ;;  %2268 = vperm.xlu1 %5408, %v285_v10  }
 0x1a5   :  { %v851_v8 = vpop.f32.mrf.mxu2 }
 0x1a6   :  { %v1073_v17 = vpop.f32.mrf.mxu3  ;;  %v908_v34 = vadd.f32 %v851_v8, %v655_v39 }
 0x1a8   :  { %v6187_v45 = vadd.f32 %v1073_v17, %v908_v34  ;;  %v6189_v60 = vpop.f32.mrf.mxu0  ;;  %v2035_v34 = vld [vmem:[#allocation2 + $0x1e] sm:$0xff]  ;;  %2288 = vperm.xlu0 %5407, %v289_v6  }
 0x1a9   :  { %2273 = vperm.xlu2 %5406, %v286_v4  }
 0x1aa   :  { %5090 = vmatmul.msk.f32.gmra.mxu2 %vm221_vm0, %v5890_v18  ;;  %v1814_v18 = vld [vmem:[#allocation2 + $0x25] sm:$0xff] }
 0x1ab   :  { %5117 = vmatmul.msk.f32.gmra.mxu3 %vm221_vm0, %v1813_v61  ;;  %5143 = vmatmul.msk.f32.vlgmr.msra.gmra.mxu0 %vm221_vm0, %v2034_v47 }
 0x1ac   :  { %2278 = vperm.xlu1 %5408, %v287_v0   ;;  %v670_v0 = vadd.f32 %v5923_v22, %v5921_v21  ;;  %v2039_v21 = vld [vmem:[#allocation2 + $0x3e] sm:$0xff] }
 0x1ad   :  { %v854_v39 = vpop.f32.mrf.mxu2  ;;  %v290_v22 = vld [vmem:[%s8021_s1 + $0x38] sm:$0xff] }
 0x1ae   :  { %v1076_v40 = vpop.f32.mrf.mxu3  ;;  %v909_v8 = vadd.f32 %v854_v39, %v658_v29 }
 0x1b0   :  { %v6200_v17 = vadd.f32 %v1076_v40, %v909_v8  ;;  %v6202_v63 = vpop.f32.mrf.mxu0  ;;  %v2036_v40 = vld [vmem:[#allocation2 + $0x26] sm:$0xff] }
 0x1b2   :  { %5091 = vmatmul.msk.f32.gmra.mxu2 %vm221_vm0, %v5905_v7  ;;  %v1815_v7 = vld [vmem:[#allocation2 + $0x2d] sm:$0xff] }
 0x1b3   :  { %5118 = vmatmul.msk.f32.gmra.mxu3 %vm221_vm0, %v1814_v18  ;;  %5144 = vmatmul.msk.f32.gmra.mxu0 %vm221_vm0, %v2035_v34 }
 0x1b4   :  { %2293 = vperm.xlu1 %5408, %v290_v22  }
 0x1b5   :  { %v857_v61 = vpop.f32.mrf.mxu2 }
 0x1b6   :  { %v1079_v47 = vpop.f32.mrf.mxu3  ;;  %v910_v29 = vadd.f32 %v857_v61, %v661_v55  ;;  %v2037_v61 = vld [vmem:[#allocation2 + $0x2e] sm:$0xff] }
 0x1b8   :  { %v6213_v10 = vadd.f32 %v1079_v47, %v910_v29  ;;  %v6215_v39 = vpop.f32.mrf.mxu0 }
 0x1ba   :  { %5092 = vmatmul.msk.f32.gmra.mxu2 %vm221_vm0, %v5916_v20  ;;  %v1816_v20 = vld [vmem:[#allocation2 + $0x35] sm:$0xff] }
 0x1bb   :  { %5119 = vmatmul.msk.f32.gmra.mxu3 %vm221_vm0, %v1815_v7  ;;  %5145 = vmatmul.msk.f32.gmra.mxu0 %vm221_vm0, %v2036_v40 }
 0x1bd   :  { %v860_v8 = vpop.f32.mrf.mxu2 }
 0x1be   :  { %v1082_v18 = vpop.f32.mrf.mxu3  ;;  %v911_v34 = vadd.f32 %v860_v8, %v664_v5  ;;  %v1817_v5 = vld [vmem:[#allocation2 + $0x3d] sm:$0xff] }
 0x1c0   :  { %v6226_v55 = vadd.f32 %v1082_v18, %v911_v34  ;;  %v6228_v57 = vpop.f32.mrf.mxu0 }
 0x1c1   :  { %8121 = vst [vmem:[#allocation12_spill] sm:$0xff] %v6228_v57 }
 0x1c2   :  { %5093 = vmatmul.msk.f32.gmra.mxu2 %vm221_vm0, %v5931_v44  ;;  %v2038_v44 = vld [vmem:[#allocation2 + $0x36] sm:$0xff] }
 0x1c3   :  { %5120 = vmatmul.msk.f32.gmra.mxu3 %vm221_vm0, %v1816_v20  ;;  %5146 = vmatmul.msk.f32.gmra.mxu0 %vm221_vm0, %v2037_v61  ;;  %v1818_v61 = vld [vmem:[#allocation2 + $0x45] sm:$0xff] }
 0x1c5   :  { %v863_v53 = vpop.f32.mrf.mxu2 }
 0x1c6   :  { %v1085_v47 = vpop.f32.mrf.mxu3  ;;  %v912_v29 = vadd.f32 %v863_v53, %v667_v51 }
 0x1c8   :  { %v6236_v7 = vadd.f32 %v1085_v47, %v912_v29  ;;  %v6238_v40 = vpop.f32.mrf.mxu0 }
 0x1c9   :  { %8123 = vst [vmem:[#allocation14_spill] sm:$0xff] %v6238_v40 }
 0x1ca   :  { %8122 = vst [vmem:[#allocation13_spill] sm:$0xff] %v6236_v7  ;;  %5094 = vmatmul.msk.f32.gmra.mxu2 %vm221_vm0, %v5944_v11 }
 0x1cb   :  { %5121 = vmatmul.msk.f32.gmra.mxu3 %vm221_vm0, %v1817_v5  ;;  %5147 = vmatmul.msk.f32.gmra.mxu0 %vm221_vm0, %v2038_v44  ;;  %v1819_v44 = vld [vmem:[#allocation2 + $0x4d] sm:$0xff] }
 0x1cd   :  { %v866_v8 = vpop.f32.mrf.mxu2 }
 0x1ce   :  { %v1088_v18 = vpop.f32.mrf.mxu3  ;;  %v913_v11 = vadd.f32 %v866_v8, %v670_v0  ;;  %v288_v0 = vld [vmem:[%s8021_s1 + $0x28] sm:$0xff] }
 0x1cf   :  { %2283 = vperm.xlu2 %5406, %v288_v0  }
 0x1d0   :  { %v6252_v34 = vadd.f32 %v1088_v18, %v913_v11  ;;  %v6254_v20 = vpop.f32.mrf.mxu0  ;;  %v1820_v11 = vld [vmem:[#allocation2 + $0x55] sm:$0xff] }
 0x1d1   :  { %8125 = vst [vmem:[#allocation16_spill] sm:$0xff] %v6254_v20 }
 0x1d2   :  { %8124 = vst [vmem:[#allocation15_spill] sm:$0xff] %v6252_v34  ;;  %5095 = vmatmul.msk.f32.gmra.mxu2 %vm221_vm0, %v5957_v12  ;;  %v2040_v12 = vld [vmem:[#allocation2 + $0x46] sm:$0xff] }
 0x1d3   :  { %5122 = vmatmul.msk.f32.gmra.mxu3 %vm221_vm0, %v1818_v61  ;;  %5148 = vmatmul.msk.f32.gmra.mxu0 %vm221_vm0, %v2039_v21  ;;  %v292_v61 = vld [vmem:[%s8021_s1 + $0x48] sm:$0xff] }
 0x1d4   :  { %2303 = vperm.xlu0 %5407, %v292_v61  }
 0x1d5   :  { %v869_v51 = vpop.f32.mrf.mxu2 }
 0x1d6   :  { %v1091_v53 = vpop.f32.mrf.mxu3  ;;  %v914_v47 = vadd.f32 %v869_v51, %v5936_v24 }
 0x1d8   :  { %v6264_v29 = vadd.f32 %v1091_v53, %v914_v47  ;;  %v6266_v5 = vpop.f32.mrf.mxu0  ;;  %v1821_v47 = vld [vmem:[#allocation2 + $0x5d] sm:$0xff] }
 0x1d9   :  { %8127 = vst [vmem:[#allocation18_spill] sm:$0xff] %v6266_v5  ;;  %v2057_v5 = vld [vmem:[#allocation2 + $0xce] sm:$0xff] }
 0x1da   :  { %8126 = vst [vmem:[#allocation17_spill] sm:$0xff] %v6264_v29  ;;  %5096 = vmatmul.msk.f32.gmra.mxu2 %vm221_vm0, %v5970_v56  ;;  %v2041_v56 = vld [vmem:[#allocation2 + $0x4e] sm:$0xff] }
 0x1db   :  { %5123 = vmatmul.msk.f32.gmra.mxu3 %vm221_vm0, %v1819_v44  ;;  %5149 = vmatmul.msk.f32.gmra.mxu0 %vm221_vm0, %v2040_v12  ;;  %v293_v44 = vld [vmem:[%s8021_s1 + $0x50] sm:$0xff] }
 0x1dc   :  { %2308 = vperm.xlu1 %5408, %v293_v44  }
 0x1dd   :  { %v872_v4 = vpop.f32.mrf.mxu2 }
 0x1de   :  { %v1094_v6 = vpop.f32.mrf.mxu3  ;;  %v915_v24 = vadd.f32 %v872_v4, %v5949_v48  ;;  %v1822_v4 = vld [vmem:[#allocation2 + $0x65] sm:$0xff] }
 0x1e0   :  { %v6276_v8 = vadd.f32 %v1094_v6, %v915_v24  ;;  %v6278_v18 = vpop.f32.mrf.mxu0 }
 0x1e1   :  { %8129 = vst [vmem:[#allocation20_spill] sm:$0xff] %v6278_v18 }
 0x1e2   :  { %8128 = vst [vmem:[#allocation19_spill] sm:$0xff] %v6276_v8  ;;  %5097 = vmatmul.msk.f32.gmra.mxu2 %vm221_vm0, %v5983_v31  ;;  %v2042_v31 = vld [vmem:[#allocation2 + $0x56] sm:$0xff] }
 0x1e3   :  { %5124 = vmatmul.msk.f32.gmra.mxu3 %vm221_vm0, %v1820_v11  ;;  %5150 = vmatmul.msk.f32.gmra.mxu0 %vm221_vm0, %v2041_v56  ;;  %v291_v11 = vld [vmem:[%s8021_s1 + $0x40] sm:$0xff] }
 0x1e4   :  { %2298 = vperm.xlu2 %5406, %v291_v11  }
 0x1e5   :  { %v875_v21 = vpop.f32.mrf.mxu2 }
 0x1e6   :  { %v1097_v22 = vpop.f32.mrf.mxu3  ;;  %v916_v48 = vadd.f32 %v875_v21, %v5962_v27  ;;  %v1823_v21 = vld [vmem:[#allocation2 + $0x6d] sm:$0xff] }
 0x1e8   :  { %v6288_v51 = vadd.f32 %v1097_v22, %v916_v48  ;;  %v6290_v53 = vpop.f32.mrf.mxu0 }
 0x1e9   :  { %8131 = vst [vmem:[#allocation22_spill] sm:$0xff] %v6290_v53  ;;  %v2056_v53 = vld [vmem:[#allocation2 + $0xc6] sm:$0xff] }
 0x1ea   :  { %8130 = vst [vmem:[#allocation21_spill] sm:$0xff] %v6288_v51  ;;  %5098 = vmatmul.msk.f32.gmra.mxu2 %vm221_vm0, %v5996_v33  ;;  %v2043_v33 = vld [vmem:[#allocation2 + $0x5e] sm:$0xff] }
 0x1eb   :  { %5125 = vmatmul.msk.f32.gmra.mxu3 %vm221_vm0, %v1821_v47  ;;  %5151 = vmatmul.msk.f32.gmra.mxu0 %vm221_vm0, %v2042_v31  ;;  %v6316_v47 = vpop.f32.mrf.mxu1  ;;  %v295_v31 = vld [vmem:[%s8021_s1 + $0x60] sm:$0xff] }
 0x1ec   :  { %2318 = vperm.xlu0 %5407, %v295_v31   ;;  %v294_v31 = vld [vmem:[%s8021_s1 + $0x58] sm:$0xff] }
 0x1ed   :  { %v878_v12 = vpop.f32.mrf.mxu2  ;;  %2313 = vperm.xlu2 %5406, %v294_v31  }
 0x1ee   :  { %v1100_v0 = vpop.f32.mrf.mxu3  ;;  %v917_v27 = vadd.f32 %v878_v12, %v5975_v59 }
 0x1f0   :  { %v6300_v6 = vadd.f32 %v1100_v0, %v917_v27  ;;  %v6302_v24 = vpop.f32.mrf.mxu0 }
 0x1f1   :  { %8133 = vst [vmem:[#allocation24_spill] sm:$0xff] %v6302_v24  ;;  %v1835_v24 = vld [vmem:[#allocation2 + $0xcd] sm:$0xff] }
 0x1f2   :  { %8132 = vst [vmem:[#allocation23_spill] sm:$0xff] %v6300_v6  ;;  %5099 = vmatmul.msk.f32.gmra.mxu2 %vm221_vm0, %v6007_v42  ;;  %v2044_v42 = vld [vmem:[#allocation2 + $0x66] sm:$0xff] }
 0x1f3   :  { %5126 = vmatmul.msk.f32.gmra.mxu3 %vm221_vm0, %v1822_v4  ;;  %5152 = vmatmul.msk.f32.gmra.mxu0 %vm221_vm0, %v2043_v33  ;;  %v2045_v4 = vld [vmem:[#allocation2 + $0x6e] sm:$0xff]  ;;  %v6337_v11 = vpop.f32.mrf.mxu1 }
 0x1f4   :  { %v1824_v33 = vld [vmem:[#allocation2 + $0x75] sm:$0xff] }
 0x1f5   :  { %v881_v56 = vpop.f32.mrf.mxu2 }
 0x1f6   :  { %v1103_v61 = vpop.f32.mrf.mxu3  ;;  %v918_v59 = vadd.f32 %v881_v56, %v5988_v16 }
 0x1f8   :  { %v6312_v22 = vadd.f32 %v1103_v61, %v918_v59  ;;  %v6314_v48 = vpop.f32.mrf.mxu0 }
 0x1f9   :  { %8135 = vst [vmem:[#allocation26_spill] sm:$0xff] %v6314_v48  ;;  %v1834_v48 = vld [vmem:[#allocation2 + $0xc5] sm:$0xff] }
 0x1fa   :  { %8134 = vst [vmem:[#allocation25_spill] sm:$0xff] %v6312_v22  ;;  %5100 = vmatmul.msk.f32.gmra.mxu2 %vm221_vm0, %v6020_v52  ;;  %v296_v52 = vld [vmem:[%s8021_s1 + $0x68] sm:$0xff]  ;;  %v2055_v22 = vld [vmem:[#allocation2 + $0xbe] sm:$0xff] }
 0x1fb   :  { %5127 = vmatmul.msk.f32.gmra.mxu3 %vm221_vm0, %v1823_v21  ;;  %5153 = vmatmul.msk.f32.gmra.mxu0 %vm221_vm0, %v2044_v42  ;;  %v2046_v42 = vld [vmem:[#allocation2 + $0x76] sm:$0xff] }
 0x1fc   :  { %2323 = vperm.xlu1 %5408, %v296_v52  }
 0x1fd   :  { %v884_v16 = vpop.f32.mrf.mxu2 }
 0x1fe   :  { %v1106_v44 = vpop.f32.mrf.mxu3  ;;  %v919_v12 = vadd.f32 %v884_v16, %v6001_v3  ;;  %v298_v16 = vld [vmem:[%s8021_s1 + $0x78] sm:$0xff] }
 0x1ff   :  { %2333 = vperm.xlu0 %5407, %v298_v16   ;;  %v8143_v16 = vld [vmem:[#allocation5_spill] sm:$0xff] }
 0x200   :  { %v6326_v0 = vadd.f32 %v1106_v44, %v919_v12  ;;  %v6328_v27 = vpop.f32.mrf.mxu0  ;;  %v6357_v12 = vpop.f32.mrf.mxu1 }
 0x201   :  { %8137 = vst [vmem:[#allocation28_spill] sm:$0xff] %v6328_v27  ;;  %v1833_v27 = vld [vmem:[#allocation2 + $0xbd] sm:$0xff] }
 0x202   :  { %8136 = vst [vmem:[#allocation27_spill] sm:$0xff] %v6326_v0  ;;  %5101 = vmatmul.msk.f32.gmra.mxu2 %vm221_vm0, %v6035_v62  ;;  %v1825_v62 = vld [vmem:[#allocation2 + $0x7d] sm:$0xff] }
 0x203   :  { %5128 = vmatmul.msk.f32.gmra.mxu3 %vm221_vm0, %v1824_v33  ;;  %5154 = vmatmul.msk.f32.gmra.mxu0 %vm221_vm0, %v2045_v4  ;;  %v8140_v4 = vld [vmem:[#allocation4_spill] sm:$0xff] }
 0x205   :  { %v887_v3 = vpop.f32.mrf.mxu2 }
 0x206   :  { %v1109_v56 = vpop.f32.mrf.mxu3  ;;  %v920_v61 = vadd.f32 %v887_v3, %v6014_v9  ;;  %v299_v9 = vld [vmem:[%s8021_s1 + $0x80] sm:$0xff] }
 0x207   :  { %2338 = vperm.xlu1 %5408, %v299_v9  }
 0x208   :  { %v6340_v59 = vadd.f32 %v1109_v56, %v920_v61  ;;  %v6342_v21 = vpop.f32.mrf.mxu0  ;;  %v1826_v56 = vld [vmem:[#allocation2 + $0x85] sm:$0xff] }
 0x209   :  { %8139 = vst [vmem:[#allocation30_spill] sm:$0xff] %v6342_v21  ;;  %v2047_v61 = vld [vmem:[#allocation2 + $0x7e] sm:$0xff]  ;;  %v8149_v21 = vmov 0.0  }
 0x20a   :  { %8138 = vst [vmem:[#allocation29_spill] sm:$0xff] %v6340_v59  ;;  %5102 = vmatmul.msk.f32.gmra.mxu2 %vm221_vm0, %v6048_v43 }
 0x20b   :  { %5129 = vmatmul.msk.f32.gmra.mxu3 %vm221_vm0, %v1825_v62  ;;  %5155 = vmatmul.msk.f32.gmra.mxu0 %vm221_vm0, %v2046_v42  ;;  %v301_v62 = vld [vmem:[%s8021_s1 + $0x90] sm:$0xff]  ;;  %250 = vst.msk [vmem:[#allocation2 + $0xd8] sm:$0x3f] %vm249_vm2, %v8149_v21 }
 0x20c   :  { %2348 = vperm.xlu0 %5407, %v301_v62   ;;  %v304_v62 = vld [vmem:[%s8021_s1 + $0xa8] sm:$0xff] }
 0x20d   :  { %v890_v43 = vpop.f32.mrf.mxu2 }
 0x20e   :  { %v1112_v44 = vpop.f32.mrf.mxu3  ;;  %v921_v33 = vadd.f32 %v890_v43, %v8140_v4  ;;  %v302_v43 = vld [vmem:[%s8021_s1 + $0x98] sm:$0xff] }
 0x20f   :  { %2353 = vperm.xlu1 %5408, %v302_v43   ;;  %v305_v43 = vld [vmem:[%s8021_s1 + $0xb0] sm:$0xff] }
 0x210   :  { %v6360_v52 = vadd.f32 %v1112_v44, %v921_v33  ;;  %v6362_v3 = vpop.f32.mrf.mxu0  ;;  %v297_v33 = vld [vmem:[%s8021_s1 + $0x70] sm:$0xff] }
 0x211   :  { %8142 = vst [vmem:[#allocation31_spill] sm:$0xff] %v6362_v3  ;;  %2328 = vperm.xlu2 %5406, %v297_v33  }
 0x212   :  { %8141 = vst [vmem:[#allocation4_spill] sm:$0xff] %v6360_v52  ;;  %5103 = vmatmul.msk.f32.gmra.mxu2 %vm221_vm0, %v6061_v30  ;;  %v6375_v30 = vpop.f32.mrf.mxu1  ;;  %v1832_v52 = vld [vmem:[#allocation2 + $0xb5] sm:$0xff] }
 0x213   :  { %5130 = vmatmul.msk.f32.gmra.mxu3 %vm221_vm0, %v1826_v56  ;;  %5156 = vmatmul.msk.f32.gmra.mxu0 %vm221_vm0, %v2047_v61  ;;  %v1827_v56 = vld [vmem:[#allocation2 + $0x8d] sm:$0xff]  ;;  %v1836_v18 = vld [vmem:[#allocation2 + $0xd5] sm:$0xff] }
 0x214   :  { %v2048_v61 = vld [vmem:[#allocation2 + $0x86] sm:$0xff]  ;;  %2363 = vperm.xlu0 %5407, %v304_v62   ;;  %v2049_v62 = vld [vmem:[#allocation2 + $0x8e] sm:$0xff]  ;;  %v2058_v20 = vld [vmem:[#allocation2 + $0xd6] sm:$0xff] }
 0x215   :  { %v893_v42 = vpop.f32.mrf.mxu2  ;;  %v1614_v51 = vld [vmem:[#allocation2 + $0xd4] sm:$0xff] }
 0x216   :  { %v1115_v31 = vpop.f32.mrf.mxu3  ;;  %v922_v9 = vadd.f32 %v893_v42, %v8143_v16  ;;  %v8146_v16 = vld [vmem:[#allocation6_spill] sm:$0xff] }
 0x217   :  { %2368 = vperm.xlu1 %5408, %v305_v43  }
 0x218   :  { %v6377_v44 = vadd.f32 %v1115_v31, %v922_v9  ;;  %v6379_v4 = vpop.f32.mrf.mxu0 }
 0x219   :  { %8145 = vst [vmem:[#allocation32_spill] sm:$0xff] %v6379_v4  ;;  %v1828_v4 = vld [vmem:[#allocation2 + $0x95] sm:$0xff] }
 0x21a   :  { %8144 = vst [vmem:[#allocation5_spill] sm:$0xff] %v6377_v44  ;;  %5104 = vmatmul.msk.f32.gmra.mxu2 %vm221_vm0, %v6070_v54  ;;  %v1831_v44 = vld [vmem:[#allocation2 + $0xad] sm:$0xff] }
 0x21b   :  { %5131 = vmatmul.msk.f32.gmra.mxu3 %vm221_vm0, %v1827_v56  ;;  %5157 = vmatmul.msk.f32.gmra.mxu0 %vm221_vm0, %v2048_v61  ;;  %v300_v56 = vld [vmem:[%s8021_s1 + $0x88] sm:$0xff]  ;;  %v6402_v61 = vpop.f32.mrf.mxu1 }
 0x21c   :  { %2343 = vperm.xlu2 %5406, %v300_v56  }
 0x21d   :  { %v896_v42 = vpop.f32.mrf.mxu2 }
 0x21e   :  { %v1118_v31 = vpop.f32.mrf.mxu3  ;;  %v923_v9 = vadd.f32 %v896_v42, %v8146_v16  ;;  %v307_v42 = vld [vmem:[%s8021_s1 + $0xc0] sm:$0xff] }
 0x21f   :  { %2378 = vperm.xlu0 %5407, %v307_v42  }
 0x220   :  { %v6395_v54 = vadd.f32 %v1118_v31, %v923_v9  ;;  %v6397_v33 = vpop.f32.mrf.mxu0 }
 0x221   :  { %8148 = vst [vmem:[#allocation33_spill] sm:$0xff] %v6397_v33 }
 0x222   :  { %8147 = vst [vmem:[#allocation6_spill] sm:$0xff] %v6395_v54  ;;  %5105 = vmatmul.msk.f32.gmra.mxu2 %vm221_vm0, %v6085_v46  ;;  %v303_v46 = vld [vmem:[%s8021_s1 + $0xa0] sm:$0xff] }
 0x223   :  { %5132 = vmatmul.msk.f32.gmra.mxu3 %vm221_vm0, %v1828_v4  ;;  %5158 = vmatmul.msk.f32.gmra.mxu0 %vm221_vm0, %v2049_v62  ;;  %v1829_v4 = vld [vmem:[#allocation2 + $0x9d] sm:$0xff]  ;;  %v6423_v42 = vpop.f32.mrf.mxu1 }
 0x224   :  { %2358 = vperm.xlu2 %5406, %v303_v46   ;;  %v2050_v62 = vld [vmem:[#allocation2 + $0x96] sm:$0xff]  ;;  %v1830_v46 = vld [vmem:[#allocation2 + $0xa5] sm:$0xff] }
 0x225   :  { %v1712_v31 = vpop.f32.mrf.mxu2 }
 0x226   :  { %v1934_v16 = vpop.f32.mrf.mxu3  ;;  %v1787_v9 = vadd.f32 %v1712_v31, %v6077_v19 }
 0x228   :  { %v6412_v43 = vadd.f32 %v1934_v16, %v1787_v9  ;;  %v6414_v56 = vpop.f32.mrf.mxu0  ;;  %v306_v9 = vld [vmem:[%s8021_s1 + $0xb8] sm:$0xff] }
 0x22a   :  { %5106 = vmatmul.msk.f32.gmra.mxu2 %vm221_vm0, %v6098_v15  ;;  %v2051_v15 = vld [vmem:[#allocation2 + $0x9e] sm:$0xff] }
 0x22b   :  { %5133 = vmatmul.msk.f32.gmra.mxu3 %vm221_vm0, %v1829_v4  ;;  %5159 = vmatmul.msk.f32.gmra.mxu0 %vm221_vm0, %v2050_v62  ;;  %v6442_v33 = vpop.f32.mrf.mxu1 }
 0x22c   :  { %2373 = vperm.xlu2 %5406, %v306_v9  }
 0x22d   :  { %v6425_v19 = vpop.f32.mrf.mxu2 }
 0x22e   :  { %v6427_v31 = vpop.f32.mrf.mxu3 }
 0x230   :  { %v6429_v16 = vpop.f32.mrf.mxu0 }
 0x232   :  { %5107 = vmatmul.msk.f32.gmra.mxu2 %vm221_vm0, %v6111_v32  ;;  %v2052_v32 = vld [vmem:[#allocation2 + $0xa6] sm:$0xff] }
 0x233   :  { %5134 = vmatmul.msk.f32.gmra.mxu3 %vm221_vm0, %v1830_v46  ;;  %5160 = vmatmul.msk.f32.gmra.mxu0 %vm221_vm0, %v2051_v15  ;;  %v6454_v15 = vpop.f32.mrf.mxu1 }
 0x235   :  { %v6438_v4 = vpop.f32.mrf.mxu2 }
 0x236   :  { %v6440_v62 = vpop.f32.mrf.mxu3 }
 0x238   :  { %v6444_v54 = vpop.f32.mrf.mxu0 }
 0x23a   :  { %5108 = vmatmul.msk.f32.gmra.mxu2 %vm221_vm0, %v6124_v58  ;;  %v2053_v58 = vld [vmem:[#allocation2 + $0xae] sm:$0xff] }
 0x23b   :  { %5135 = vmatmul.msk.f32.gmra.mxu3 %vm221_vm0, %v1831_v44  ;;  %5161 = vmatmul.msk.f32.gmra.mxu0 %vm221_vm0, %v2052_v32  ;;  %v6469_v0 = vpop.f32.mrf.mxu1 }
 0x23d   :  { %v6450_v9 = vpop.f32.mrf.mxu2 }
 0x23e   :  { %v6452_v46 = vpop.f32.mrf.mxu3 }
 0x240   :  { %v6456_v3 = vpop.f32.mrf.mxu0 }
 0x242   :  { %5109 = vmatmul.msk.f32.gmra.mxu2 %vm221_vm0, %v6137_v35  ;;  %v2054_v35 = vld [vmem:[#allocation2 + $0xb6] sm:$0xff] }
 0x243   :  { %5136 = vmatmul.msk.f32.gmra.mxu3 %vm221_vm0, %v1832_v52  ;;  %5162 = vmatmul.msk.f32.gmra.mxu0 %vm221_vm0, %v2053_v58 }
 0x245   :  { %v6463_v44 = vpop.f32.mrf.mxu2 }
 0x246   :  { %v6465_v32 = vpop.f32.mrf.mxu3 }
 0x248   :  { %v6467_v59 = vpop.f32.mrf.mxu0 }
 0x24a   :  { %5110 = vmatmul.msk.f32.gmra.mxu2 %vm221_vm0, %v6150_v37  ;;  %v6485_v37 = vpop.f32.mrf.mxu1 }
 0x24b   :  { %5137 = vmatmul.msk.f32.gmra.mxu3 %vm221_vm0, %v1833_v27  ;;  %5163 = vmatmul.msk.f32.gmra.mxu0 %vm221_vm0, %v2054_v35 }
 0x24d   :  { %v6475_v52 = vpop.f32.mrf.mxu2 }
 0x24e   :  { %v6477_v58 = vpop.f32.mrf.mxu3 }
 0x250   :  { %v6479_v21 = vpop.f32.mrf.mxu0 }
 0x252   :  { %5111 = vmatmul.msk.f32.gmra.mxu2 %vm221_vm0, %v6163_v41 }
 0x253   :  { %5138 = vmatmul.msk.f32.gmra.mxu3 %vm221_vm0, %v1834_v48  ;;  %5164 = vmatmul.msk.f32.gmra.mxu0 %vm221_vm0, %v2055_v22  ;;  %v6501_v48 = vpop.f32.mrf.mxu1 }
 0x254   :  { %8151 = vst [vmem:[#allocation35_spill] sm:$0xff] %v6501_v48 }
 0x255   :  { %v6487_v27 = vpop.f32.mrf.mxu2 }
 0x256   :  { %v6489_v35 = vpop.f32.mrf.mxu3 }
 0x258   :  { %v6491_v6 = vpop.f32.mrf.mxu0 }
 0x259   :  { %8150 = vst [vmem:[#allocation34_spill] sm:$0xff] %v6491_v6 }
 0x25a   :  { %5112 = vmatmul.msk.f32.gmra.mxu2 %vm221_vm0, %v6174_v49 }
 0x25b   :  { %5139 = vmatmul.msk.f32.gmra.mxu3 %vm221_vm0, %v1835_v24  ;;  %5165 = vmatmul.msk.f32.gmra.mxu0 %vm221_vm0, %v2056_v53  ;;  %v6512_v24 = vpop.f32.mrf.mxu1 }
 0x25c   :  { %8154 = vst [vmem:[#allocation38_spill] sm:$0xff] %v6512_v24 }
 0x25d   :  { %v6497_v41 = vpop.f32.mrf.mxu2 }
 0x25e   :  { %v6499_v22 = vpop.f32.mrf.mxu3 }
 0x260   :  { %v6503_v8 = vpop.f32.mrf.mxu0 }
 0x261   :  { %8152 = vst [vmem:[#allocation36_spill] sm:$0xff] %v6503_v8 }
 0x262   :  { %5113 = vmatmul.msk.f32.gmra.mxu2 %vm221_vm0, %v1614_v51 }
 0x263   :  { %5140 = vmatmul.msk.f32.gmra.mxu3 %vm221_vm0, %v1836_v18  ;;  %5166 = vmatmul.msk.f32.gmra.mxu0 %vm221_vm0, %v2057_v5  ;;  %v6523_v18 = vpop.f32.mrf.mxu1 }
 0x264   :  { %8159 = vst [vmem:[#allocation43_spill] sm:$0xff] %v6523_v18 }
 0x265   :  { %v6508_v49 = vpop.f32.mrf.mxu2 }
 0x266   :  { %v6510_v53 = vpop.f32.mrf.mxu3 }
 0x267   :  { %8153 = vst [vmem:[#allocation37_spill] sm:$0xff] %v6510_v53 }
 0x268   :  { %v6514_v29 = vpop.f32.mrf.mxu0 }
 0x269   :  { %8155 = vst [vmem:[#allocation39_spill] sm:$0xff] %v6514_v29 }
 0x26b   :  { %5167 = vmatmul.msk.f32.gmra.mxu0 %vm221_vm0, %v2058_v20  ;;  %v6531_v24 = vpop.f32.mrf.mxu1  ;;  %v5168_v20 = vld [vmem:[%s8022_s5 + $0x8] sm:$0xff] }
 0x26c   :  { %8163 = vst [vmem:[#allocation47_spill] sm:$0xff] %v6531_v24  ;;  %2863 = vmatpush.msra.mxu1 %v5168_v20 }
 0x26d   :  { %v6517_v34 = vpop.f32.mrf.mxu2 }
 0x26e   :  { %8156 = vst [vmem:[#allocation40_spill] sm:$0xff] %v6517_v34  ;;  %v6519_v8 = vpop.f32.mrf.mxu3 }
 0x26f   :  { %8157 = vst [vmem:[#allocation41_spill] sm:$0xff] %v6519_v8 }
 0x270   :  { %v6521_v51 = vpop.f32.mrf.mxu0 }
 0x271   :  { %8158 = vst [vmem:[#allocation42_spill] sm:$0xff] %v6521_v51 }
 0x275   :  { %v6525_v5 = vpop.f32.mrf.mxu2 }
 0x276   :  { %8160 = vst [vmem:[#allocation44_spill] sm:$0xff] %v6525_v5  ;;  %v6527_v40 = vpop.f32.mrf.mxu3 }
 0x277   :  { %8161 = vst [vmem:[#allocation45_spill] sm:$0xff] %v6527_v40  ;;  %v6546_v40 = vpop.f32.mrf.mxu1 }
 0x278   :  { %v6529_v7 = vpop.f32.mrf.mxu0  ;;  %8169 = vst [vmem:[#allocation53_spill] sm:$0xff] %v6546_v40 }
 0x279   :  { %8162 = vst [vmem:[#allocation46_spill] sm:$0xff] %v6529_v7 }
 0x27d   :  { %v6533_v29 = vpop.f32.mrf.mxu2 }
 0x27e   :  { %8164 = vst [vmem:[#allocation48_spill] sm:$0xff] %v6533_v29  ;;  %v6535_v48 = vpop.f32.mrf.mxu3 }
 0x27f   :  { %8165 = vst [vmem:[#allocation49_spill] sm:$0xff] %v6535_v48  ;;  %v6554_v48 = vpop.f32.mrf.mxu1 }
 0x280   :  { %v6540_v51 = vpop.f32.mrf.mxu0  ;;  %8173 = vst [vmem:[#allocation57_spill] sm:$0xff] %v6554_v48 }
 0x281   :  { %8166 = vst [vmem:[#allocation50_spill] sm:$0xff] %v6540_v51 }
 0x285   :  { %v6542_v18 = vpop.f32.mrf.mxu2 }
 0x286   :  { %8167 = vst [vmem:[#allocation51_spill] sm:$0xff] %v6542_v18  ;;  %v6544_v8 = vpop.f32.mrf.mxu3 }
 0x287   :  { %8168 = vst [vmem:[#allocation52_spill] sm:$0xff] %v6544_v8  ;;  %v6564_v18 = vpop.f32.mrf.mxu1 }
 0x288   :  { %v6548_v7 = vpop.f32.mrf.mxu0  ;;  %8178 = vst [vmem:[#allocation62_spill] sm:$0xff] %v6564_v18  ;;  %v6584_v18 = vpop.permute.xlu1 %2268 }
 0x289   :  { %8170 = vst [vmem:[#allocation54_spill] sm:$0xff] %v6548_v7  ;;  %v6570_v7 = vpop.permute.xlu2 %2258 }
 0x28a   :  { %8181 = vst [vmem:[#allocation65_spill] sm:$0xff] %v6570_v7 }
 0x28b   :  { %8187 = vst [vmem:[#allocation71_spill] sm:$0xff] %v6584_v18 }
 0x28d   :  { %v6550_v24 = vpop.f32.mrf.mxu2 }
 0x28e   :  { %8171 = vst [vmem:[#allocation55_spill] sm:$0xff] %v6550_v24  ;;  %v6552_v29 = vpop.f32.mrf.mxu3 }
 0x28f   :  { %8172 = vst [vmem:[#allocation56_spill] sm:$0xff] %v6552_v29  ;;  %v6574_v29 = vpop.f32.mrf.mxu1 }
 0x290   :  { %v6556_v5 = vpop.f32.mrf.mxu0  ;;  %8183 = vst [vmem:[#allocation67_spill] sm:$0xff] %v6574_v29  ;;  %v8189_v29 = vld [vmem:[#allocation7_spill] sm:$0xff] }
 0x291   :  { %8174 = vst [vmem:[#allocation58_spill] sm:$0xff] %v6556_v5 }
 0x295   :  { %v6558_v53 = vpop.f32.mrf.mxu2 }
 0x296   :  { %8175 = vst [vmem:[#allocation59_spill] sm:$0xff] %v6558_v53  ;;  %v6560_v20 = vpop.f32.mrf.mxu3  ;;  %v6580_v53 = vpop.permute.xlu2 %2273 }
 0x297   :  { %8176 = vst [vmem:[#allocation60_spill] sm:$0xff] %v6560_v20  ;;  %v6603_v57 = vpop.f32.mrf.mxu1 }
 0x298   :  { %v6562_v51 = vpop.f32.mrf.mxu0  ;;  %8186 = vst [vmem:[#allocation70_spill] sm:$0xff] %v6580_v53 }
 0x299   :  { %8177 = vst [vmem:[#allocation61_spill] sm:$0xff] %v6562_v51  ;;  %v1344_v51 = vadd.f32 %v6081_v36, %v6079_v26  ;;  %v8192_v36 = vld [vmem:[#allocation8_spill] sm:$0xff] }
 0x29a   :  { %v1347_v34 = vadd.f32 %v8192_v36, %v6118_v2  ;;  %v8196_v2 = vld [vmem:[#allocation10_spill] sm:$0xff] }
 0x29d   :  { %v6566_v8 = vpop.f32.mrf.mxu2 }
 0x29e   :  { %8179 = vst [vmem:[#allocation63_spill] sm:$0xff] %v6566_v8  ;;  %v6568_v40 = vpop.f32.mrf.mxu3  ;;  %v1346_v8 = vadd.f32 %v8189_v29, %v6105_v38  ;;  %v8194_v38 = vld [vmem:[#allocation9_spill] sm:$0xff] }
 0x29f   :  { %8180 = vst [vmem:[#allocation64_spill] sm:$0xff] %v6568_v40  ;;  %v1345_v40 = vadd.f32 %v6094_v14, %v6092_v1  ;;  %v6605_v1 = vpop.permute.xlu2 %2283  ;;  %v1348_v29 = vadd.f32 %v8194_v38, %v6131_v23 }
 0x2a0   :  { %v6572_v24 = vpop.f32.mrf.mxu0  ;;  %8193 = vst [vmem:[#allocation8_spill] sm:$0xff] %v6605_v1  ;;  %v1568_v14 = vadd.f32 %v6357_v12, %v1346_v8  ;;  %v8197_v12 = vld [vmem:[#allocation11_spill] sm:$0xff] }
 0x2a1   :  { %8182 = vst [vmem:[#allocation66_spill] sm:$0xff] %v6572_v24  ;;  %v1566_v24 = vadd.f32 %v6316_v47, %v1344_v51  ;;  %v1567_v26 = vadd.f32 %v6337_v11, %v1345_v40  ;;  %v6611_v51 = vpop.permute.xlu1 %2278  ;;  %v1569_v40 = vadd.f32 %v6375_v30, %v1347_v34  ;;  %v1349_v11 = vadd.f32 %v8196_v2, %v6144_v25 }
 0x2a2   :  { %8195 = vst [vmem:[#allocation9_spill] sm:$0xff] %v6611_v51  ;;  %v1570_v8 = vadd.f32 %v6402_v61, %v1348_v29  ;;  %v1350_v23 = vadd.f32 %v8197_v12, %v6157_v50  ;;  %v1351_v34 = vadd.f32 %v6172_v13, %v6170_v28 }
 0x2a3   :  { %v1789_v47 = vadd.f32 %v6438_v4, %v1567_v26  ;;  %v1791_v26 = vadd.f32 %v6463_v44, %v1569_v40 }
 0x2a4   :  { %v1572_v28 = vadd.f32 %v6442_v33, %v1350_v23 }
 0x2a5   :  { %v6576_v48 = vpop.f32.mrf.mxu2  ;;  %v2011_v4 = vadd.f32 %v6440_v62, %v1789_v47  ;;  %v1792_v62 = vadd.f32 %v6475_v52, %v1570_v8  ;;  %v1573_v52 = vadd.f32 %v6454_v15, %v1351_v34  ;;  %v8205_v8 = vld [vmem:[#allocation34_spill] sm:$0xff] }
 0x2a6   :  { %8184 = vst [vmem:[#allocation68_spill] sm:$0xff] %v6576_v48  ;;  %v6578_v5 = vpop.f32.mrf.mxu3  ;;  %v6593_v48 = vpop.permute.xlu0 %2263  ;;  %v8210_v34 = vld [vmem:[#allocation14_spill] sm:$0xff] }
 0x2a7   :  { %8185 = vst [vmem:[#allocation69_spill] sm:$0xff] %v6578_v5  ;;  %v6643_v44 = vpop.permute.xlu2 %2298  ;;  %v6647_v13 = vadd.f32 %v6444_v54, %v2011_v4 }
 0x2a8   :  { %v6586_v20 = vpop.f32.mrf.mxu0  ;;  %8190 = vst [vmem:[#allocation7_spill] sm:$0xff] %v6593_v48 }
 0x2a9   :  { %8188 = vst [vmem:[#allocation72_spill] sm:$0xff] %v6586_v20  ;;  %v1788_v20 = vadd.f32 %v6425_v19, %v1566_v24  ;;  %v1790_v24 = vadd.f32 %v6450_v9, %v1568_v14  ;;  %v6641_v9 = vadd.f32 %v6414_v56, %v6412_v43  ;;  %v1352_v43 = vadd.f32 %v6189_v60, %v6187_v45  ;;  %v6658_v56 = vpop.f32.mrf.mxu1 }
 0x2aa   :  { %8199 = vst [vmem:[#allocation11_spill] sm:$0xff] %v6643_v44  ;;  %v1353_v14 = vadd.f32 %v6202_v63, %v6200_v17  ;;  %v2383_v45 = vmul.f32 %v6584_v18, %v6647_v13  ;;  %v1354_v17 = vadd.f32 %v6215_v39, %v6213_v10 }
 0x2ab   :  { %v2010_v19 = vadd.f32 %v6427_v31, %v1788_v20  ;;  %v1571_v31 = vadd.f32 %v6423_v42, %v1349_v11  ;;  %v2012_v50 = vadd.f32 %v6452_v46, %v1790_v24  ;;  %v2013_v42 = vadd.f32 %v6465_v32, %v1791_v26  ;;  %v6651_v20 = vpop.permute.xlu1 %2293  ;;  %v8203_v11 = vld [vmem:[#allocation40_spill] sm:$0xff] }
 0x2ac   :  { %8200 = vst [vmem:[#allocation74_spill] sm:$0xff] %v6651_v20  ;;  %v2014_v32 = vadd.f32 %v6477_v58, %v1792_v62  ;;  %v2381_v15 = vmul.f32 %v6570_v7, %v6641_v9  ;;  %v1574_v58 = vadd.f32 %v6469_v0, %v1352_v43  ;;  %v8202_v0 = vld [vmem:[#allocation12_spill] sm:$0xff]  ;;  %v8213_v43 = vld [vmem:[#allocation38_spill] sm:$0xff] }
 0x2ad   :  { %v6595_v5 = vpop.f32.mrf.mxu2  ;;  %v6635_v61 = vadd.f32 %v6429_v16, %v2010_v19  ;;  %v1793_v16 = vadd.f32 %v6487_v27, %v1571_v31  ;;  %v6663_v54 = vadd.f32 %v6456_v3, %v2012_v50  ;;  %v1794_v27 = vadd.f32 %v6497_v41, %v1572_v28  ;;  %v8211_v50 = vld [vmem:[#allocation44_spill] sm:$0xff] }
 0x2ae   :  { %v6597_v6 = vpop.f32.mrf.mxu3  ;;  %v6625_v36 = vpop.permute.xlu0 %2288  ;;  %v6674_v60 = vadd.f32 %v6467_v59, %v2013_v42  ;;  %v1795_v3 = vadd.f32 %v6508_v49, %v1573_v52  ;;  %v6690_v40 = vadd.f32 %v6479_v21, %v2014_v32  ;;  %v1575_v49 = vadd.f32 %v6485_v37, %v1353_v14  ;;  %v8206_v21 = vld [vmem:[#allocation37_spill] sm:$0xff]  ;;  %v8208_v37 = vld [vmem:[#allocation35_spill] sm:$0xff] }
 0x2af   :  { %8191 = vst [vmem:[#allocation73_spill] sm:$0xff] %v6597_v6  ;;  %v2382_v33 = vmul.f32 %v6593_v48, %v6635_v61  ;;  %v2015_v38 = vadd.f32 %v6489_v35, %v1793_v16  ;;  %v2384_v59 = vmul.f32 %v6580_v53, %v6663_v54  ;;  %v2016_v35 = vadd.f32 %v6499_v22, %v1794_v27  ;;  %v6697_v39 = vpop.permute.xlu2 %2313  ;;  %v8212_v16 = vld [vmem:[#allocation36_spill] sm:$0xff]  ;;  %v8214_v32 = vld [vmem:[#allocation15_spill] sm:$0xff] }
 0x2b0   :  { %v6613_v6 = vpop.f32.mrf.mxu0  ;;  %8198 = vst [vmem:[#allocation10_spill] sm:$0xff] %v6625_v36  ;;  %v1355_v2 = vadd.f32 %v8202_v0, %v6226_v55  ;;  %v1796_v10 = vadd.f32 %v8203_v11, %v1574_v58  ;;  %v2385_v24 = vmul.f32 %v6611_v51, %v6674_v60  ;;  %v2017_v23 = vadd.f32 %v8206_v21, %v1795_v3  ;;  %v8209_v55 = vld [vmem:[#allocation13_spill] sm:$0xff]  ;;  %v8215_v27 = vld [vmem:[#allocation16_spill] sm:$0xff]  ;;  %v8220_v0 = vld [vmem:[#allocation43_spill] sm:$0xff] }
 0x2b1   :  { %v2406_v47 = vadd.f32 %v2382_v33, %v2381_v15  ;;  %8204 = vst [vmem:[#allocation12_spill] sm:$0xff] %v6697_v39  ;;  %v6702_v12 = vadd.f32 %v8205_v8, %v2015_v38  ;;  %v1576_v26 = vadd.f32 %v8208_v37, %v1354_v17  ;;  %v1356_v31 = vadd.f32 %v8210_v34, %v8209_v55  ;;  %v8216_v15 = vld [vmem:[#allocation41_spill] sm:$0xff]  ;;  %v8217_v38 = vld [vmem:[#allocation48_spill] sm:$0xff]  ;;  %v6723_v58 = vpop.f32.mrf.mxu1  ;;  %v8224_v37 = vld [vmem:[#allocation51_spill] sm:$0xff] }
 0x2b2   :  { %v1797_v62 = vadd.f32 %v8211_v50, %v1575_v49  ;;  %v2386_v42 = vmul.f32 %v6605_v1, %v6690_v40  ;;  %v6716_v52 = vadd.f32 %v8212_v16, %v2016_v35  ;;  %v1577_v33 = vadd.f32 %v8213_v43, %v1355_v2  ;;  %v8221_v11 = vld [vmem:[#allocation17_spill] sm:$0xff]  ;;  %v8225_v34 = vld [vmem:[#allocation19_spill] sm:$0xff]  ;;  %v8226_v50 = vld [vmem:[#allocation20_spill] sm:$0xff] }
 0x2b3   :  { %v2407_v19 = vadd.f32 %v2406_v47, %v2383_v45  ;;  %v6705_v4 = vpop.permute.xlu1 %2308  ;;  %v1357_v14 = vadd.f32 %v8215_v27, %v8214_v32  ;;  %v2018_v45 = vadd.f32 %v8216_v15, %v1796_v10  ;;  %v1798_v3 = vadd.f32 %v8217_v38, %v1576_v26  ;;  %v8223_v21 = vld [vmem:[#allocation45_spill] sm:$0xff]  ;;  %v8227_v43 = vld [vmem:[#allocation47_spill] sm:$0xff]  ;;  %v8228_v32 = vld [vmem:[#allocation42_spill] sm:$0xff] }
 0x2b4   :  { %8207 = vst [vmem:[#allocation40_spill] sm:$0xff] %v6705_v4  ;;  %v2387_v47 = vmul.f32 %v6625_v36, %v6702_v12  ;;  %v1578_v2 = vadd.f32 %v8220_v0, %v1356_v31  ;;  %v2019_v10 = vadd.f32 %v8223_v21, %v1797_v62  ;;  %v1799_v26 = vadd.f32 %v8224_v37, %v1577_v33  ;;  %v8230_v15 = vld [vmem:[#allocation49_spill] sm:$0xff]  ;;  %v8231_v38 = vld [vmem:[#allocation55_spill] sm:$0xff] }
 0x2b5   :  { %v6629_v30 = vpop.f32.mrf.mxu2  ;;  %v2408_v28 = vadd.f32 %v2407_v19, %v2384_v59  ;;  %v8218_v59 = vld [vmem:[#allocation39_spill] sm:$0xff]  ;;  %v8222_v19 = vld [vmem:[#allocation18_spill] sm:$0xff]  ;;  %v2388_v16 = vmul.f32 %v6651_v20, %v6716_v52  ;;  %v1579_v31 = vadd.f32 %v8227_v43, %v1357_v14  ;;  %v6747_v27 = vadd.f32 %v8228_v32, %v2018_v45  ;;  %v8237_v45 = vld [vmem:[#allocation52_spill] sm:$0xff] }
 0x2b6   :  { %v6631_v25 = vpop.f32.mrf.mxu3  ;;  %v6678_v29 = vpop.permute.xlu0 %2303  ;;  %v6728_v49 = vadd.f32 %v8218_v59, %v2017_v23  ;;  %v1358_v8 = vadd.f32 %v8222_v19, %v8221_v11  ;;  %v2020_v62 = vadd.f32 %v8230_v15, %v1798_v3  ;;  %v1800_v33 = vadd.f32 %v8231_v38, %v1578_v2  ;;  %v8235_v14 = vld [vmem:[#allocation46_spill] sm:$0xff]  ;;  %v8238_v3 = vld [vmem:[#allocation59_spill] sm:$0xff]  ;;  %v8239_v2 = vld [vmem:[#allocation57_spill] sm:$0xff] }
 0x2b7   :  { %8201 = vst [vmem:[#allocation75_spill] sm:$0xff] %v6678_v29  ;;  %v2409_v17 = vadd.f32 %v2408_v28, %v2385_v24  ;;  %v1359_v28 = vadd.f32 %v8226_v50, %v8225_v34  ;;  %v6751_v59 = vpop.permute.xlu2 %2328  ;;  %v6761_v37 = vadd.f32 %v8235_v14, %v2019_v10  ;;  %v2021_v34 = vadd.f32 %v8237_v45, %v1799_v26  ;;  %v8240_v32 = vld [vmem:[#allocation21_spill] sm:$0xff]  ;;  %v8244_v10 = vld [vmem:[#allocation63_spill] sm:$0xff]  ;;  %v8246_v26 = vld [vmem:[#allocation24_spill] sm:$0xff] }
 0x2b8   :  { %v6653_v46 = vpop.f32.mrf.mxu0  ;;  %8229 = vst [vmem:[#allocation37_spill] sm:$0xff] %v6747_v27  ;;  %v2389_v11 = vmul.f32 %v6643_v44, %v6728_v49  ;;  %v1801_v50 = vadd.f32 %v8238_v3, %v1579_v31  ;;  %v2390_v38 = vmul.f32 %v6678_v29, %v6747_v27  ;;  %v8242_v44 = vld [vmem:[#allocation50_spill] sm:$0xff]  ;;  %v8245_v36 = vld [vmem:[#allocation23_spill] sm:$0xff] }
 0x2b9   :  { %v2410_v23 = vadd.f32 %v2409_v17, %v2386_v42  ;;  %8232 = vst [vmem:[#allocation35_spill] sm:$0xff] %v6751_v59  ;;  %v8234_v17 = vld [vmem:[#allocation53_spill] sm:$0xff]  ;;  %v1581_v43 = vadd.f32 %v8239_v2, %v1359_v28  ;;  %v6771_v20 = vadd.f32 %v8242_v44, %v2020_v62  ;;  %v1361_v45 = vadd.f32 %v8246_v26, %v8245_v36  ;;  %v8249_v2 = vld [vmem:[#allocation60_spill] sm:$0xff]  ;;  %v8253_v29 = vld [vmem:[#allocation26_spill] sm:$0xff] }
 0x2ba   :  { %v1580_v21 = vadd.f32 %v8234_v17, %v1358_v8  ;;  %8236 = vst [vmem:[#allocation14_spill] sm:$0xff] %v6761_v37  ;;  %v8243_v8 = vld [vmem:[#allocation56_spill] sm:$0xff]  ;;  %v2391_v28 = vmul.f32 %v6705_v4, %v6761_v37  ;;  %v8254_v4 = vld [vmem:[#allocation58_spill] sm:$0xff] }
 0x2bb   :  { %v2411_v0 = vadd.f32 %v2410_v23, %v2387_v47  ;;  %v6755_v19 = vpop.permute.xlu1 %2323  ;;  %v8241_v47 = vld [vmem:[#allocation22_spill] sm:$0xff]  ;;  %v2022_v17 = vadd.f32 %v8243_v8, %v1800_v33  ;;  %v8250_v44 = vld [vmem:[#allocation68_spill] sm:$0xff]  ;;  %v2392_v26 = vmul.f32 %v6697_v39, %v6771_v20 }
 0x2bc   :  { %8233 = vst [vmem:[#allocation13_spill] sm:$0xff] %v6755_v19  ;;  %v1360_v23 = vadd.f32 %v8241_v47, %v8240_v32  ;;  %v1802_v14 = vadd.f32 %v8244_v10, %v1580_v21  ;;  %v2023_v32 = vadd.f32 %v8249_v2, %v1801_v50  ;;  %v1803_v62 = vadd.f32 %v8250_v44, %v1581_v43  ;;  %v8251_v8 = vld [vmem:[#allocation62_spill] sm:$0xff]  ;;  %v8252_v10 = vld [vmem:[#allocation25_spill] sm:$0xff]  ;;  %v8256_v50 = vld [vmem:[#allocation67_spill] sm:$0xff] }
 0x2bd   :  { %v6683_v63 = vpop.f32.mrf.mxu2  ;;  %v2412_v15 = vadd.f32 %v2411_v0, %v2388_v16  ;;  %v8248_v16 = vld [vmem:[#allocation54_spill] sm:$0xff]  ;;  %v1362_v36 = vadd.f32 %v8253_v29, %v8252_v10  ;;  %v6792_v37 = vadd.f32 %v8254_v4, %v2022_v17  ;;  %v1583_v2 = vadd.f32 %v8256_v50, %v1361_v45  ;;  %v8257_v43 = vld [vmem:[#allocation27_spill] sm:$0xff]  ;;  %v8258_v44 = vld [vmem:[#allocation28_spill] sm:$0xff] }
 0x2be   :  { %v6685_v41 = vpop.f32.mrf.mxu3  ;;  %v6730_v35 = vpop.permute.xlu0 %2318  ;;  %v6782_v0 = vadd.f32 %v8248_v16, %v2021_v34  ;;  %v1582_v21 = vadd.f32 %v8251_v8, %v1360_v23  ;;  %v8255_v34 = vld [vmem:[#allocation64_spill] sm:$0xff]  ;;  %v1363_v1 = vadd.f32 %v8258_v44, %v8257_v43  ;;  %v8261_v4 = vld [vmem:[#allocation69_spill] sm:$0xff] }
 0x2bf   :  { %8219 = vst [vmem:[#allocation34_spill] sm:$0xff] %v6730_v35  ;;  %v2413_v31 = vadd.f32 %v2412_v15, %v2389_v11  ;;  %v1556_v11 = vpop.f32.mrf.mxu1  ;;  %v2024_v16 = vadd.f32 %v8255_v34, %v1802_v14  ;;  %v2025_v17 = vadd.f32 %v8261_v4, %v1803_v62  ;;  %v1584_v14 = vadd.f32 %v6603_v57, %v1362_v36  ;;  %v8262_v45 = vld [vmem:[#allocation29_spill] sm:$0xff]  ;;  %v8263_v34 = vld [vmem:[#allocation30_spill] sm:$0xff]  ;;  %v6810_v43 = vpop.permute.xlu2 %2343 }
 0x2c0   :  { %v6707_v22 = vpop.f32.mrf.mxu0  ;;  %v1804_v23 = vadd.f32 %v6595_v5, %v1582_v21  ;;  %v1364_v50 = vadd.f32 %v8263_v34, %v8262_v45  ;;  %8264 = vst [vmem:[#allocation38_spill] sm:$0xff] %v6810_v43  ;;  %v1805_v44 = vadd.f32 %v6629_v30, %v1583_v2  ;;  %v8265_v5 = vld [vmem:[#allocation4_spill] sm:$0xff]  ;;  %v8266_v21 = vld [vmem:[#allocation31_spill] sm:$0xff]  ;;  %v1585_v62 = vadd.f32 %v6658_v56, %v1363_v1  ;;  %v8268_v57 = vld [vmem:[#allocation73_spill] sm:$0xff] }
 0x2c1   :  { %v2414_v15 = vadd.f32 %v2413_v31, %v2390_v38  ;;  %v2393_v38 = vmul.f32 %v6730_v35, %v6782_v0  ;;  %v8260_v31 = vld [vmem:[#allocation61_spill] sm:$0xff]  ;;  %v2394_v35 = vmul.f32 %v6755_v19, %v6792_v37  ;;  %v1806_v4 = vadd.f32 %v6683_v63, %v1584_v14  ;;  %v8269_v2 = vld [vmem:[#allocation72_spill] sm:$0xff] }
 0x2c2   :  { %v6804_v10 = vadd.f32 %v8260_v31, %v2023_v32  ;;  %v8267_v32 = vld [vmem:[#allocation66_spill] sm:$0xff]  ;;  %v2026_v36 = vadd.f32 %v8268_v57, %v1804_v23  ;;  %v6826_v34 = vadd.f32 %v8269_v2, %v2025_v17  ;;  %v8272_v14 = vld [vmem:[#allocation32_spill] sm:$0xff] }
 0x2c3   :  { %v6798_v27 = vpop.permute.xlu1 %2338  ;;  %v2415_v8 = vadd.f32 %v2414_v15, %v2391_v28  ;;  %v1365_v28 = vadd.f32 %v8266_v21, %v8265_v5  ;;  %v6818_v31 = vadd.f32 %v8267_v32, %v2024_v16  ;;  %v1586_v5 = vadd.f32 %v6723_v58, %v1364_v50 }
 0x2c4   :  { %8259 = vst [vmem:[#allocation36_spill] sm:$0xff] %v6798_v27  ;;  %v2395_v30 = vmul.f32 %v6751_v59, %v6804_v10  ;;  %v2027_v16 = vadd.f32 %v6631_v25, %v1805_v44  ;;  %v6838_v17 = vadd.f32 %v6613_v6, %v2026_v36  ;;  %v2028_v32 = vadd.f32 %v6685_v41, %v1806_v4 }
 0x2c5   :  { %v6737_v55 = vpop.f32.mrf.mxu2  ;;  %v2416_v15 = vadd.f32 %v2415_v8, %v2392_v26  ;;  %v1587_v1 = vadd.f32 %v1556_v11, %v1365_v28 }
 0x2c6   :  { %v6739_v24 = vpop.f32.mrf.mxu3  ;;  %v6777_v3 = vpop.permute.xlu0 %2333  ;;  %v1807_v21 = vadd.f32 %v6737_v55, %v1585_v62  ;;  %v6846_v11 = vadd.f32 %v6653_v46, %v2027_v16  ;;  %v2398_v41 = vmul.f32 %v6810_v43, %v6838_v17  ;;  %v8275_v16 = vld [vmem:[#allocation6_spill] sm:$0xff] }
 0x2c7   :  { %8247 = vst [vmem:[#allocation44_spill] sm:$0xff] %v6777_v3  ;;  %v2417_v45 = vadd.f32 %v2416_v15, %v2393_v38  ;;  %v2396_v63 = vmul.f32 %v6777_v3, %v6818_v31  ;;  %v8271_v38 = vld [vmem:[#allocation5_spill] sm:$0xff]  ;;  %v1559_v25 = vpop.f32.mrf.mxu1  ;;  %v6849_v36 = vpop.permute.xlu2 %2358 }
 0x2c8   :  { %v6757_v42 = vpop.f32.mrf.mxu0  ;;  %v1366_v15 = vadd.f32 %v8272_v14, %v8271_v38  ;;  %v2029_v28 = vadd.f32 %v6739_v24, %v1807_v21  ;;  %8274 = vst [vmem:[#allocation41_spill] sm:$0xff] %v6849_v36  ;;  %v8276_v21 = vld [vmem:[#allocation33_spill] sm:$0xff] }
 0x2c9   :  { %v2418_v56 = vadd.f32 %v2417_v45, %v2394_v35  ;;  %v2397_v35 = vmul.f32 %v6798_v27, %v6826_v34 }
 0x2ca   :  { %v1588_v6 = vadd.f32 %v1559_v25, %v1366_v15  ;;  %v6859_v24 = vadd.f32 %v6757_v42, %v2029_v28 }
 0x2cb   :  { %v2419_v44 = vadd.f32 %v2418_v56, %v2395_v30  ;;  %v6843_v55 = vpop.permute.xlu1 %2353 }
 0x2cc   :  { %8273 = vst [vmem:[#allocation16_spill] sm:$0xff] %v6843_v55  ;;  %v2401_v42 = vmul.f32 %v6849_v36, %v6859_v24 }
 0x2cd   :  { %v1775_v47 = vpop.f32.mrf.mxu2  ;;  %v2420_v57 = vadd.f32 %v2419_v44, %v2396_v63 }
 0x2ce   :  { %v1997_v33 = vpop.f32.mrf.mxu3  ;;  %v6833_v23 = vpop.permute.xlu0 %2348  ;;  %v1808_v58 = vadd.f32 %v1775_v47, %v1586_v5  ;;  %v6854_v47 = vadd.f32 %v6707_v22, %v2028_v32 }
 0x2cf   :  { %8270 = vst [vmem:[#allocation15_spill] sm:$0xff] %v6833_v23  ;;  %v2421_v45 = vadd.f32 %v2420_v57, %v2397_v35  ;;  %v2399_v46 = vmul.f32 %v6833_v23, %v6846_v11  ;;  %v1562_v14 = vpop.f32.mrf.mxu1 }
 0x2d0   :  { %v2219_v29 = vpop.f32.mrf.mxu0  ;;  %v2030_v4 = vadd.f32 %v1997_v33, %v1808_v58  ;;  %v2400_v22 = vmul.f32 %v6843_v55, %v6854_v47 }
 0x2d1   :  { %v2422_v56 = vadd.f32 %v2421_v45, %v2398_v41 }
 0x2d2   :  { %v6865_v63 = vadd.f32 %v2219_v29, %v2030_v4  ;;  %v6881_v4 = vpop.permute.xlu2 %2373 }
 0x2d3   :  { %v2423_v32 = vadd.f32 %v2422_v56, %v2399_v46  ;;  %v6873_v25 = vpop.permute.xlu1 %2368  ;;  %8279 = vst [vmem:[#allocation43_spill] sm:$0xff] %v6881_v4 }
 0x2d4   :  { %8278 = vst [vmem:[#allocation39_spill] sm:$0xff] %v6873_v25 }
 0x2d5   :  { %v1778_v26 = vpop.f32.mrf.mxu2  ;;  %v2424_v44 = vadd.f32 %v2423_v32, %v2400_v22 }
 0x2d6   :  { %v2000_v8 = vpop.f32.mrf.mxu3  ;;  %v1809_v62 = vadd.f32 %v1778_v26, %v1587_v1  ;;  %v1367_v1 = vadd.f32 %v8276_v21, %v8275_v16  ;;  %v6867_v15 = vpop.permute.xlu0 %2363 }
 0x2d7   :  { %8277 = vst [vmem:[#allocation48_spill] sm:$0xff] %v6867_v15  ;;  %v2402_v35 = vmul.f32 %v6867_v15, %v6865_v63  ;;  %v2425_v57 = vadd.f32 %v2424_v44, %v2401_v42 }
 0x2d8   :  { %v2222_v50 = vpop.f32.mrf.mxu0  ;;  %v2031_v26 = vadd.f32 %v2000_v8, %v1809_v62  ;;  %v1589_v58 = vadd.f32 %v1562_v14, %v1367_v1 }
 0x2da   :  { %v6871_v8 = vadd.f32 %v2222_v50, %v2031_v26  ;;  %v2426_v50 = vadd.f32 %v2425_v57, %v2402_v35 }
 0x2dd   :  { %v1781_v30 = vpop.f32.mrf.mxu2 }
 0x2de   :  { %v2003_v2 = vpop.f32.mrf.mxu3  ;;  %v1810_v5 = vadd.f32 %v1781_v30, %v1588_v6  ;;  %v2403_v6 = vmul.f32 %v6873_v25, %v6871_v8 }
 0x2e0   :  { %v2032_v33 = vadd.f32 %v2003_v2, %v1810_v5  ;;  %v2225_v38 = vpop.f32.mrf.mxu0  ;;  %v2427_v46 = vadd.f32 %v2426_v50, %v2403_v6  ;;  %v6887_v5 = vpop.permute.xlu0 %2378 }
 0x2e1   :  { %8280 = vst [vmem:[#allocation17_spill] sm:$0xff] %v6887_v5 }
 0x2e2   :  { %v6877_v29 = vadd.f32 %v2225_v38, %v2032_v33 }
 0x2e4   :  { %v2404_v45 = vmul.f32 %v6881_v4, %v6877_v29 }
 0x2e5   :  { %v1784_v28 = vpop.f32.mrf.mxu2 }
 0x2e6   :  { %v2006_v62 = vpop.f32.mrf.mxu3  ;;  %v1811_v41 = vadd.f32 %v1784_v28, %v1589_v58  ;;  %v2428_v16 = vadd.f32 %v2427_v46, %v2404_v45 }
 0x2e8   :  { %v2033_v30 = vadd.f32 %v2006_v62, %v1811_v41  ;;  %v2228_v2 = vpop.f32.mrf.mxu0 }
 0x2ea   :  { %v6885_v26 = vadd.f32 %v2228_v2, %v2033_v30 }
 0x2ec   :  { %v2405_v21 = vmul.f32 %v6887_v5, %v6885_v26 }
 0x2ee   :  { %v2429_v1 = vadd.f32 %v2428_v16, %v2405_v21 }
 0x2f0   :  { %v2430_v56 = vrot.slane %v2429_v1, 4 }
 0x2f2   :  { %v2431_v22 = vadd.f32 %v2430_v56, %v2429_v1 }
 0x2f4   :  { %v2432_v33 = vrot.slane %v2431_v22, 2 }
 0x2f6   :  { %v2433_v38 = vadd.f32 %v2432_v33, %v2431_v22 }
 0x2f8   :  { %v2434_v14 = vrot.slane %v2433_v38, 1 }
 0x2fa   :  { %v2435_v32 = vadd.f32 %v2434_v14, %v2433_v38 }
 0x2fc   :  { %v6891_v42 = vmul.f32 0.0078125, %v2435_v32 }
 0x2fe   :  { %v2437_v58 = vsub.f32 %v6641_v9, %v6891_v42  ;;  %v2438_v44 = vsub.f32 %v6635_v61, %v6891_v42  ;;  %v2439_v35 = vsub.f32 %v6647_v13, %v6891_v42  ;;  %v2440_v57 = vsub.f32 %v6663_v54, %v6891_v42 }
 0x2ff   :  { %v2441_v6 = vsub.f32 %v6674_v60, %v6891_v42  ;;  %v2442_v30 = vsub.f32 %v6690_v40, %v6891_v42  ;;  %v2443_v46 = vsub.f32 %v6702_v12, %v6891_v42  ;;  %v2444_v56 = vsub.f32 %v6716_v52, %v6891_v42 }
 0x300   :  { %v2462_v28 = vmul.f32 %v2437_v58, %v2437_v58  ;;  %v2463_v62 = vmul.f32 %v2438_v44, %v2438_v44  ;;  %v2464_v41 = vmul.f32 %v2439_v35, %v2439_v35  ;;  %v2465_v2 = vmul.f32 %v2440_v57, %v2440_v57  ;;  %v8281_v35 = vld [vmem:[#allocation37_spill] sm:$0xff]  ;;  %v8282_v57 = vld [vmem:[#allocation8_spill] sm:$0xff] }
 0x301   :  { %v2466_v16 = vmul.f32 %v2441_v6, %v2441_v6  ;;  %v2467_v22 = vmul.f32 %v2442_v30, %v2442_v30  ;;  %v2445_v14 = vsub.f32 %v6728_v49, %v6891_v42  ;;  %v2468_v32 = vmul.f32 %v2443_v46, %v2443_v46 }
 0x302   :  { %v2487_v50 = vmul.f32 %v2462_v28, %v6570_v7  ;;  %v2488_v45 = vmul.f32 %v2463_v62, %v6593_v48  ;;  %v2489_v21 = vmul.f32 %v2464_v41, %v6584_v18  ;;  %v2490_v33 = vmul.f32 %v2465_v2, %v6580_v53  ;;  %v8284_v2 = vld [vmem:[#allocation10_spill] sm:$0xff] }
 0x303   :  { %v2491_v58 = vmul.f32 %v2466_v16, %v6611_v51  ;;  %v2446_v28 = vsub.f32 %v8281_v35, %v6891_v42  ;;  %v2469_v62 = vmul.f32 %v2444_v56, %v2444_v56  ;;  %v2492_v6 = vmul.f32 %v2467_v22, %v8282_v57  ;;  %v8285_v16 = vld [vmem:[#allocation74_spill] sm:$0xff]  ;;  %v8286_v22 = vld [vmem:[#allocation11_spill] sm:$0xff] }
 0x304   :  { %v2512_v1 = vadd.f32 %v2488_v45, %v2487_v50  ;;  %v8283_v50 = vld [vmem:[#allocation14_spill] sm:$0xff]  ;;  %v2470_v30 = vmul.f32 %v2445_v14, %v2445_v14  ;;  %v2448_v46 = vsub.f32 %v6771_v20, %v6891_v42  ;;  %v2449_v56 = vsub.f32 %v6782_v0, %v6891_v42 }
 0x305   :  { %v2447_v45 = vsub.f32 %v8283_v50, %v6891_v42  ;;  %v2471_v53 = vmul.f32 %v2446_v28, %v2446_v28  ;;  %v2450_v14 = vsub.f32 %v6792_v37, %v6891_v42  ;;  %v2451_v28 = vsub.f32 %v6804_v10, %v6891_v42 }
 0x306   :  { %v2513_v38 = vadd.f32 %v2512_v1, %v2489_v21  ;;  %v2493_v21 = vmul.f32 %v2468_v32, %v8284_v2  ;;  %v2473_v57 = vmul.f32 %v2448_v46, %v2448_v46  ;;  %v8287_v32 = vld [vmem:[#allocation75_spill] sm:$0xff]  ;;  %v2474_v2 = vmul.f32 %v2449_v56, %v2449_v56 }
 0x307   :  { %v2472_v51 = vmul.f32 %v2447_v45, %v2447_v45  ;;  %v2452_v45 = vsub.f32 %v6818_v31, %v6891_v42  ;;  %v2453_v46 = vsub.f32 %v6826_v34, %v6891_v42  ;;  %v2454_v56 = vsub.f32 %v6838_v17, %v6891_v42 }
 0x308   :  { %v2514_v44 = vadd.f32 %v2513_v38, %v2490_v33  ;;  %v2494_v33 = vmul.f32 %v2469_v62, %v8285_v16  ;;  %v8288_v62 = vld [vmem:[#allocation40_spill] sm:$0xff]  ;;  %v2475_v16 = vmul.f32 %v2450_v14, %v2450_v14  ;;  %v2455_v14 = vsub.f32 %v6846_v11, %v6891_v42 }
 0x30a   :  { %v2515_v41 = vadd.f32 %v2514_v44, %v2491_v58  ;;  %v2495_v58 = vmul.f32 %v2470_v30, %v8286_v22  ;;  %v2498_v30 = vmul.f32 %v2473_v57, %v6697_v39 }
 0x30c   :  { %v2516_v1 = vadd.f32 %v2515_v41, %v2492_v6  ;;  %v2496_v6 = vmul.f32 %v2471_v53, %v8287_v32  ;;  %v8289_v53 = vld [vmem:[#allocation34_spill] sm:$0xff]  ;;  %v2477_v32 = vmul.f32 %v2452_v45, %v2452_v45  ;;  %v2457_v45 = vsub.f32 %v6859_v24, %v6891_v42 }
 0x30e   :  { %v2517_v38 = vadd.f32 %v2516_v1, %v2493_v21  ;;  %v2497_v21 = vmul.f32 %v2472_v51, %v8288_v62  ;;  %v2500_v51 = vmul.f32 %v2475_v16, %v6755_v19 }
 0x310   :  { %v2518_v44 = vadd.f32 %v2517_v38, %v2494_v33  ;;  %v2476_v38 = vmul.f32 %v2451_v28, %v2451_v28  ;;  %v2456_v28 = vsub.f32 %v6854_v47, %v6891_v42 }
 0x312   :  { %v2519_v41 = vadd.f32 %v2518_v44, %v2495_v58  ;;  %v2499_v58 = vmul.f32 %v2474_v2, %v8289_v53  ;;  %v2501_v57 = vmul.f32 %v2476_v38, %v6751_v59  ;;  %v2502_v2 = vmul.f32 %v2477_v32, %v6777_v3 }
 0x314   :  { %v2520_v1 = vadd.f32 %v2519_v41, %v2496_v6  ;;  %v2478_v41 = vmul.f32 %v2453_v46, %v2453_v46  ;;  %v2458_v46 = vsub.f32 %v6865_v63, %v6891_v42 }
 0x316   :  { %v2521_v33 = vadd.f32 %v2520_v1, %v2497_v21  ;;  %v2479_v1 = vmul.f32 %v2454_v56, %v2454_v56  ;;  %v2503_v16 = vmul.f32 %v2478_v41, %v6798_v27  ;;  %v2459_v56 = vsub.f32 %v6871_v8, %v6891_v42 }
 0x318   :  { %v2522_v44 = vadd.f32 %v2521_v33, %v2498_v30  ;;  %v2480_v33 = vmul.f32 %v2455_v14, %v2455_v14  ;;  %v2504_v38 = vmul.f32 %v2479_v1, %v6810_v43  ;;  %v2460_v14 = vsub.f32 %v6877_v29, %v6891_v42 }
 0x31a   :  { %v2523_v6 = vadd.f32 %v2522_v44, %v2499_v58  ;;  %v2481_v44 = vmul.f32 %v2456_v28, %v2456_v28  ;;  %v2505_v32 = vmul.f32 %v2480_v33, %v6833_v23  ;;  %v2461_v28 = vsub.f32 %v6885_v26, %v6891_v42 }
 0x31c   :  { %v2524_v21 = vadd.f32 %v2523_v6, %v2500_v51  ;;  %v2482_v6 = vmul.f32 %v2457_v45, %v2457_v45  ;;  %v2506_v41 = vmul.f32 %v2481_v44, %v6843_v55  ;;  %v2486_v33 = vmul.f32 %v2461_v28, %v2461_v28 }
 0x31e   :  { %v2525_v30 = vadd.f32 %v2524_v21, %v2501_v57  ;;  %v2483_v21 = vmul.f32 %v2458_v46, %v2458_v46  ;;  %v2507_v1 = vmul.f32 %v2482_v6, %v6849_v36  ;;  %v2511_v44 = vmul.f32 %v2486_v33, %v6887_v5 }
 0x320   :  { %v2526_v58 = vadd.f32 %v2525_v30, %v2502_v2  ;;  %v2484_v30 = vmul.f32 %v2459_v56, %v2459_v56  ;;  %v2508_v45 = vmul.f32 %v2483_v21, %v6867_v15 }
 0x322   :  { %v2527_v51 = vadd.f32 %v2526_v58, %v2503_v16  ;;  %v2485_v58 = vmul.f32 %v2460_v14, %v2460_v14 }
 0x324   :  { %v2528_v57 = vadd.f32 %v2527_v51, %v2504_v38  ;;  %v2509_v38 = vmul.f32 %v2484_v30, %v6873_v25  ;;  %v2510_v46 = vmul.f32 %v2485_v58, %v6881_v4  ;;  %v5245_v58 = vld [vmem:[%s8022_s5 + $0x18] sm:$0xff] }
 0x325   :  { %3443 = vmatpush.msrb.mxu0 %v5245_v58 }
 0x326   :  { %v2529_v2 = vadd.f32 %v2528_v57, %v2505_v32 }
 0x328   :  { %v2530_v16 = vadd.f32 %v2529_v2, %v2506_v41  ;;  %v8290_v41 = vmov 0.0   ;;  %v5219_v2 = vld [vmem:[%s8022_s5 + $0x10] sm:$0xff] }
 0x329   :  { %2689 = vst.msk [vmem:[#allocation3 + $0xb8] sm:$0xff] %vm2665_vm3, %v8290_v41  ;;  %3224 = vmatpush.msrb.mxu3 %v5219_v2 }
 0x32a   :  { %v2531_v43 = vadd.f32 %v2530_v16, %v2507_v1  ;;  %2690 = vst.msk [vmem:[#allocation3 + $0xc0] sm:$0xff] %vm2665_vm3, %v8290_v41 }
 0x32b   :  { %2691 = vst.msk [vmem:[#allocation3 + $0xc8] sm:$0xff] %vm2665_vm3, %v8290_v41 }
 0x32c   :  { %v2532_v51 = vadd.f32 %v2531_v43, %v2508_v45  ;;  %2692 = vst.msk [vmem:[#allocation3 + $0xd0] sm:$0xff] %vm2665_vm3, %v8290_v41  ;;  %v5271_v45 = vld [vmem:[%s8022_s5 + $0x20] sm:$0xff] }
 0x32d   :  { %2666 = vst.msk [vmem:[#allocation3] sm:$0xff] %vm2665_vm3, %v8290_v41  ;;  %3662 = vmatpush.msrb.mxu1 %v5271_v45 }
 0x32e   :  { %v2533_v23 = vadd.f32 %v2532_v51, %v2509_v38  ;;  %2667 = vst.msk [vmem:[#allocation3 + $0x8] sm:$0xff] %vm2665_vm3, %v8290_v41 }
 0x32f   :  { %2668 = vst.msk [vmem:[#allocation3 + $0x10] sm:$0xff] %vm2665_vm3, %v8290_v41 }
 0x330   :  { %v2534_v32 = vadd.f32 %v2533_v23, %v2510_v46  ;;  %2669 = vst.msk [vmem:[#allocation3 + $0x18] sm:$0xff] %vm2665_vm3, %v8290_v41 }
 0x331   :  { %2670 = vst.msk [vmem:[#allocation3 + $0x20] sm:$0xff] %vm2665_vm3, %v8290_v41 }
 0x332   :  { %v2535_v57 = vadd.f32 %v2534_v32, %v2511_v44  ;;  %2671 = vst.msk [vmem:[#allocation3 + $0x28] sm:$0xff] %vm2665_vm3, %v8290_v41  ;;  %v2543_v32 = vld [vmem:[%s8023_s3] sm:$0x1] }
 0x333   :  { %2672 = vst.msk [vmem:[#allocation3 + $0x30] sm:$0xff] %vm2665_vm3, %v8290_v41 }
 0x334   :  { %v2536_v55 = vrot.slane %v2535_v57, 4  ;;  %2673 = vst.msk [vmem:[#allocation3 + $0x38] sm:$0xff] %vm2665_vm3, %v8290_v41  ;;  %v2720_v30 = vld [vmem:[#allocation3] sm:$0xff] }
 0x335   :  { %2674 = vst.msk [vmem:[#allocation3 + $0x40] sm:$0xff] %vm2665_vm3, %v8290_v41  ;;  %v3107_v1 = vld [vmem:[#allocation3 + $0x2] sm:$0xff] }
 0x336   :  { %v2537_v56 = vadd.f32 %v2536_v55, %v2535_v57  ;;  %v2745_v55 = vld [vmem:[%s8022_s5] sm:$0xff]  ;;  %2675 = vst.msk [vmem:[#allocation3 + $0x48] sm:$0xff] %vm2665_vm3, %v8290_v41  ;;  %5220 = vmatmul.msk.f32.vlgmr.msrb.gmra.mxu3 %vm2665_vm3, %v3107_v1 }
 0x337   :  { %3030 = vmatpush.msrb.mxu2 %v2745_v55  ;;  %v2746_v16 = vld [vmem:[#allocation3 + $0x1] sm:$0xff]  ;;  %2676 = vst.msk [vmem:[#allocation3 + $0x50] sm:$0xff] %vm2665_vm3, %v8290_v41 }
 0x338   :  { %v2538_v6 = vrot.slane %v2537_v56, 2  ;;  %5194 = vmatmul.msk.f32.vlgmr.msrb.gmra.mxu2 %vm2665_vm3, %v2720_v30  ;;  %5169 = vmatmul.msk.f32.vlgmr.msra.gmra.mxu1 %vm2665_vm3, %v2746_v16  ;;  %2677 = vst.msk [vmem:[#allocation3 + $0x58] sm:$0xff] %vm2665_vm3, %v8290_v41 }
 0x339   :  { %2678 = vst.msk [vmem:[#allocation3 + $0x60] sm:$0xff] %vm2665_vm3, %v8290_v41 }
 0x33a   :  { %v2539_v14 = vadd.f32 %v2538_v6, %v2537_v56  ;;  %2679 = vst.msk [vmem:[#allocation3 + $0x68] sm:$0xff] %vm2665_vm3, %v8290_v41 }
 0x33b   :  { %2680 = vst.msk [vmem:[#allocation3 + $0x70] sm:$0xff] %vm2665_vm3, %v8290_v41 }
 0x33c   :  { %v2540_v43 = vrot.slane %v2539_v14, 1  ;;  %2681 = vst.msk [vmem:[#allocation3 + $0x78] sm:$0xff] %vm2665_vm3, %v8290_v41 }
 0x33d   :  { %2682 = vst.msk [vmem:[#allocation3 + $0x80] sm:$0xff] %vm2665_vm3, %v8290_v41 }
 0x33e   :  { %v2541_v23 = vadd.f32 %v2540_v43, %v2539_v14  ;;  %2683 = vst.msk [vmem:[#allocation3 + $0x88] sm:$0xff] %vm2665_vm3, %v8290_v41  ;;  %v2556_v14 = vld [vmem:[%s8024_s4] sm:$0x1] }
 0x33f   :  { %2684 = vst.msk [vmem:[#allocation3 + $0x90] sm:$0xff] %vm2665_vm3, %v8290_v41 }
 0x340   :  { %v2542_v21 = vmul.f32 0.0078125, %v2541_v23  ;;  %2685 = vst.msk [vmem:[#allocation3 + $0x98] sm:$0xff] %vm2665_vm3, %v8290_v41 }
 0x341   :  { %2686 = vst.msk [vmem:[#allocation3 + $0xa0] sm:$0xff] %vm2665_vm3, %v8290_v41 }
 0x342   :  { %v2544_v28 = vadd.f32 1e-05, %v2542_v21  ;;  %2687 = vst.msk [vmem:[#allocation3 + $0xa8] sm:$0xff] %vm2665_vm3, %v8290_v41 }
 0x343   :  { %2688 = vst.msk [vmem:[#allocation3 + $0xb0] sm:$0xff] %vm2665_vm3, %v8290_v41 }
 0x344   :  { %5409 = vrsqrt.f32 %v2544_v28  ;;  %vm2551_vm5 = vweird.f32 %v2544_v28  ;;  %2694 = vst.msk [vmem:[#allocation3 + $0xd8] sm:$0x3f] %vm2693_vm7, %v8290_v41 }
 0x34a   :  { %v5410_v33 = vpop.eup %5409 }
 0x34b   :  { %v2546_v38 = vmul.f32 %v5410_v33, %v2544_v28  ;;  %vm2552_vm4 = vweird.f32 %v5410_v33 }
 0x34c   :  { %vm2553_vm6 = vmor %vm2551_vm5, %vm2552_vm4 }
 0x34d   :  { %v2547_v51 = vmul.f32 %v5410_v33, %v2546_v38 }
 0x34f   :  { %v2548_v46 = vmul.f32 0.5, %v2547_v51 }
 0x351   :  { %v2549_v44 = vsub.f32 1.5, %v2548_v46 }
 0x353   :  { %v2550_v57 = vmul.f32 %v5410_v33, %v2549_v44 }
 0x355   :  { %v2554_v56 = vsel %vm2553_vm6, %v5410_v33, %v2550_v57 }
 0x356   :  { %v2555_v6 = vmul.f32 %v2554_v56, %v2543_v32 }
 0x358   :  { %v2557_v43 = vmul.f32 %v2555_v6, %v6891_v42  ;;  %v7044_v23 = vperm.slane %v2555_v6, 0 }
 0x35a   :  { %v2558_v55 = vsub.f32 %v2556_v14, %v2557_v43  ;;  %v2584_v21 = vmul.f32 %v7044_v23, %v6871_v8  ;;  %v2585_v2 = vmul.f32 %v7044_v23, %v6877_v29  ;;  %v2586_v28 = vmul.f32 %v7044_v23, %v6885_v26 }
 0x35b   :  { %v2562_v30 = vmul.f32 %v7044_v23, %v6641_v9  ;;  %v2563_v1 = vmul.f32 %v7044_v23, %v6635_v61  ;;  %v2564_v42 = vmul.f32 %v7044_v23, %v6647_v13  ;;  %v2565_v16 = vmul.f32 %v7044_v23, %v6663_v54 }
 0x35c   :  { %v7060_v58 = vperm.slane %v2558_v55, 0  ;;  %v2566_v8 = vmul.f32 %v7044_v23, %v6674_v60  ;;  %v2567_v29 = vmul.f32 %v7044_v23, %v6690_v40  ;;  %v2568_v9 = vmul.f32 %v7044_v23, %v6702_v12 }
 0x35d   :  { %v2569_v61 = vmul.f32 %v7044_v23, %v6716_v52  ;;  %v2570_v13 = vmul.f32 %v7044_v23, %v6728_v49  ;;  %v2571_v54 = vmul.f32 %v7044_v23, %v8281_v35  ;;  %v2572_v26 = vmul.f32 %v7044_v23, %v8283_v50 }
 0x35e   :  { %v2612_v60 = vadd.f32 %v7060_v58, %v2584_v21  ;;  %v2613_v45 = vadd.f32 %v7060_v58, %v2585_v2  ;;  %v2614_v40 = vadd.f32 %v7060_v58, %v2586_v28  ;;  %v2590_v12 = vadd.f32 %v7060_v58, %v2562_v30  ;;  %v8291_v28 = vld [vmem:[#allocation70_spill] sm:$0xff] }
 0x35f   :  { %v2591_v33 = vadd.f32 %v7060_v58, %v2563_v1  ;;  %v2592_v52 = vadd.f32 %v7060_v58, %v2564_v42  ;;  %v2593_v49 = vadd.f32 %v7060_v58, %v2565_v16  ;;  %v2594_v38 = vadd.f32 %v7060_v58, %v2566_v8  ;;  %v8292_v1 = vld [vmem:[#allocation9_spill] sm:$0xff] }
 0x360   :  { %v2637_v35 = vmax.f32 %v2612_v60, 0.0  ;;  %v2638_v51 = vmax.f32 %v2613_v45, 0.0  ;;  %v2639_v46 = vmax.f32 %v2614_v40, 0.0  ;;  %v2615_v50 = vmax.f32 %v2590_v12, 0.0 }
 0x361   :  { %v2616_v44 = vmax.f32 %v2591_v33, 0.0  ;;  %v2617_v32 = vmax.f32 %v2592_v52, 0.0  ;;  %v2618_v57 = vmax.f32 %v2593_v49, 0.0  ;;  %v2619_v56 = vmax.f32 %v2594_v38, 0.0 }
 0x362   :  { %v2662_v6 = vmul.f32 %v2637_v35, %v6873_v25  ;;  %v2663_v14 = vmul.f32 %v2638_v51, %v6881_v4  ;;  %v2664_v43 = vmul.f32 %v2639_v46, %v6887_v5  ;;  %v2640_v55 = vmul.f32 %v2615_v50, %v6570_v7  ;;  %v8294_v51 = vld [vmem:[#allocation10_spill] sm:$0xff] }
 0x363   :  { %v2641_v21 = vmul.f32 %v2616_v44, %v6593_v48  ;;  %v2642_v2 = vmul.f32 %v2617_v32, %v6584_v18  ;;  %v2643_v30 = vmul.f32 %v2618_v57, %v8291_v28  ;;  %v2644_v42 = vmul.f32 %v2619_v56, %v8292_v1  ;;  %v8295_v46 = vld [vmem:[#allocation74_spill] sm:$0xff] }
 0x364   :  { %2717 = vst.msk [vmem:[#allocation3 + $0xbb] sm:$0xff] %vm2665_vm3, %v2662_v6  ;;  %v2595_v16 = vadd.f32 %v7060_v58, %v2567_v29  ;;  %v2596_v8 = vadd.f32 %v7060_v58, %v2568_v9  ;;  %v2597_v60 = vadd.f32 %v7060_v58, %v2569_v61  ;;  %v2598_v45 = vadd.f32 %v7060_v58, %v2570_v13 }
 0x365   :  { %2718 = vst.msk [vmem:[#allocation3 + $0xc3] sm:$0xff] %vm2665_vm3, %v2663_v14  ;;  %v2599_v40 = vadd.f32 %v7060_v58, %v2571_v54  ;;  %v2600_v12 = vadd.f32 %v7060_v58, %v2572_v26  ;;  %v2573_v33 = vmul.f32 %v7044_v23, %v6771_v20  ;;  %v2574_v52 = vmul.f32 %v7044_v23, %v6782_v0  ;;  %v8293_v20 = vld [vmem:[#allocation8_spill] sm:$0xff] }
 0x366   :  { %2719 = vst.msk [vmem:[#allocation3 + $0xcb] sm:$0xff] %vm2665_vm3, %v2664_v43  ;;  %v2620_v29 = vmax.f32 %v2595_v16, 0.0  ;;  %v2621_v9 = vmax.f32 %v2596_v8, 0.0  ;;  %v2622_v49 = vmax.f32 %v2597_v60, 0.0  ;;  %v2623_v61 = vmax.f32 %v2598_v45, 0.0 }
 0x367   :  { %2695 = vst.msk [vmem:[#allocation3 + $0xb] sm:$0xff] %vm2665_vm3, %v2640_v55  ;;  %v2624_v13 = vmax.f32 %v2599_v40, 0.0  ;;  %v2625_v38 = vmax.f32 %v2600_v12, 0.0  ;;  %v2601_v54 = vadd.f32 %v7060_v58, %v2573_v33  ;;  %v2602_v26 = vadd.f32 %v7060_v58, %v2574_v52  ;;  %v8296_v55 = vld [vmem:[#allocation75_spill] sm:$0xff] }
 0x368   :  { %2696 = vst.msk [vmem:[#allocation3 + $0x13] sm:$0xff] %vm2665_vm3, %v2641_v21  ;;  %v2645_v35 = vmul.f32 %v2620_v29, %v8293_v20  ;;  %v2646_v0 = vmul.f32 %v2621_v9, %v8294_v51  ;;  %v2647_v50 = vmul.f32 %v2622_v49, %v8295_v46  ;;  %v2648_v44 = vmul.f32 %v2623_v61, %v8286_v22 }
 0x369   :  { %2697 = vst.msk [vmem:[#allocation3 + $0x1b] sm:$0xff] %vm2665_vm3, %v2642_v2  ;;  %v2626_v32 = vmax.f32 %v2601_v54, 0.0  ;;  %v2627_v57 = vmax.f32 %v2602_v26, 0.0  ;;  %v2575_v56 = vmul.f32 %v7044_v23, %v6792_v37  ;;  %v2576_v6 = vmul.f32 %v7044_v23, %v6804_v10 }
 0x36a   :  { %2698 = vst.msk [vmem:[#allocation3 + $0x23] sm:$0xff] %vm2665_vm3, %v2643_v30  ;;  %v2577_v14 = vmul.f32 %v7044_v23, %v6818_v31  ;;  %v2578_v43 = vmul.f32 %v7044_v23, %v6826_v34  ;;  %v2649_v21 = vmul.f32 %v2624_v13, %v8296_v55  ;;  %v2650_v2 = vmul.f32 %v2625_v38, %v8288_v62 }
 0x36b   :  { %2699 = vst.msk [vmem:[#allocation3 + $0x2b] sm:$0xff] %vm2665_vm3, %v2644_v42  ;;  %v2579_v30 = vmul.f32 %v7044_v23, %v6838_v17  ;;  %v2580_v37 = vmul.f32 %v7044_v23, %v6846_v11  ;;  %v2603_v10 = vadd.f32 %v7060_v58, %v2575_v56  ;;  %v2604_v31 = vadd.f32 %v7060_v58, %v2576_v6  ;;  %v8298_v56 = vld [vmem:[#allocation15_spill] sm:$0xff] }
 0x36c   :  { %2700 = vst.msk [vmem:[#allocation3 + $0x33] sm:$0xff] %vm2665_vm3, %v2645_v35  ;;  %v2605_v34 = vadd.f32 %v7060_v58, %v2577_v14  ;;  %v2606_v42 = vadd.f32 %v7060_v58, %v2578_v43  ;;  %v2581_v17 = vmul.f32 %v7044_v23, %v6854_v47  ;;  %v2582_v11 = vmul.f32 %v7044_v23, %v6859_v24 }
 0x36d   :  { %2701 = vst.msk [vmem:[#allocation3 + $0x3b] sm:$0xff] %vm2665_vm3, %v2646_v0  ;;  %v2607_v16 = vadd.f32 %v7060_v58, %v2579_v30  ;;  %v2608_v8 = vadd.f32 %v7060_v58, %v2580_v37  ;;  %v2651_v12 = vmul.f32 %v2626_v32, %v6697_v39  ;;  %v2652_v33 = vmul.f32 %v2627_v57, %v8289_v53 }
 0x36e   :  { %v2747_v60 = vld [vmem:[#allocation3 + $0x9] sm:$0xff]  ;;  %2702 = vst.msk [vmem:[#allocation3 + $0x43] sm:$0xff] %vm2665_vm3, %v2647_v50  ;;  %v2628_v52 = vmax.f32 %v2603_v10, 0.0  ;;  %v2629_v29 = vmax.f32 %v2604_v31, 0.0  ;;  %v2630_v47 = vmax.f32 %v2605_v34, 0.0  ;;  %v2631_v9 = vmax.f32 %v2606_v42, 0.0 }
 0x36f   :  { %v2721_v45 = vld [vmem:[#allocation3 + $0x8] sm:$0xff]  ;;  %5170 = vmatmul.msk.f32.gmra.mxu1 %vm2665_vm3, %v2747_v60  ;;  %2703 = vst.msk [vmem:[#allocation3 + $0x4b] sm:$0xff] %vm2665_vm3, %v2648_v44  ;;  %v2609_v24 = vadd.f32 %v7060_v58, %v2581_v17  ;;  %v2610_v49 = vadd.f32 %v7060_v58, %v2582_v11  ;;  %v2632_v13 = vmax.f32 %v2607_v16, 0.0  ;;  %v2583_v38 = vmul.f32 %v7044_v23, %v6865_v63  ;;  %v8297_v63 = vld [vmem:[#allocation38_spill] sm:$0xff] }
 0x370   :  { %v3108_v40 = vld [vmem:[#allocation3 + $0xa] sm:$0xff]  ;;  %5195 = vmatmul.msk.f32.gmra.mxu2 %vm2665_vm3, %v2721_v45  ;;  %2704 = vst.msk [vmem:[#allocation3 + $0x53] sm:$0xff] %vm2665_vm3, %v2649_v21  ;;  %v2653_v61 = vmul.f32 %v2628_v52, %v6755_v19  ;;  %v2654_v54 = vmul.f32 %v2629_v29, %v6751_v59  ;;  %v2633_v26 = vmax.f32 %v2608_v8, 0.0  ;;  %v2655_v35 = vmul.f32 %v2630_v47, %v6777_v3  ;;  %v8299_v21 = vld [vmem:[#allocation16_spill] sm:$0xff]  ;;  %v2723_v31 = vld [vmem:[#allocation3 + $0x18] sm:$0xff] }
 0x371   :  { %5221 = vmatmul.msk.f32.gmra.mxu3 %vm2665_vm3, %v3108_v40  ;;  %5246 = vmatmul.msk.f32.vlgmr.msrb.gmra.mxu0 %vm2665_vm3, %v3108_v40  ;;  %2705 = vst.msk [vmem:[#allocation3 + $0x5b] sm:$0xff] %vm2665_vm3, %v2650_v2  ;;  %v2634_v0 = vmax.f32 %v2609_v24, 0.0  ;;  %v2611_v50 = vadd.f32 %v7060_v58, %v2583_v38  ;;  %v2656_v44 = vmul.f32 %v2631_v9, %v6798_v27  ;;  %v2635_v32 = vmax.f32 %v2610_v49, 0.0  ;;  %v2748_v14 = vld [vmem:[#allocation3 + $0x11] sm:$0xff]  ;;  %v2749_v10 = vld [vmem:[#allocation3 + $0x19] sm:$0xff]  ;;  %v2750_v42 = vld [vmem:[#allocation3 + $0x21] sm:$0xff] }
 0x372   :  { %2706 = vst.msk [vmem:[#allocation3 + $0x63] sm:$0xff] %vm2665_vm3, %v2651_v12  ;;  %v2657_v23 = vmul.f32 %v2632_v13, %v8297_v63  ;;  %v2658_v6 = vmul.f32 %v2633_v26, %v8298_v56  ;;  %v2722_v43 = vld [vmem:[#allocation3 + $0x10] sm:$0xff]  ;;  %v3110_v34 = vld [vmem:[#allocation3 + $0x1a] sm:$0xff]  ;;  %v3111_v8 = vld [vmem:[#allocation3 + $0x22] sm:$0xff] }
 0x373   :  { %2707 = vst.msk [vmem:[#allocation3 + $0x6b] sm:$0xff] %vm2665_vm3, %v2652_v33  ;;  %v2636_v57 = vmax.f32 %v2611_v50, 0.0  ;;  %v2659_v58 = vmul.f32 %v2634_v0, %v8299_v21  ;;  %v3109_v2 = vld [vmem:[#allocation3 + $0x12] sm:$0xff]  ;;  %v2660_v30 = vmul.f32 %v2635_v32, %v6849_v36  ;;  %v2724_v16 = vld [vmem:[#allocation3 + $0x20] sm:$0xff]  ;;  %v2751_v17 = vld [vmem:[#allocation3 + $0x29] sm:$0xff] }
 0x374   :  { %2708 = vst.msk [vmem:[#allocation3 + $0x73] sm:$0xff] %vm2665_vm3, %v2653_v61  ;;  %v2725_v11 = vld [vmem:[#allocation3 + $0x28] sm:$0xff]  ;;  %v2752_v45 = vld [vmem:[#allocation3 + $0x31] sm:$0xff]  ;;  %v2753_v33 = vld [vmem:[#allocation3 + $0x39] sm:$0xff] }
 0x375   :  { %2709 = vst.msk [vmem:[#allocation3 + $0x7b] sm:$0xff] %vm2665_vm3, %v2654_v54  ;;  %v2661_v37 = vmul.f32 %v2636_v57, %v6867_v15  ;;  %v3112_v60 = vld [vmem:[#allocation3 + $0x2a] sm:$0xff]  ;;  %v3113_v12 = vld [vmem:[#allocation3 + $0x32] sm:$0xff]  ;;  %v3114_v29 = vld [vmem:[#allocation3 + $0x3a] sm:$0xff] }
 0x376   :  { %2710 = vst.msk [vmem:[#allocation3 + $0x83] sm:$0xff] %vm2665_vm3, %v2655_v35  ;;  %v2726_v40 = vld [vmem:[#allocation3 + $0x30] sm:$0xff]  ;;  %v2727_v52 = vld [vmem:[#allocation3 + $0x38] sm:$0xff]  ;;  %v2754_v47 = vld [vmem:[#allocation3 + $0x41] sm:$0xff] }
 0x377   :  { %5171 = vmatmul.msk.f32.gmra.mxu1 %vm2665_vm3, %v2748_v14  ;;  %2711 = vst.msk [vmem:[#allocation3 + $0x8b] sm:$0xff] %vm2665_vm3, %v2656_v44  ;;  %v2728_v9 = vld [vmem:[#allocation3 + $0x40] sm:$0xff]  ;;  %v2755_v49 = vld [vmem:[#allocation3 + $0x49] sm:$0xff]  ;;  %v2756_v38 = vld [vmem:[#allocation3 + $0x51] sm:$0xff] }
 0x378   :  { %5196 = vmatmul.msk.f32.gmra.mxu2 %vm2665_vm3, %v2722_v43  ;;  %2712 = vst.msk [vmem:[#allocation3 + $0x93] sm:$0xff] %vm2665_vm3, %v2657_v23  ;;  %v3115_v24 = vld [vmem:[#allocation3 + $0x42] sm:$0xff]  ;;  %v3116_v13 = vld [vmem:[#allocation3 + $0x4a] sm:$0xff]  ;;  %v3117_v26 = vld [vmem:[#allocation3 + $0x52] sm:$0xff] }
 0x379   :  { %5222 = vmatmul.msk.f32.gmra.mxu3 %vm2665_vm3, %v3109_v2  ;;  %5247 = vmatmul.msk.f32.gmra.mxu0 %vm2665_vm3, %v3109_v2  ;;  %2713 = vst.msk [vmem:[#allocation3 + $0x9b] sm:$0xff] %vm2665_vm3, %v2658_v6  ;;  %v2729_v61 = vld [vmem:[#allocation3 + $0x48] sm:$0xff]  ;;  %v2730_v54 = vld [vmem:[#allocation3 + $0x50] sm:$0xff]  ;;  %v2757_v35 = vld [vmem:[#allocation3 + $0x59] sm:$0xff] }
 0x37a   :  { %2714 = vst.msk [vmem:[#allocation3 + $0xa3] sm:$0xff] %vm2665_vm3, %v2659_v58  ;;  %v2731_v0 = vld [vmem:[#allocation3 + $0x58] sm:$0xff]  ;;  %v2758_v44 = vld [vmem:[#allocation3 + $0x61] sm:$0xff]  ;;  %v2759_v57 = vld [vmem:[#allocation3 + $0x69] sm:$0xff] }
 0x37b   :  { %2715 = vst.msk [vmem:[#allocation3 + $0xab] sm:$0xff] %vm2665_vm3, %v2660_v30  ;;  %v3118_v50 = vld [vmem:[#allocation3 + $0x5a] sm:$0xff]  ;;  %v3119_v23 = vld [vmem:[#allocation3 + $0x62] sm:$0xff]  ;;  %v3120_v14 = vld [vmem:[#allocation3 + $0x6a] sm:$0xff] }
 0x37c   :  { %2716 = vst.msk [vmem:[#allocation3 + $0xb3] sm:$0xff] %vm2665_vm3, %v2661_v37  ;;  %v2732_v32 = vld [vmem:[#allocation3 + $0x60] sm:$0xff]  ;;  %v2733_v6 = vld [vmem:[#allocation3 + $0x68] sm:$0xff]  ;;  %v2760_v43 = vld [vmem:[#allocation3 + $0x71] sm:$0xff] }
 0x37d   :  { %v2734_v58 = vld [vmem:[#allocation3 + $0x70] sm:$0xff]  ;;  %v2761_v30 = vld [vmem:[#allocation3 + $0x79] sm:$0xff] }
 0x37e   :  { %v3121_v2 = vld [vmem:[#allocation3 + $0x72] sm:$0xff] }
 0x37f   :  { %5172 = vmatmul.msk.f32.gmra.mxu1 %vm2665_vm3, %v2749_v10  ;;  %v2735_v37 = vld [vmem:[#allocation3 + $0x78] sm:$0xff] }
 0x380   :  { %5197 = vmatmul.msk.f32.gmra.mxu2 %vm2665_vm3, %v2723_v31  ;;  %v3122_v10 = vld [vmem:[#allocation3 + $0x7a] sm:$0xff] }
 0x381   :  { %5223 = vmatmul.msk.f32.gmra.mxu3 %vm2665_vm3, %v3110_v34  ;;  %5248 = vmatmul.msk.f32.gmra.mxu0 %vm2665_vm3, %v3110_v34  ;;  %v2762_v34 = vld [vmem:[#allocation3 + $0x81] sm:$0xff] }
 0x387   :  { %5173 = vmatmul.msk.f32.gmra.mxu1 %vm2665_vm3, %v2750_v42  ;;  %v2736_v42 = vld [vmem:[#allocation3 + $0x80] sm:$0xff] }
 0x388   :  { %5198 = vmatmul.msk.f32.gmra.mxu2 %vm2665_vm3, %v2724_v16  ;;  %v3123_v16 = vld [vmem:[#allocation3 + $0x82] sm:$0xff] }
 0x389   :  { %5224 = vmatmul.msk.f32.gmra.mxu3 %vm2665_vm3, %v3111_v8  ;;  %5249 = vmatmul.msk.f32.gmra.mxu0 %vm2665_vm3, %v3111_v8 }
 0x38f   :  { %5174 = vmatmul.msk.f32.gmra.mxu1 %vm2665_vm3, %v2751_v17 }
 0x390   :  { %5199 = vmatmul.msk.f32.gmra.mxu2 %vm2665_vm3, %v2725_v11 }
 0x391   :  { %5225 = vmatmul.msk.f32.gmra.mxu3 %vm2665_vm3, %v3112_v60  ;;  %5250 = vmatmul.msk.f32.gmra.mxu0 %vm2665_vm3, %v3112_v60 }
 0x397   :  { %5175 = vmatmul.msk.f32.gmra.mxu1 %vm2665_vm3, %v2752_v45  ;;  %v2763_v45 = vld [vmem:[#allocation3 + $0x89] sm:$0xff] }
 0x398   :  { %5200 = vmatmul.msk.f32.gmra.mxu2 %vm2665_vm3, %v2726_v40  ;;  %v2737_v40 = vld [vmem:[#allocation3 + $0x88] sm:$0xff] }
 0x399   :  { %5226 = vmatmul.msk.f32.gmra.mxu3 %vm2665_vm3, %v3113_v12  ;;  %5251 = vmatmul.msk.f32.gmra.mxu0 %vm2665_vm3, %v3113_v12  ;;  %v3124_v12 = vld [vmem:[#allocation3 + $0x8a] sm:$0xff] }
 0x39f   :  { %5176 = vmatmul.msk.f32.gmra.mxu1 %vm2665_vm3, %v2753_v33 }
 0x3a0   :  { %5201 = vmatmul.msk.f32.gmra.mxu2 %vm2665_vm3, %v2727_v52 }
 0x3a1   :  { %5227 = vmatmul.msk.f32.gmra.mxu3 %vm2665_vm3, %v3114_v29  ;;  %5252 = vmatmul.msk.f32.gmra.mxu0 %vm2665_vm3, %v3114_v29 }
 0x3a7   :  { %5177 = vmatmul.msk.f32.gmra.mxu1 %vm2665_vm3, %v2754_v47 }
 0x3a8   :  { %5202 = vmatmul.msk.f32.gmra.mxu2 %vm2665_vm3, %v2728_v9 }
 0x3a9   :  { %5228 = vmatmul.msk.f32.gmra.mxu3 %vm2665_vm3, %v3115_v24  ;;  %5253 = vmatmul.msk.f32.gmra.mxu0 %vm2665_vm3, %v3115_v24 }
 0x3af   :  { %5178 = vmatmul.msk.f32.gmra.mxu1 %vm2665_vm3, %v2755_v49  ;;  %v2764_v49 = vld [vmem:[#allocation3 + $0x91] sm:$0xff] }
 0x3b0   :  { %5203 = vmatmul.msk.f32.gmra.mxu2 %vm2665_vm3, %v2729_v61  ;;  %v2738_v61 = vld [vmem:[#allocation3 + $0x90] sm:$0xff] }
 0x3b1   :  { %5229 = vmatmul.msk.f32.gmra.mxu3 %vm2665_vm3, %v3116_v13  ;;  %5254 = vmatmul.msk.f32.gmra.mxu0 %vm2665_vm3, %v3116_v13  ;;  %v3125_v13 = vld [vmem:[#allocation3 + $0x92] sm:$0xff] }
 0x3b5   :  { %v7233_v31 = vpop.f32.mrf.mxu1 }
 0x3b7   :  { %5179 = vmatmul.msk.f32.gmra.mxu1 %vm2665_vm3, %v2756_v38 }
 0x3b8   :  { %5204 = vmatmul.msk.f32.gmra.mxu2 %vm2665_vm3, %v2730_v54 }
 0x3b9   :  { %5230 = vmatmul.msk.f32.gmra.mxu3 %vm2665_vm3, %v3117_v26  ;;  %5255 = vmatmul.msk.f32.gmra.mxu0 %vm2665_vm3, %v3117_v26  ;;  %v7241_v17 = vpop.f32.mrf.mxu3 }
 0x3bb   :  { %v7239_v8 = vpop.f32.mrf.mxu2 }
 0x3bf   :  { %5180 = vmatmul.msk.f32.gmra.mxu1 %vm2665_vm3, %v2757_v35 }
 0x3c0   :  { %5205 = vmatmul.msk.f32.gmra.mxu2 %vm2665_vm3, %v2731_v0 }
 0x3c1   :  { %5231 = vmatmul.msk.f32.gmra.mxu3 %vm2665_vm3, %v3118_v50  ;;  %5256 = vmatmul.msk.f32.gmra.mxu0 %vm2665_vm3, %v3118_v50 }
 0x3c7   :  { %5181 = vmatmul.msk.f32.gmra.mxu1 %vm2665_vm3, %v2758_v44  ;;  %v2765_v44 = vld [vmem:[#allocation3 + $0x99] sm:$0xff] }
 0x3c8   :  { %5206 = vmatmul.msk.f32.gmra.mxu2 %vm2665_vm3, %v2732_v32  ;;  %v2739_v32 = vld [vmem:[#allocation3 + $0x98] sm:$0xff] }
 0x3c9   :  { %5232 = vmatmul.msk.f32.gmra.mxu3 %vm2665_vm3, %v3119_v23  ;;  %5257 = vmatmul.msk.f32.gmra.mxu0 %vm2665_vm3, %v3119_v23  ;;  %v3126_v23 = vld [vmem:[#allocation3 + $0x9a] sm:$0xff] }
 0x3cf   :  { %5182 = vmatmul.msk.f32.gmra.mxu1 %vm2665_vm3, %v2759_v57 }
 0x3d0   :  { %5207 = vmatmul.msk.f32.gmra.mxu2 %vm2665_vm3, %v2733_v6 }
 0x3d1   :  { %5233 = vmatmul.msk.f32.gmra.mxu3 %vm2665_vm3, %v3120_v14  ;;  %5258 = vmatmul.msk.f32.gmra.mxu0 %vm2665_vm3, %v3120_v14 }
 0x3d7   :  { %5183 = vmatmul.msk.f32.gmra.mxu1 %vm2665_vm3, %v2760_v43 }
 0x3d8   :  { %5208 = vmatmul.msk.f32.gmra.mxu2 %vm2665_vm3, %v2734_v58 }
 0x3d9   :  { %5234 = vmatmul.msk.f32.gmra.mxu3 %vm2665_vm3, %v3121_v2  ;;  %5259 = vmatmul.msk.f32.gmra.mxu0 %vm2665_vm3, %v3121_v2 }
 0x3df   :  { %5184 = vmatmul.msk.f32.gmra.mxu1 %vm2665_vm3, %v2761_v30  ;;  %v5297_v30 = vld [vmem:[%s8022_s5 + $0x28] sm:$0xff] }
 0x3e0   :  { %5209 = vmatmul.msk.f32.gmra.mxu2 %vm2665_vm3, %v2735_v37  ;;  %v2766_v37 = vld [vmem:[#allocation3 + $0xa1] sm:$0xff] }
 0x3e1   :  { %5235 = vmatmul.msk.f32.gmra.mxu3 %vm2665_vm3, %v3122_v10  ;;  %5260 = vmatmul.msk.f32.gmra.mxu0 %vm2665_vm3, %v3122_v10  ;;  %v2740_v10 = vld [vmem:[#allocation3 + $0xa0] sm:$0xff] }
 0x3e2   :  { %3881 = vmatpush.msra.mxu2 %v5297_v30 }
 0x3e7   :  { %5185 = vmatmul.msk.f32.gmra.mxu1 %vm2665_vm3, %v2762_v34  ;;  %v3127_v34 = vld [vmem:[#allocation3 + $0xa2] sm:$0xff] }
 0x3e8   :  { %5210 = vmatmul.msk.f32.gmra.mxu2 %vm2665_vm3, %v2736_v42  ;;  %v5323_v42 = vld [vmem:[%s8022_s5 + $0x30] sm:$0xff] }
 0x3e9   :  { %5236 = vmatmul.msk.f32.gmra.mxu3 %vm2665_vm3, %v3123_v16  ;;  %5261 = vmatmul.msk.f32.gmra.mxu0 %vm2665_vm3, %v3123_v16 }
 0x3ea   :  { %4100 = vmatpush.msra.mxu3 %v5323_v42  ;;  %v2743_v42 = vld [vmem:[#allocation3 + $0xb8] sm:$0xff] }
 0x3ec   :  { %v2868_v11 = vpop.f32.mrf.mxu1 }
 0x3ee   :  { %v7243_v60 = vpop.f32.mrf.mxu0 }
 0x3ef   :  { %5186 = vmatmul.msk.f32.gmra.mxu1 %vm2665_vm3, %v2763_v45 }
 0x3f0   :  { %5211 = vmatmul.msk.f32.gmra.mxu2 %vm2665_vm3, %v2737_v40 }
 0x3f1   :  { %5237 = vmatmul.msk.f32.gmra.mxu3 %vm2665_vm3, %v3124_v12  ;;  %5262 = vmatmul.msk.f32.gmra.mxu0 %vm2665_vm3, %v3124_v12 }
 0x3f3   :  { %v3035_v33 = vpop.f32.mrf.mxu2 }
 0x3f4   :  { %v3036_v52 = vadd.f32 %v3035_v33, %v2868_v11  ;;  %v3229_v29 = vpop.f32.mrf.mxu3  ;;  %v2871_v47 = vpop.f32.mrf.mxu1 }
 0x3f6   :  { %v7249_v9 = vadd.f32 %v3229_v29, %v3036_v52  ;;  %v7251_v24 = vpop.f32.mrf.mxu0  ;;  %v2767_v52 = vld [vmem:[#allocation3 + $0xa9] sm:$0xff] }
 0x3f7   :  { %5187 = vmatmul.msk.f32.gmra.mxu1 %vm2665_vm3, %v2764_v49  ;;  %v2741_v29 = vld [vmem:[#allocation3 + $0xa8] sm:$0xff]  ;;  %v5349_v49 = vld [vmem:[%s8022_s5 + $0x38] sm:$0xff] }
 0x3f8   :  { %5212 = vmatmul.msk.f32.gmra.mxu2 %vm2665_vm3, %v2738_v61  ;;  %v5375_v61 = vld [vmem:[%s8022_s5 + $0x40] sm:$0xff]  ;;  %4319 = vmatpush.msra.mxu0 %v5349_v49 }
 0x3f9   :  { %5238 = vmatmul.msk.f32.gmra.mxu3 %vm2665_vm3, %v3125_v13  ;;  %5263 = vmatmul.msk.f32.gmra.mxu0 %vm2665_vm3, %v3125_v13  ;;  %v2770_v49 = vld [vmem:[#allocation3 + $0xc1] sm:$0xff] }
 0x3fa   :  { %4538 = vmatpush.msra.mxu1 %v5375_v61  ;;  %v2744_v61 = vld [vmem:[#allocation3 + $0xc0] sm:$0xff] }
 0x3fb   :  { %v3038_v38 = vpop.f32.mrf.mxu2 }
 0x3fc   :  { %v3039_v54 = vadd.f32 %v3038_v38, %v2871_v47  ;;  %v3232_v26 = vpop.f32.mrf.mxu3  ;;  %v2874_v35 = vpop.f32.mrf.mxu1  ;;  %v3128_v47 = vld [vmem:[#allocation3 + $0xaa] sm:$0xff] }
 0x3fe   :  { %v7257_v0 = vadd.f32 %v3232_v26, %v3039_v54  ;;  %v7259_v50 = vpop.f32.mrf.mxu0 }
 0x3ff   :  { %5188 = vmatmul.msk.f32.gmra.mxu1 %vm2665_vm3, %v2765_v44 }
 0x400   :  { %5213 = vmatmul.msk.f32.gmra.mxu2 %vm2665_vm3, %v2739_v32  ;;  %v2768_v32 = vld [vmem:[#allocation3 + $0xb1] sm:$0xff] }
 0x401   :  { %5239 = vmatmul.msk.f32.gmra.mxu3 %vm2665_vm3, %v3126_v23  ;;  %5264 = vmatmul.msk.f32.gmra.mxu0 %vm2665_vm3, %v3126_v23  ;;  %v2742_v23 = vld [vmem:[#allocation3 + $0xb0] sm:$0xff] }
 0x403   :  { %v3041_v57 = vpop.f32.mrf.mxu2 }
 0x404   :  { %v3042_v6 = vadd.f32 %v3041_v57, %v2874_v35  ;;  %v3235_v14 = vpop.f32.mrf.mxu3  ;;  %v2877_v43 = vpop.f32.mrf.mxu1  ;;  %v3129_v57 = vld [vmem:[#allocation3 + $0xb2] sm:$0xff] }
 0x406   :  { %v7265_v58 = vadd.f32 %v3235_v14, %v3042_v6  ;;  %v7267_v2 = vpop.f32.mrf.mxu0 }
 0x407   :  { %5189 = vmatmul.msk.f32.gmra.mxu1 %vm2665_vm3, %v2766_v37 }
 0x408   :  { %5214 = vmatmul.msk.f32.gmra.mxu2 %vm2665_vm3, %v2740_v10 }
 0x409   :  { %5240 = vmatmul.msk.f32.gmra.mxu3 %vm2665_vm3, %v3127_v34  ;;  %5265 = vmatmul.msk.f32.gmra.mxu0 %vm2665_vm3, %v3127_v34  ;;  %v2769_v34 = vld [vmem:[#allocation3 + $0xb9] sm:$0xff] }
 0x40b   :  { %v3044_v16 = vpop.f32.mrf.mxu2 }
 0x40c   :  { %v3045_v11 = vadd.f32 %v3044_v16, %v2877_v43  ;;  %v3238_v45 = vpop.f32.mrf.mxu3  ;;  %v2880_v40 = vpop.f32.mrf.mxu1  ;;  %v3130_v16 = vld [vmem:[#allocation3 + $0xba] sm:$0xff] }
 0x40e   :  { %v7279_v12 = vadd.f32 %v3238_v45, %v3045_v11  ;;  %v7281_v33 = vpop.f32.mrf.mxu0 }
 0x40f   :  { %5190 = vmatmul.msk.f32.gmra.mxu1 %vm2665_vm3, %v2767_v52 }
 0x410   :  { %5215 = vmatmul.msk.f32.gmra.mxu2 %vm2665_vm3, %v2741_v29 }
 0x411   :  { %5241 = vmatmul.msk.f32.gmra.mxu3 %vm2665_vm3, %v3128_v47  ;;  %5266 = vmatmul.msk.f32.gmra.mxu0 %vm2665_vm3, %v3128_v47 }
 0x413   :  { %v3047_v13 = vpop.f32.mrf.mxu2 }
 0x414   :  { %v3048_v38 = vadd.f32 %v3047_v13, %v2880_v40  ;;  %v3241_v54 = vpop.f32.mrf.mxu3  ;;  %v2883_v26 = vpop.f32.mrf.mxu1  ;;  %v3131_v13 = vld [vmem:[#allocation3 + $0xc2] sm:$0xff] }
 0x416   :  { %v7293_v35 = vadd.f32 %v3241_v54, %v3048_v38  ;;  %v7295_v44 = vpop.f32.mrf.mxu0 }
 0x417   :  { %5191 = vmatmul.msk.f32.gmra.mxu1 %vm2665_vm3, %v2768_v32 }
 0x418   :  { %5216 = vmatmul.msk.f32.gmra.mxu2 %vm2665_vm3, %v2742_v23 }
 0x419   :  { %5242 = vmatmul.msk.f32.gmra.mxu3 %vm2665_vm3, %v3129_v57  ;;  %5267 = vmatmul.msk.f32.gmra.mxu0 %vm2665_vm3, %v3129_v57 }
 0x41b   :  { %v3050_v6 = vpop.f32.mrf.mxu2 }
 0x41c   :  { %v3051_v14 = vadd.f32 %v3050_v6, %v2883_v26  ;;  %v3244_v43 = vpop.f32.mrf.mxu3  ;;  %v2886_v30 = vpop.f32.mrf.mxu1  ;;  %v3545_v6 = vld [vmem:[#allocation3 + $0xb] sm:$0xff] }
 0x41e   :  { %v7301_v37 = vadd.f32 %v3244_v43, %v3051_v14  ;;  %v7303_v10 = vpop.f32.mrf.mxu0  ;;  %v3764_v14 = vld [vmem:[#allocation3 + $0xc] sm:$0xff] }
 0x41f   :  { %5192 = vmatmul.msk.f32.gmra.mxu1 %vm2665_vm3, %v2769_v34  ;;  %v3350_v43 = vld [vmem:[#allocation3 + $0xca] sm:$0xff] }
 0x420   :  { %5217 = vmatmul.msk.f32.gmra.mxu2 %vm2665_vm3, %v2743_v42 }
 0x421   :  { %5243 = vmatmul.msk.f32.gmra.mxu3 %vm2665_vm3, %v3130_v16  ;;  %5268 = vmatmul.msk.f32.gmra.mxu0 %vm2665_vm3, %v3130_v16 }
 0x423   :  { %v3053_v11 = vpop.f32.mrf.mxu2 }
 0x424   :  { %v3054_v45 = vadd.f32 %v3053_v11, %v2886_v30  ;;  %v3247_v40 = vpop.f32.mrf.mxu3  ;;  %v2889_v52 = vpop.f32.mrf.mxu1  ;;  %v3983_v30 = vld [vmem:[#allocation3 + $0x14] sm:$0xff] }
 0x426   :  { %v7309_v29 = vadd.f32 %v3247_v40, %v3054_v45  ;;  %v7311_v47 = vpop.f32.mrf.mxu0 }
 0x427   :  { %5193 = vmatmul.msk.f32.gmra.mxu1 %vm2665_vm3, %v2770_v49  ;;  %v3984_v49 = vld [vmem:[#allocation3 + $0x1c] sm:$0xff] }
 0x428   :  { %5218 = vmatmul.msk.f32.gmra.mxu2 %vm2665_vm3, %v2744_v61  ;;  %v4202_v61 = vld [vmem:[#allocation3 + $0x15] sm:$0xff] }
 0x429   :  { %5244 = vmatmul.msk.f32.gmra.mxu3 %vm2665_vm3, %v3131_v13  ;;  %5269 = vmatmul.msk.f32.gmra.mxu0 %vm2665_vm3, %v3131_v13 }
 0x42b   :  { %v3056_v38 = vpop.f32.mrf.mxu2 }
 0x42c   :  { %v3057_v54 = vadd.f32 %v3056_v38, %v2889_v52  ;;  %v3250_v26 = vpop.f32.mrf.mxu3  ;;  %v2892_v32 = vpop.f32.mrf.mxu1  ;;  %v3546_v52 = vld [vmem:[#allocation3 + $0x13] sm:$0xff] }
 0x42e   :  { %v7317_v23 = vadd.f32 %v3250_v26, %v3057_v54  ;;  %v7319_v57 = vpop.f32.mrf.mxu0 }
 0x42f   :  { %5272 = vmatmul.msk.f32.vlgmr.msrb.gmra.mxu1 %vm2665_vm3, %v3545_v6 }
 0x430   :  { %5298 = vmatmul.msk.f32.vlgmr.msra.gmra.mxu2 %vm2665_vm3, %v3764_v14  ;;  %v3547_v14 = vld [vmem:[#allocation3 + $0x1b] sm:$0xff] }
 0x431   :  { %5270 = vmatmul.msk.f32.gmra.mxu0 %vm2665_vm3, %v3350_v43  ;;  %5324 = vmatmul.msk.f32.vlgmr.msra.gmra.mxu3 %vm2665_vm3, %v3983_v30  ;;  %v3985_v43 = vld [vmem:[#allocation3 + $0x24] sm:$0xff] }
 0x433   :  { %v3059_v34 = vpop.f32.mrf.mxu2 }
 0x434   :  { %v3060_v42 = vadd.f32 %v3059_v34, %v2892_v32  ;;  %v3253_v16 = vpop.f32.mrf.mxu3  ;;  %v2895_v11 = vpop.f32.mrf.mxu1 }
 0x436   :  { %v7325_v45 = vadd.f32 %v3253_v16, %v3060_v42  ;;  %v7327_v40 = vpop.f32.mrf.mxu0 }
 0x437   :  { %5273 = vmatmul.msk.f32.gmra.mxu1 %vm2665_vm3, %v3546_v52 }
 0x438   :  { %5299 = vmatmul.msk.f32.gmra.mxu2 %vm2665_vm3, %v3983_v30  ;;  %v4203_v30 = vld [vmem:[#allocation3 + $0x1d] sm:$0xff] }
 0x439   :  { %5325 = vmatmul.msk.f32.gmra.mxu3 %vm2665_vm3, %v3984_v49  ;;  %5350 = vmatmul.msk.f32.vlgmr.msra.gmra.mxu0 %vm2665_vm3, %v4202_v61 }
 0x43b   :  { %v3062_v13 = vpop.f32.mrf.mxu2 }
 0x43c   :  { %v3063_v38 = vadd.f32 %v3062_v13, %v2895_v11  ;;  %v3256_v54 = vpop.f32.mrf.mxu3  ;;  %v2898_v26 = vpop.f32.mrf.mxu1  ;;  %v3548_v13 = vld [vmem:[#allocation3 + $0x23] sm:$0xff] }
 0x43e   :  { %v7333_v32 = vadd.f32 %v3256_v54, %v3063_v38  ;;  %v7335_v6 = vpop.f32.mrf.mxu0  ;;  %v4204_v38 = vld [vmem:[#allocation3 + $0x25] sm:$0xff] }
 0x43f   :  { %5274 = vmatmul.msk.f32.gmra.mxu1 %vm2665_vm3, %v3547_v14 }
 0x440   :  { %5300 = vmatmul.msk.f32.gmra.mxu2 %vm2665_vm3, %v3984_v49  ;;  %v3986_v49 = vld [vmem:[#allocation3 + $0x2c] sm:$0xff] }
 0x441   :  { %5326 = vmatmul.msk.f32.gmra.mxu3 %vm2665_vm3, %v3985_v43  ;;  %5351 = vmatmul.msk.f32.gmra.mxu0 %vm2665_vm3, %v4203_v30 }
 0x443   :  { %v3065_v34 = vpop.f32.mrf.mxu2 }
 0x444   :  { %v3066_v42 = vadd.f32 %v3065_v34, %v2898_v26  ;;  %v3259_v16 = vpop.f32.mrf.mxu3  ;;  %v2901_v11 = vpop.f32.mrf.mxu1 }
 0x446   :  { %v7341_v52 = vadd.f32 %v3259_v16, %v3066_v42  ;;  %v7343_v61 = vpop.f32.mrf.mxu0  ;;  %v3549_v16 = vld [vmem:[#allocation3 + $0x2b] sm:$0xff] }
 0x447   :  { %5275 = vmatmul.msk.f32.gmra.mxu1 %vm2665_vm3, %v3548_v13  ;;  %v4205_v13 = vld [vmem:[#allocation3 + $0x2d] sm:$0xff] }
 0x448   :  { %5301 = vmatmul.msk.f32.gmra.mxu2 %vm2665_vm3, %v3985_v43  ;;  %v3987_v43 = vld [vmem:[#allocation3 + $0x34] sm:$0xff] }
 0x449   :  { %5327 = vmatmul.msk.f32.gmra.mxu3 %vm2665_vm3, %v3986_v49  ;;  %5352 = vmatmul.msk.f32.gmra.mxu0 %vm2665_vm3, %v4204_v38 }
 0x44b   :  { %v3068_v54 = vpop.f32.mrf.mxu2 }
 0x44c   :  { %v3069_v14 = vadd.f32 %v3068_v54, %v2901_v11  ;;  %v3262_v26 = vpop.f32.mrf.mxu3  ;;  %v2904_v30 = vpop.f32.mrf.mxu1 }
 0x44e   :  { %v7349_v34 = vadd.f32 %v3262_v26, %v3069_v14  ;;  %v7351_v42 = vpop.f32.mrf.mxu0  ;;  %v3550_v26 = vld [vmem:[#allocation3 + $0x33] sm:$0xff] }
 0x44f   :  { %5276 = vmatmul.msk.f32.gmra.mxu1 %vm2665_vm3, %v3549_v16  ;;  %v4206_v16 = vld [vmem:[#allocation3 + $0x35] sm:$0xff] }
 0x450   :  { %5302 = vmatmul.msk.f32.gmra.mxu2 %vm2665_vm3, %v3986_v49  ;;  %v3988_v49 = vld [vmem:[#allocation3 + $0x3c] sm:$0xff] }
 0x451   :  { %5328 = vmatmul.msk.f32.gmra.mxu3 %vm2665_vm3, %v3987_v43  ;;  %5353 = vmatmul.msk.f32.gmra.mxu0 %vm2665_vm3, %v4205_v13 }
 0x453   :  { %v3071_v38 = vpop.f32.mrf.mxu2 }
 0x454   :  { %v3072_v5 = vadd.f32 %v3071_v38, %v2904_v30  ;;  %v3265_v11 = vpop.f32.mrf.mxu3  ;;  %v2907_v54 = vpop.f32.mrf.mxu1 }
 0x456   :  { %v7357_v4 = vadd.f32 %v3265_v11, %v3072_v5  ;;  %v7359_v14 = vpop.f32.mrf.mxu0  ;;  %v3551_v11 = vld [vmem:[#allocation3 + $0x3b] sm:$0xff] }
 0x457   :  { %5277 = vmatmul.msk.f32.gmra.mxu1 %vm2665_vm3, %v3550_v26  ;;  %v4207_v26 = vld [vmem:[#allocation3 + $0x3d] sm:$0xff] }
 0x458   :  { %5303 = vmatmul.msk.f32.gmra.mxu2 %vm2665_vm3, %v3987_v43  ;;  %v3989_v43 = vld [vmem:[#allocation3 + $0x44] sm:$0xff] }
 0x459   :  { %5329 = vmatmul.msk.f32.gmra.mxu3 %vm2665_vm3, %v3988_v49  ;;  %5354 = vmatmul.msk.f32.gmra.mxu0 %vm2665_vm3, %v4206_v16 }
 0x45b   :  { %v3074_v13 = vpop.f32.mrf.mxu2 }
 0x45c   :  { %v3075_v25 = vadd.f32 %v3074_v13, %v2907_v54  ;;  %v3268_v30 = vpop.f32.mrf.mxu3  ;;  %v2910_v38 = vpop.f32.mrf.mxu1 }
 0x45e   :  { %v7365_v15 = vadd.f32 %v3268_v30, %v3075_v25  ;;  %v7367_v5 = vpop.f32.mrf.mxu0  ;;  %v3552_v30 = vld [vmem:[#allocation3 + $0x43] sm:$0xff] }
 0x45f   :  { %5278 = vmatmul.msk.f32.gmra.mxu1 %vm2665_vm3, %v3551_v11  ;;  %v4208_v11 = vld [vmem:[#allocation3 + $0x45] sm:$0xff] }
 0x460   :  { %5304 = vmatmul.msk.f32.gmra.mxu2 %vm2665_vm3, %v3988_v49  ;;  %v3990_v49 = vld [vmem:[#allocation3 + $0x4c] sm:$0xff] }
 0x461   :  { %5330 = vmatmul.msk.f32.gmra.mxu3 %vm2665_vm3, %v3989_v43  ;;  %5355 = vmatmul.msk.f32.gmra.mxu0 %vm2665_vm3, %v4207_v26 }
 0x463   :  { %v3077_v16 = vpop.f32.mrf.mxu2 }
 0x464   :  { %v3078_v36 = vadd.f32 %v3077_v16, %v2910_v38  ;;  %v3271_v54 = vpop.f32.mrf.mxu3  ;;  %v2913_v13 = vpop.f32.mrf.mxu1 }
 0x466   :  { %v7373_v21 = vadd.f32 %v3271_v54, %v3078_v36  ;;  %v7375_v25 = vpop.f32.mrf.mxu0  ;;  %v3553_v54 = vld [vmem:[#allocation3 + $0x4b] sm:$0xff] }
 0x467   :  { %5279 = vmatmul.msk.f32.gmra.mxu1 %vm2665_vm3, %v3552_v30  ;;  %v4209_v30 = vld [vmem:[#allocation3 + $0x4d] sm:$0xff] }
 0x468   :  { %5305 = vmatmul.msk.f32.gmra.mxu2 %vm2665_vm3, %v3989_v43  ;;  %v3991_v43 = vld [vmem:[#allocation3 + $0x54] sm:$0xff] }
 0x469   :  { %5331 = vmatmul.msk.f32.gmra.mxu3 %vm2665_vm3, %v3990_v49  ;;  %5356 = vmatmul.msk.f32.gmra.mxu0 %vm2665_vm3, %v4208_v11 }
 0x46b   :  { %v3080_v26 = vpop.f32.mrf.mxu2 }
 0x46c   :  { %v3081_v56 = vadd.f32 %v3080_v26, %v2913_v13  ;;  %v3274_v38 = vpop.f32.mrf.mxu3  ;;  %v2916_v16 = vpop.f32.mrf.mxu1 }
 0x46e   :  { %v7381_v63 = vadd.f32 %v3274_v38, %v3081_v56  ;;  %v7383_v36 = vpop.f32.mrf.mxu0  ;;  %v3554_v38 = vld [vmem:[#allocation3 + $0x53] sm:$0xff] }
 0x46f   :  { %5280 = vmatmul.msk.f32.gmra.mxu1 %vm2665_vm3, %v3553_v54  ;;  %v4210_v54 = vld [vmem:[#allocation3 + $0x55] sm:$0xff] }
 0x470   :  { %5306 = vmatmul.msk.f32.gmra.mxu2 %vm2665_vm3, %v3990_v49  ;;  %v3992_v49 = vld [vmem:[#allocation3 + $0x5c] sm:$0xff] }
 0x471   :  { %5332 = vmatmul.msk.f32.gmra.mxu3 %vm2665_vm3, %v3991_v43  ;;  %5357 = vmatmul.msk.f32.gmra.mxu0 %vm2665_vm3, %v4209_v30 }
 0x473   :  { %v3083_v11 = vpop.f32.mrf.mxu2 }
 0x474   :  { %v3084_v27 = vadd.f32 %v3083_v11, %v2916_v16  ;;  %v3277_v13 = vpop.f32.mrf.mxu3  ;;  %v2919_v26 = vpop.f32.mrf.mxu1 }
 0x476   :  { %v7389_v3 = vadd.f32 %v3277_v13, %v3084_v27  ;;  %v7391_v56 = vpop.f32.mrf.mxu0  ;;  %v3555_v13 = vld [vmem:[#allocation3 + $0x5b] sm:$0xff] }
 0x477   :  { %8301 = vst [vmem:[#allocation45_spill] sm:$0xff] %v7391_v56  ;;  %5281 = vmatmul.msk.f32.gmra.mxu1 %vm2665_vm3, %v3554_v38  ;;  %v4211_v38 = vld [vmem:[#allocation3 + $0x5d] sm:$0xff] }
 0x478   :  { %8300 = vst [vmem:[#allocation18_spill] sm:$0xff] %v7389_v3  ;;  %5307 = vmatmul.msk.f32.gmra.mxu2 %vm2665_vm3, %v3991_v43  ;;  %v3993_v43 = vld [vmem:[#allocation3 + $0x64] sm:$0xff] }
 0x479   :  { %5333 = vmatmul.msk.f32.gmra.mxu3 %vm2665_vm3, %v3992_v49  ;;  %5358 = vmatmul.msk.f32.gmra.mxu0 %vm2665_vm3, %v4210_v54 }
 0x47b   :  { %v3086_v30 = vpop.f32.mrf.mxu2 }
 0x47c   :  { %v3087_v59 = vadd.f32 %v3086_v30, %v2919_v26  ;;  %v3280_v16 = vpop.f32.mrf.mxu3  ;;  %v2922_v11 = vpop.f32.mrf.mxu1 }
 0x47e   :  { %v7397_v19 = vadd.f32 %v3280_v16, %v3087_v59  ;;  %v7399_v27 = vpop.f32.mrf.mxu0  ;;  %v3556_v16 = vld [vmem:[#allocation3 + $0x63] sm:$0xff] }
 0x47f   :  { %8303 = vst [vmem:[#allocation19_spill] sm:$0xff] %v7399_v27  ;;  %5282 = vmatmul.msk.f32.gmra.mxu1 %vm2665_vm3, %v3555_v13  ;;  %v4212_v13 = vld [vmem:[#allocation3 + $0x65] sm:$0xff] }
 0x480   :  { %8302 = vst [vmem:[#allocation51_spill] sm:$0xff] %v7397_v19  ;;  %5308 = vmatmul.msk.f32.gmra.mxu2 %vm2665_vm3, %v3992_v49  ;;  %v3994_v49 = vld [vmem:[#allocation3 + $0x6c] sm:$0xff] }
 0x481   :  { %5334 = vmatmul.msk.f32.gmra.mxu3 %vm2665_vm3, %v3993_v43  ;;  %5359 = vmatmul.msk.f32.gmra.mxu0 %vm2665_vm3, %v4211_v38 }
 0x483   :  { %v3089_v54 = vpop.f32.mrf.mxu2 }
 0x484   :  { %v3090_v56 = vadd.f32 %v3089_v54, %v2922_v11  ;;  %v3283_v26 = vpop.f32.mrf.mxu3  ;;  %v2925_v30 = vpop.f32.mrf.mxu1 }
 0x486   :  { %v7405_v3 = vadd.f32 %v3283_v26, %v3090_v56  ;;  %v7407_v59 = vpop.f32.mrf.mxu0  ;;  %v3557_v26 = vld [vmem:[#allocation3 + $0x6b] sm:$0xff] }
 0x487   :  { %8305 = vst [vmem:[#allocation47_spill] sm:$0xff] %v7407_v59  ;;  %5283 = vmatmul.msk.f32.gmra.mxu1 %vm2665_vm3, %v3556_v16  ;;  %v4213_v16 = vld [vmem:[#allocation3 + $0x6d] sm:$0xff] }
 0x488   :  { %8304 = vst [vmem:[#allocation20_spill] sm:$0xff] %v7405_v3  ;;  %5309 = vmatmul.msk.f32.gmra.mxu2 %vm2665_vm3, %v3993_v43  ;;  %v3995_v43 = vld [vmem:[#allocation3 + $0x74] sm:$0xff] }
 0x489   :  { %5335 = vmatmul.msk.f32.gmra.mxu3 %vm2665_vm3, %v3994_v49  ;;  %5360 = vmatmul.msk.f32.gmra.mxu0 %vm2665_vm3, %v4212_v13 }
 0x48b   :  { %v3092_v38 = vpop.f32.mrf.mxu2 }
 0x48c   :  { %v3093_v27 = vadd.f32 %v3092_v38, %v2925_v30  ;;  %v3286_v11 = vpop.f32.mrf.mxu3  ;;  %v2928_v54 = vpop.f32.mrf.mxu1 }
 0x48e   :  { %v7413_v19 = vadd.f32 %v3286_v11, %v3093_v27  ;;  %v7415_v56 = vpop.f32.mrf.mxu0  ;;  %v3558_v11 = vld [vmem:[#allocation3 + $0x73] sm:$0xff] }
 0x48f   :  { %8307 = vst [vmem:[#allocation49_spill] sm:$0xff] %v7415_v56  ;;  %5284 = vmatmul.msk.f32.gmra.mxu1 %vm2665_vm3, %v3557_v26  ;;  %v4214_v26 = vld [vmem:[#allocation3 + $0x75] sm:$0xff] }
 0x490   :  { %8306 = vst [vmem:[#allocation42_spill] sm:$0xff] %v7413_v19  ;;  %5310 = vmatmul.msk.f32.gmra.mxu2 %vm2665_vm3, %v3994_v49  ;;  %v3996_v49 = vld [vmem:[#allocation3 + $0x7c] sm:$0xff] }
 0x491   :  { %5336 = vmatmul.msk.f32.gmra.mxu3 %vm2665_vm3, %v3995_v43  ;;  %5361 = vmatmul.msk.f32.gmra.mxu0 %vm2665_vm3, %v4213_v16 }
 0x493   :  { %v3095_v13 = vpop.f32.mrf.mxu2 }
 0x494   :  { %v3096_v59 = vadd.f32 %v3095_v13, %v2928_v54  ;;  %v3289_v30 = vpop.f32.mrf.mxu3  ;;  %v2931_v38 = vpop.f32.mrf.mxu1 }
 0x496   :  { %v7421_v3 = vadd.f32 %v3289_v30, %v3096_v59  ;;  %v7423_v27 = vpop.f32.mrf.mxu0  ;;  %v3559_v30 = vld [vmem:[#allocation3 + $0x7b] sm:$0xff] }
 0x497   :  { %8309 = vst [vmem:[#allocation53_spill] sm:$0xff] %v7423_v27  ;;  %5285 = vmatmul.msk.f32.gmra.mxu1 %vm2665_vm3, %v3558_v11  ;;  %v4215_v11 = vld [vmem:[#allocation3 + $0x7d] sm:$0xff] }
 0x498   :  { %8308 = vst [vmem:[#allocation55_spill] sm:$0xff] %v7421_v3  ;;  %5311 = vmatmul.msk.f32.gmra.mxu2 %vm2665_vm3, %v3995_v43  ;;  %v3997_v43 = vld [vmem:[#allocation3 + $0x84] sm:$0xff] }
 0x499   :  { %5337 = vmatmul.msk.f32.gmra.mxu3 %vm2665_vm3, %v3996_v49  ;;  %5362 = vmatmul.msk.f32.gmra.mxu0 %vm2665_vm3, %v4214_v26 }
 0x49b   :  { %v3098_v16 = vpop.f32.mrf.mxu2 }
 0x49c   :  { %v3099_v56 = vadd.f32 %v3098_v16, %v2931_v38  ;;  %v3292_v54 = vpop.f32.mrf.mxu3  ;;  %v2934_v13 = vpop.f32.mrf.mxu1 }
 0x49e   :  { %v7429_v19 = vadd.f32 %v3292_v54, %v3099_v56  ;;  %v7431_v59 = vpop.f32.mrf.mxu0  ;;  %v3560_v54 = vld [vmem:[#allocation3 + $0x83] sm:$0xff] }
 0x49f   :  { %8311 = vst [vmem:[#allocation52_spill] sm:$0xff] %v7431_v59  ;;  %5286 = vmatmul.msk.f32.gmra.mxu1 %vm2665_vm3, %v3559_v30  ;;  %v4216_v30 = vld [vmem:[#allocation3 + $0x85] sm:$0xff] }
 0x4a0   :  { %8310 = vst [vmem:[#allocation46_spill] sm:$0xff] %v7429_v19  ;;  %5312 = vmatmul.msk.f32.gmra.mxu2 %vm2665_vm3, %v3996_v49  ;;  %v3998_v49 = vld [vmem:[#allocation3 + $0x8c] sm:$0xff] }
 0x4a1   :  { %5338 = vmatmul.msk.f32.gmra.mxu3 %vm2665_vm3, %v3997_v43  ;;  %5363 = vmatmul.msk.f32.gmra.mxu0 %vm2665_vm3, %v4215_v11  ;;  %v4217_v19 = vld [vmem:[#allocation3 + $0x8d] sm:$0xff] }
 0x4a3   :  { %v3101_v26 = vpop.f32.mrf.mxu2 }
 0x4a4   :  { %v3102_v27 = vadd.f32 %v3101_v26, %v2934_v13  ;;  %v3295_v38 = vpop.f32.mrf.mxu3  ;;  %v2937_v16 = vpop.f32.mrf.mxu1  ;;  %v3033_v13 = vadd.f32 %v7239_v8, %v7233_v31 }
 0x4a6   :  { %v7437_v3 = vadd.f32 %v3295_v38, %v3102_v27  ;;  %v7439_v56 = vpop.f32.mrf.mxu0 }
 0x4a7   :  { %8313 = vst [vmem:[#allocation57_spill] sm:$0xff] %v7439_v56  ;;  %5287 = vmatmul.msk.f32.gmra.mxu1 %vm2665_vm3, %v3560_v54  ;;  %v3301_v56 = vadd.f32 %v7241_v17, %v3033_v13 }
 0x4a8   :  { %8312 = vst [vmem:[#allocation59_spill] sm:$0xff] %v7437_v3  ;;  %5313 = vmatmul.msk.f32.gmra.mxu2 %vm2665_vm3, %v3997_v43  ;;  %v3561_v43 = vld [vmem:[#allocation3 + $0x8b] sm:$0xff] }
 0x4a9   :  { %5339 = vmatmul.msk.f32.gmra.mxu3 %vm2665_vm3, %v3998_v49  ;;  %5364 = vmatmul.msk.f32.gmra.mxu0 %vm2665_vm3, %v4216_v30  ;;  %v3520_v59 = vadd.f32 %v7243_v60, %v3301_v56  ;;  %v3999_v30 = vld [vmem:[#allocation3 + $0x94] sm:$0xff]  ;;  %v3521_v56 = vadd.f32 %v7251_v24, %v7249_v9  ;;  %v3522_v9 = vadd.f32 %v7259_v50, %v7257_v0  ;;  %v3564_v0 = vld [vmem:[#allocation3 + $0xa3] sm:$0xff] }
 0x4aa   :  { %v3562_v60 = vld [vmem:[#allocation3 + $0x93] sm:$0xff]  ;;  %v3523_v50 = vadd.f32 %v7267_v2, %v7265_v58  ;;  %v3565_v58 = vld [vmem:[#allocation3 + $0xab] sm:$0xff]  ;;  %v3524_v2 = vadd.f32 %v7281_v33, %v7279_v12 }
 0x4ab   :  { %v3104_v11 = vpop.f32.mrf.mxu2 }
 0x4ac   :  { %v3105_v26 = vadd.f32 %v3104_v11, %v2937_v16  ;;  %v3298_v27 = vpop.f32.mrf.mxu3  ;;  %v3664_v38 = vpop.f32.mrf.mxu1 }
 0x4ad   :  { %v3739_v31 = vadd.f32 %v3664_v38, %v3520_v59 }
 0x4ae   :  { %v7448_v3 = vadd.f32 %v3298_v27, %v3105_v26  ;;  %v7450_v54 = vpop.f32.mrf.mxu0  ;;  %v4218_v27 = vld [vmem:[#allocation3 + $0x95] sm:$0xff] }
 0x4af   :  { %5288 = vmatmul.msk.f32.gmra.mxu1 %vm2665_vm3, %v3561_v43 }
 0x4b0   :  { %5314 = vmatmul.msk.f32.gmra.mxu2 %vm2665_vm3, %v3998_v49  ;;  %v4000_v49 = vld [vmem:[#allocation3 + $0x9c] sm:$0xff] }
 0x4b1   :  { %5340 = vmatmul.msk.f32.gmra.mxu3 %vm2665_vm3, %v3999_v30  ;;  %5365 = vmatmul.msk.f32.gmra.mxu0 %vm2665_vm3, %v4217_v19 }
 0x4b3   :  { %v3883_v8 = vpop.f32.mrf.mxu2 }
 0x4b4   :  { %v3958_v17 = vadd.f32 %v3883_v8, %v3739_v31  ;;  %v4102_v16 = vpop.f32.mrf.mxu3  ;;  %v3667_v13 = vpop.f32.mrf.mxu1 }
 0x4b5   :  { %v3740_v19 = vadd.f32 %v3667_v13, %v3521_v56 }
 0x4b6   :  { %v7457_v11 = vadd.f32 %v4102_v16, %v3958_v17  ;;  %v7459_v26 = vpop.f32.mrf.mxu0  ;;  %v3563_v16 = vld [vmem:[#allocation3 + $0x9b] sm:$0xff] }
 0x4b7   :  { %5289 = vmatmul.msk.f32.gmra.mxu1 %vm2665_vm3, %v3562_v60  ;;  %v4219_v60 = vld [vmem:[#allocation3 + $0x9d] sm:$0xff] }
 0x4b8   :  { %5315 = vmatmul.msk.f32.gmra.mxu2 %vm2665_vm3, %v3999_v30  ;;  %v4001_v30 = vld [vmem:[#allocation3 + $0xa4] sm:$0xff] }
 0x4b9   :  { %5341 = vmatmul.msk.f32.gmra.mxu3 %vm2665_vm3, %v4000_v49  ;;  %5366 = vmatmul.msk.f32.gmra.mxu0 %vm2665_vm3, %v4218_v27 }
 0x4bb   :  { %v3886_v59 = vpop.f32.mrf.mxu2 }
 0x4bc   :  { %v3959_v38 = vadd.f32 %v3886_v59, %v3740_v19  ;;  %v4105_v43 = vpop.f32.mrf.mxu3  ;;  %v3670_v31 = vpop.f32.mrf.mxu1 }
 0x4bd   :  { %v3741_v13 = vadd.f32 %v3670_v31, %v3522_v9 }
 0x4be   :  { %v4178_v8 = vadd.f32 %v4105_v43, %v3959_v38  ;;  %v4324_v17 = vpop.f32.mrf.mxu0 }
 0x4bf   :  { %5290 = vmatmul.msk.f32.gmra.mxu1 %vm2665_vm3, %v3563_v16 }
 0x4c0   :  { %v7469_v24 = vadd.f32 %v4324_v17, %v4178_v8  ;;  %5316 = vmatmul.msk.f32.gmra.mxu2 %vm2665_vm3, %v4000_v49  ;;  %v4002_v49 = vld [vmem:[#allocation3 + $0xac] sm:$0xff] }
 0x4c1   :  { %5342 = vmatmul.msk.f32.gmra.mxu3 %vm2665_vm3, %v4001_v30  ;;  %5367 = vmatmul.msk.f32.gmra.mxu0 %vm2665_vm3, %v4219_v60  ;;  %v4220_v17 = vld [vmem:[#allocation3 + $0xa5] sm:$0xff] }
 0x4c3   :  { %v3889_v56 = vpop.f32.mrf.mxu2 }
 0x4c4   :  { %v3960_v27 = vadd.f32 %v3889_v56, %v3741_v13  ;;  %v4108_v19 = vpop.f32.mrf.mxu3  ;;  %v3673_v59 = vpop.f32.mrf.mxu1 }
 0x4c5   :  { %v3742_v31 = vadd.f32 %v3673_v59, %v3523_v50 }
 0x4c6   :  { %v4179_v38 = vadd.f32 %v4108_v19, %v3960_v27  ;;  %v4327_v43 = vpop.f32.mrf.mxu0 }
 0x4c7   :  { %5291 = vmatmul.msk.f32.gmra.mxu1 %vm2665_vm3, %v3564_v0 }
 0x4c8   :  { %v7477_v8 = vadd.f32 %v4327_v43, %v4179_v38  ;;  %5317 = vmatmul.msk.f32.gmra.mxu2 %vm2665_vm3, %v4001_v30  ;;  %v4003_v30 = vld [vmem:[#allocation3 + $0xb4] sm:$0xff] }
 0x4c9   :  { %5343 = vmatmul.msk.f32.gmra.mxu3 %vm2665_vm3, %v4002_v49  ;;  %5368 = vmatmul.msk.f32.gmra.mxu0 %vm2665_vm3, %v4220_v17  ;;  %v4221_v38 = vld [vmem:[#allocation3 + $0xad] sm:$0xff] }
 0x4cb   :  { %v3892_v16 = vpop.f32.mrf.mxu2 }
 0x4cc   :  { %v3961_v9 = vadd.f32 %v3892_v16, %v3742_v31  ;;  %v4111_v60 = vpop.f32.mrf.mxu3  ;;  %v3676_v13 = vpop.f32.mrf.mxu1  ;;  %v3566_v31 = vld [vmem:[#allocation3 + $0xb3] sm:$0xff] }
 0x4cd   :  { %v3743_v59 = vadd.f32 %v3676_v13, %v3524_v2 }
 0x4ce   :  { %v4180_v56 = vadd.f32 %v4111_v60, %v3961_v9  ;;  %v4330_v27 = vpop.f32.mrf.mxu0  ;;  %v4004_v9 = vld [vmem:[#allocation3 + $0xbc] sm:$0xff] }
 0x4cf   :  { %5292 = vmatmul.msk.f32.gmra.mxu1 %vm2665_vm3, %v3565_v58  ;;  %v4222_v60 = vld [vmem:[#allocation3 + $0xb5] sm:$0xff] }
 0x4d0   :  { %v7485_v19 = vadd.f32 %v4330_v27, %v4180_v56  ;;  %5318 = vmatmul.msk.f32.gmra.mxu2 %vm2665_vm3, %v4002_v49  ;;  %v3525_v49 = vadd.f32 %v7295_v44, %v7293_v35  ;;  %v3567_v35 = vld [vmem:[#allocation3 + $0xbb] sm:$0xff]  ;;  %v3526_v44 = vadd.f32 %v7303_v10, %v7301_v37  ;;  %v3568_v37 = vld [vmem:[#allocation3 + $0xc3] sm:$0xff]  ;;  %v3527_v10 = vadd.f32 %v7311_v47, %v7309_v29  ;;  %v3569_v47 = vld [vmem:[#allocation3 + $0xcb] sm:$0xff] }
 0x4d1   :  { %5344 = vmatmul.msk.f32.gmra.mxu3 %vm2665_vm3, %v4003_v30  ;;  %5369 = vmatmul.msk.f32.gmra.mxu0 %vm2665_vm3, %v4221_v38  ;;  %v4007_v29 = vld [vmem:[#allocation3 + $0xd4] sm:$0xff] }
 0x4d3   :  { %v3895_v43 = vpop.f32.mrf.mxu2 }
 0x4d4   :  { %v3962_v0 = vadd.f32 %v3895_v43, %v3743_v59  ;;  %v4114_v50 = vpop.f32.mrf.mxu3  ;;  %v3679_v12 = vpop.f32.mrf.mxu1  ;;  %v4223_v43 = vld [vmem:[#allocation3 + $0xbd] sm:$0xff] }
 0x4d5   :  { %v3744_v41 = vadd.f32 %v3679_v12, %v3525_v49 }
 0x4d6   :  { %v4181_v33 = vadd.f32 %v4114_v50, %v3962_v0  ;;  %v4333_v17 = vpop.f32.mrf.mxu0 }
 0x4d7   :  { %5293 = vmatmul.msk.f32.gmra.mxu1 %vm2665_vm3, %v3566_v31 }
 0x4d8   :  { %v7494_v16 = vadd.f32 %v4333_v17, %v4181_v33  ;;  %5319 = vmatmul.msk.f32.gmra.mxu2 %vm2665_vm3, %v4003_v30  ;;  %v4005_v30 = vld [vmem:[#allocation3 + $0xc4] sm:$0xff] }
 0x4d9   :  { %5345 = vmatmul.msk.f32.gmra.mxu3 %vm2665_vm3, %v4004_v9  ;;  %5370 = vmatmul.msk.f32.gmra.mxu0 %vm2665_vm3, %v4222_v60 }
 0x4db   :  { %v3898_v13 = vpop.f32.mrf.mxu2 }
 0x4dc   :  { %v3963_v56 = vadd.f32 %v3898_v13, %v3744_v41  ;;  %v4117_v27 = vpop.f32.mrf.mxu3  ;;  %v3682_v58 = vpop.f32.mrf.mxu1  ;;  %v4224_v41 = vld [vmem:[#allocation3 + $0xc5] sm:$0xff] }
 0x4dd   :  { %v3745_v0 = vadd.f32 %v3682_v58, %v3526_v44  ;;  %v3528_v44 = vadd.f32 %v7319_v57, %v7317_v23  ;;  %v4421_v23 = vld [vmem:[#allocation3 + $0x16] sm:$0xff]  ;;  %v3529_v57 = vadd.f32 %v7327_v40, %v7325_v45 }
 0x4de   :  { %v4182_v2 = vadd.f32 %v4117_v27, %v3963_v56  ;;  %v4336_v38 = vpop.f32.mrf.mxu0 }
 0x4df   :  { %5294 = vmatmul.msk.f32.gmra.mxu1 %vm2665_vm3, %v3567_v35 }
 0x4e0   :  { %v7502_v59 = vadd.f32 %v4336_v38, %v4182_v2  ;;  %5320 = vmatmul.msk.f32.gmra.mxu2 %vm2665_vm3, %v4004_v9  ;;  %v4006_v9 = vld [vmem:[#allocation3 + $0xcc] sm:$0xff] }
 0x4e1   :  { %5346 = vmatmul.msk.f32.gmra.mxu3 %vm2665_vm3, %v4005_v30  ;;  %5371 = vmatmul.msk.f32.gmra.mxu0 %vm2665_vm3, %v4223_v43 }
 0x4e3   :  { %v3901_v50 = vpop.f32.mrf.mxu2 }
 0x4e4   :  { %v3964_v12 = vadd.f32 %v3901_v50, %v3745_v0  ;;  %v4120_v33 = vpop.f32.mrf.mxu3  ;;  %v3685_v17 = vpop.f32.mrf.mxu1 }
 0x4e5   :  { %v3746_v13 = vadd.f32 %v3685_v17, %v3527_v10 }
 0x4e6   :  { %v4183_v31 = vadd.f32 %v4120_v33, %v3964_v12  ;;  %v4339_v49 = vpop.f32.mrf.mxu0 }
 0x4e7   :  { %5295 = vmatmul.msk.f32.gmra.mxu1 %vm2665_vm3, %v3568_v37  ;;  %v4226_v37 = vld [vmem:[#allocation3 + $0xd5] sm:$0xff] }
 0x4e8   :  { %v7510_v60 = vadd.f32 %v4339_v49, %v4183_v31  ;;  %5321 = vmatmul.msk.f32.gmra.mxu2 %vm2665_vm3, %v4005_v30  ;;  %v4225_v30 = vld [vmem:[#allocation3 + $0xcd] sm:$0xff] }
 0x4e9   :  { %5347 = vmatmul.msk.f32.gmra.mxu3 %vm2665_vm3, %v4006_v9  ;;  %5372 = vmatmul.msk.f32.gmra.mxu0 %vm2665_vm3, %v4224_v41 }
 0x4eb   :  { %v3904_v56 = vpop.f32.mrf.mxu2 }
 0x4ec   :  { %v3965_v27 = vadd.f32 %v3904_v56, %v3746_v13  ;;  %v4123_v58 = vpop.f32.mrf.mxu3  ;;  %v3688_v2 = vpop.f32.mrf.mxu1 }
 0x4ed   :  { %v3747_v0 = vadd.f32 %v3688_v2, %v3528_v44 }
 0x4ee   :  { %v4184_v38 = vadd.f32 %v4123_v58, %v3965_v27  ;;  %v4342_v35 = vpop.f32.mrf.mxu0 }
 0x4ef   :  { %5296 = vmatmul.msk.f32.gmra.mxu1 %vm2665_vm3, %v3569_v47 }
 0x4f0   :  { %v7518_v43 = vadd.f32 %v4342_v35, %v4184_v38  ;;  %5322 = vmatmul.msk.f32.gmra.mxu2 %vm2665_vm3, %v4006_v9  ;;  %v4422_v38 = vld [vmem:[#allocation3 + $0x1e] sm:$0xff]  ;;  %v3530_v35 = vadd.f32 %v7335_v6, %v7333_v32 }
 0x4f1   :  { %5373 = vmatmul.msk.f32.gmra.mxu0 %vm2665_vm3, %v4225_v30  ;;  %5348 = vmatmul.msk.f32.gmra.mxu3 %vm2665_vm3, %v4007_v29 }
 0x4f3   :  { %v3907_v50 = vpop.f32.mrf.mxu2 }
 0x4f4   :  { %v3966_v12 = vadd.f32 %v3907_v50, %v3747_v0  ;;  %v4126_v33 = vpop.f32.mrf.mxu3  ;;  %v3691_v17 = vpop.f32.mrf.mxu1 }
 0x4f5   :  { %v3748_v9 = vadd.f32 %v3691_v17, %v3529_v57 }
 0x4f6   :  { %v4185_v31 = vadd.f32 %v4126_v33, %v3966_v12  ;;  %v4345_v49 = vpop.f32.mrf.mxu0  ;;  %v4423_v12 = vld [vmem:[#allocation3 + $0x26] sm:$0xff]  ;;  %v3531_v33 = vadd.f32 %v7343_v61, %v7341_v52 }
 0x4f7   :  { %5376 = vmatmul.msk.f32.vlgmr.msra.gmra.mxu1 %vm2665_vm3, %v4421_v23 }
 0x4f8   :  { %v7526_v10 = vadd.f32 %v4345_v49, %v4185_v31 }
 0x4f9   :  { %5374 = vmatmul.msk.f32.gmra.mxu0 %vm2665_vm3, %v4226_v37 }
 0x4fb   :  { %v3910_v41 = vpop.f32.mrf.mxu2 }
 0x4fc   :  { %v3967_v13 = vadd.f32 %v3910_v41, %v3748_v9  ;;  %v4129_v56 = vpop.f32.mrf.mxu3  ;;  %v3694_v27 = vpop.f32.mrf.mxu1  ;;  %v4424_v9 = vld [vmem:[#allocation3 + $0x2e] sm:$0xff]  ;;  %v3532_v41 = vadd.f32 %v7351_v42, %v7349_v34 }
 0x4fd   :  { %v3749_v45 = vadd.f32 %v3694_v27, %v3530_v35  ;;  %v4425_v35 = vld [vmem:[#allocation3 + $0x36] sm:$0xff] }
 0x4fe   :  { %v4186_v58 = vadd.f32 %v4129_v56, %v3967_v13  ;;  %v4348_v2 = vpop.f32.mrf.mxu0 }
 0x4ff   :  { %5377 = vmatmul.msk.f32.gmra.mxu1 %vm2665_vm3, %v4422_v38 }
 0x500   :  { %v7532_v29 = vadd.f32 %v4348_v2, %v4186_v58 }
 0x503   :  { %v3913_v40 = vpop.f32.mrf.mxu2 }
 0x504   :  { %v3968_v47 = vadd.f32 %v3913_v40, %v3749_v45  ;;  %v4132_v44 = vpop.f32.mrf.mxu3  ;;  %v3697_v30 = vpop.f32.mrf.mxu1  ;;  %v3533_v45 = vadd.f32 %v7359_v14, %v7357_v4  ;;  %v4427_v4 = vld [vmem:[#allocation3 + $0x46] sm:$0xff] }
 0x505   :  { %v3750_v32 = vadd.f32 %v3697_v30, %v3531_v33 }
 0x506   :  { %v4187_v0 = vadd.f32 %v4132_v44, %v3968_v47  ;;  %v4351_v50 = vpop.f32.mrf.mxu0 }
 0x507   :  { %5378 = vmatmul.msk.f32.gmra.mxu1 %vm2665_vm3, %v4423_v12  ;;  %v4426_v12 = vld [vmem:[#allocation3 + $0x3e] sm:$0xff] }
 0x508   :  { %v7537_v17 = vadd.f32 %v4351_v50, %v4187_v0 }
 0x50b   :  { %v3916_v6 = vpop.f32.mrf.mxu2 }
 0x50c   :  { %v3969_v31 = vadd.f32 %v3916_v6, %v3750_v32  ;;  %v4135_v49 = vpop.f32.mrf.mxu3  ;;  %v3700_v37 = vpop.f32.mrf.mxu1  ;;  %v4428_v6 = vld [vmem:[#allocation3 + $0x4e] sm:$0xff] }
 0x50d   :  { %v3751_v52 = vadd.f32 %v3700_v37, %v3532_v41 }
 0x50e   :  { %v4188_v23 = vadd.f32 %v4135_v49, %v3969_v31  ;;  %v4354_v57 = vpop.f32.mrf.mxu0  ;;  %v4429_v49 = vld [vmem:[#allocation3 + $0x56] sm:$0xff] }
 0x50f   :  { %5379 = vmatmul.msk.f32.gmra.mxu1 %vm2665_vm3, %v4424_v9  ;;  %v4431_v9 = vld [vmem:[#allocation3 + $0x66] sm:$0xff] }
 0x510   :  { %v7542_v13 = vadd.f32 %v4354_v57, %v4188_v23  ;;  %v4430_v23 = vld [vmem:[#allocation3 + $0x5e] sm:$0xff] }
 0x513   :  { %v3919_v61 = vpop.f32.mrf.mxu2 }
 0x514   :  { %v3970_v56 = vadd.f32 %v3919_v61, %v3751_v52  ;;  %v4138_v27 = vpop.f32.mrf.mxu3  ;;  %v3703_v58 = vpop.f32.mrf.mxu1  ;;  %v4432_v52 = vld [vmem:[#allocation3 + $0x6e] sm:$0xff] }
 0x515   :  { %v3752_v34 = vadd.f32 %v3703_v58, %v3533_v45  ;;  %v4434_v58 = vld [vmem:[#allocation3 + $0x7e] sm:$0xff]  ;;  %v4436_v45 = vld [vmem:[#allocation3 + $0x8e] sm:$0xff] }
 0x516   :  { %v4189_v2 = vadd.f32 %v4138_v27, %v3970_v56  ;;  %v4357_v38 = vpop.f32.mrf.mxu0  ;;  %v4433_v56 = vld [vmem:[#allocation3 + $0x76] sm:$0xff] }
 0x517   :  { %5380 = vmatmul.msk.f32.gmra.mxu1 %vm2665_vm3, %v4425_v35 }
 0x518   :  { %v7547_v40 = vadd.f32 %v4357_v38, %v4189_v2  ;;  %v4435_v38 = vld [vmem:[#allocation3 + $0x86] sm:$0xff] }
 0x51b   :  { %v3922_v42 = vpop.f32.mrf.mxu2 }
 0x51c   :  { %v3971_v47 = vadd.f32 %v3922_v42, %v3752_v34  ;;  %v4141_v44 = vpop.f32.mrf.mxu3  ;;  %v7550_v30 = vpop.f32.mrf.mxu1  ;;  %v4437_v42 = vld [vmem:[#allocation3 + $0x96] sm:$0xff] }
 0x51e   :  { %v4190_v0 = vadd.f32 %v4141_v44, %v3971_v47  ;;  %v4360_v50 = vpop.f32.mrf.mxu0 }
 0x51f   :  { %5381 = vmatmul.msk.f32.gmra.mxu1 %vm2665_vm3, %v4426_v12 }
 0x520   :  { %v7552_v33 = vadd.f32 %v4360_v50, %v4190_v0  ;;  %v4438_v0 = vld [vmem:[#allocation3 + $0x9e] sm:$0xff] }
 0x524   :  { %v7555_v32 = vpop.f32.mrf.mxu1 }
 0x527   :  { %5382 = vmatmul.msk.f32.gmra.mxu1 %vm2665_vm3, %v4427_v4  ;;  %v4439_v4 = vld [vmem:[#allocation3 + $0xa6] sm:$0xff] }
 0x52c   :  { %v7558_v14 = vpop.f32.mrf.mxu1 }
 0x52f   :  { %5383 = vmatmul.msk.f32.gmra.mxu1 %vm2665_vm3, %v4428_v6 }
 0x534   :  { %v7561_v31 = vpop.f32.mrf.mxu1 }
 0x537   :  { %5384 = vmatmul.msk.f32.gmra.mxu1 %vm2665_vm3, %v4429_v49 }
 0x53c   :  { %v7564_v37 = vpop.f32.mrf.mxu1 }
 0x53f   :  { %5385 = vmatmul.msk.f32.gmra.mxu1 %vm2665_vm3, %v4430_v23  ;;  %v4440_v23 = vld [vmem:[#allocation3 + $0xae] sm:$0xff] }
 0x544   :  { %v7567_v57 = vpop.f32.mrf.mxu1 }
 0x547   :  { %5386 = vmatmul.msk.f32.gmra.mxu1 %vm2665_vm3, %v4431_v9 }
 0x54c   :  { %v7570_v41 = vpop.f32.mrf.mxu1 }
 0x54f   :  { %5387 = vmatmul.msk.f32.gmra.mxu1 %vm2665_vm3, %v4432_v52  ;;  %v4441_v52 = vld [vmem:[#allocation3 + $0xb6] sm:$0xff] }
 0x554   :  { %v7573_v61 = vpop.f32.mrf.mxu1 }
 0x557   :  { %5388 = vmatmul.msk.f32.gmra.mxu1 %vm2665_vm3, %v4433_v56 }
 0x55c   :  { %v7576_v27 = vpop.f32.mrf.mxu1 }
 0x55f   :  { %5389 = vmatmul.msk.f32.gmra.mxu1 %vm2665_vm3, %v4434_v58  ;;  %v4442_v58 = vld [vmem:[#allocation3 + $0xbe] sm:$0xff] }
 0x564   :  { %v7579_v2 = vpop.f32.mrf.mxu1 }
 0x567   :  { %5390 = vmatmul.msk.f32.gmra.mxu1 %vm2665_vm3, %v4435_v38 }
 0x56c   :  { %v7582_v35 = vpop.f32.mrf.mxu1 }
 0x56f   :  { %5391 = vmatmul.msk.f32.gmra.mxu1 %vm2665_vm3, %v4436_v45  ;;  %v4443_v45 = vld [vmem:[#allocation3 + $0xc6] sm:$0xff] }
 0x574   :  { %v4540_v34 = vpop.f32.mrf.mxu1 }
 0x577   :  { %5392 = vmatmul.msk.f32.gmra.mxu1 %vm2665_vm3, %v4437_v42 }
 0x57c   :  { %v4543_v47 = vpop.f32.mrf.mxu1 }
 0x57d   :  { %v7587_v44 = vadd.f32 %v4543_v47, %v7469_v24  ;;  %v4444_v47 = vld [vmem:[#allocation3 + $0xce] sm:$0xff] }
 0x57f   :  { %8314 = vst [vmem:[#allocation21_spill] sm:$0xff] %v7587_v44  ;;  %5393 = vmatmul.msk.f32.gmra.mxu1 %vm2665_vm3, %v4438_v0 }
 0x584   :  { %v4546_v50 = vpop.f32.mrf.mxu1 }
 0x585   :  { %v7591_v12 = vadd.f32 %v4546_v50, %v7477_v8 }
 0x587   :  { %8315 = vst [vmem:[#allocation22_spill] sm:$0xff] %v7591_v12  ;;  %5394 = vmatmul.msk.f32.gmra.mxu1 %vm2665_vm3, %v4439_v4 }
 0x58c   :  { %v4549_v6 = vpop.f32.mrf.mxu1 }
 0x58d   :  { %v7595_v49 = vadd.f32 %v4549_v6, %v7485_v19 }
 0x58f   :  { %8316 = vst [vmem:[#allocation50_spill] sm:$0xff] %v7595_v49  ;;  %5395 = vmatmul.msk.f32.gmra.mxu1 %vm2665_vm3, %v4440_v23 }
 0x594   :  { %v4552_v9 = vpop.f32.mrf.mxu1 }
 0x595   :  { %v7599_v24 = vadd.f32 %v4552_v9, %v7494_v16 }
 0x597   :  { %8317 = vst [vmem:[#allocation56_spill] sm:$0xff] %v7599_v24  ;;  %5396 = vmatmul.msk.f32.gmra.mxu1 %vm2665_vm3, %v4441_v52 }
 0x59c   :  { %v4555_v56 = vpop.f32.mrf.mxu1 }
 0x59d   :  { %v7603_v8 = vadd.f32 %v4555_v56, %v7502_v59  ;;  %v4445_v59 = vld [vmem:[#allocation3 + $0xd6] sm:$0xff]  ;;  %v4643_v56 = vmul.f32 %v7595_v49, %v8291_v28 }
 0x59e   :  { %v8328_v49 = vld [vmem:[#allocation18_spill] sm:$0xff] }
 0x59f   :  { %8318 = vst [vmem:[#allocation63_spill] sm:$0xff] %v7603_v8  ;;  %5397 = vmatmul.msk.f32.gmra.mxu1 %vm2665_vm3, %v4442_v58 }
 0x5a4   :  { %v4558_v38 = vpop.f32.mrf.mxu1 }
 0x5a5   :  { %v7607_v19 = vadd.f32 %v4558_v38, %v7510_v60  ;;  %v4396_v60 = vadd.f32 %v7459_v26, %v7457_v11  ;;  %v3925_v11 = vpop.f32.mrf.mxu2 }
 0x5a7   :  { %8319 = vst [vmem:[#allocation23_spill] sm:$0xff] %v7607_v19  ;;  %5398 = vmatmul.msk.f32.gmra.mxu1 %vm2665_vm3, %v4443_v45  ;;  %v7620_v6 = vadd.f32 %v4540_v34, %v4396_v60  ;;  %v4645_v45 = vmul.f32 %v7603_v8, %v8293_v20 }
 0x5a9   :  { %8322 = vst [vmem:[#allocation60_spill] sm:$0xff] %v7620_v6  ;;  %v4640_v9 = vmul.f32 %v7620_v6, %v6570_v7 }
 0x5ac   :  { %v4561_v42 = vpop.f32.mrf.mxu1 }
 0x5ad   :  { %v7611_v16 = vadd.f32 %v4561_v42, %v7518_v43  ;;  %v4641_v43 = vmul.f32 %v7587_v44, %v6593_v48 }
 0x5af   :  { %8320 = vst [vmem:[#allocation24_spill] sm:$0xff] %v7611_v16  ;;  %5399 = vmatmul.msk.f32.gmra.mxu1 %vm2665_vm3, %v4444_v47  ;;  %v4665_v52 = vadd.f32 %v4641_v43, %v4640_v9  ;;  %v4646_v47 = vmul.f32 %v7607_v19, %v8294_v51  ;;  %v4647_v60 = vmul.f32 %v7611_v16, %v8295_v46  ;;  %v7644_v43 = vpop.f32.mrf.mxu0 }
 0x5b4   :  { %v4564_v0 = vpop.f32.mrf.mxu1 }
 0x5b5   :  { %v7615_v50 = vadd.f32 %v4564_v0, %v7526_v10  ;;  %v4642_v10 = vmul.f32 %v7591_v12, %v6584_v18  ;;  %v4144_v0 = vpop.f32.mrf.mxu3  ;;  %v3536_v18 = vadd.f32 %v7383_v36, %v7381_v63  ;;  %v8331_v12 = vld [vmem:[#allocation19_spill] sm:$0xff]  ;;  %v8332_v36 = vld [vmem:[#allocation20_spill] sm:$0xff] }
 0x5b7   :  { %8321 = vst [vmem:[#allocation54_spill] sm:$0xff] %v7615_v50  ;;  %5400 = vmatmul.msk.f32.gmra.mxu1 %vm2665_vm3, %v4445_v59  ;;  %v4666_v34 = vadd.f32 %v4665_v52, %v4642_v10  ;;  %v3928_v52 = vpop.f32.mrf.mxu2 }
 0x5b9   :  { %v4667_v38 = vadd.f32 %v4666_v34, %v4643_v56 }
 0x5bc   :  { %v4567_v4 = vpop.f32.mrf.mxu1 }
 0x5bd   :  { %v7623_v23 = vadd.f32 %v4567_v4, %v7532_v29  ;;  %v4644_v29 = vmul.f32 %v7599_v24, %v8292_v1  ;;  %v3535_v1 = vadd.f32 %v7375_v25, %v7373_v21  ;;  %v3755_v21 = vadd.f32 %v7558_v14, %v3536_v18  ;;  %v8330_v25 = vld [vmem:[#allocation51_spill] sm:$0xff] }
 0x5bf   :  { %8323 = vst [vmem:[#allocation68_spill] sm:$0xff] %v7623_v23  ;;  %v4668_v42 = vadd.f32 %v4667_v38, %v4644_v29  ;;  %v3754_v16 = vadd.f32 %v7555_v32, %v3535_v1 }
 0x5c1   :  { %v4669_v59 = vadd.f32 %v4668_v42, %v4645_v45  ;;  %v4147_v42 = vpop.f32.mrf.mxu3  ;;  %v3973_v48 = vadd.f32 %v3928_v52, %v3754_v16  ;;  %v8333_v16 = vld [vmem:[#allocation47_spill] sm:$0xff] }
 0x5c3   :  { %v4670_v9 = vadd.f32 %v4669_v59, %v4646_v47  ;;  %v4192_v63 = vadd.f32 %v4147_v42, %v3973_v48 }
 0x5c4   :  { %v4570_v26 = vpop.f32.mrf.mxu1 }
 0x5c5   :  { %v7636_v58 = vadd.f32 %v4570_v26, %v7537_v17  ;;  %v4648_v17 = vmul.f32 %v7615_v50, %v8286_v22  ;;  %v4671_v56 = vadd.f32 %v4670_v9, %v4647_v60  ;;  %v4649_v26 = vmul.f32 %v7623_v23, %v8296_v55  ;;  %v3931_v9 = vpop.f32.mrf.mxu2 }
 0x5c6   :  { %v3534_v23 = vadd.f32 %v7367_v5, %v7365_v15  ;;  %v8329_v15 = vld [vmem:[#allocation45_spill] sm:$0xff]  ;;  %v3974_v1 = vadd.f32 %v3931_v9, %v3755_v21  ;;  %v8339_v21 = vld [vmem:[#allocation52_spill] sm:$0xff] }
 0x5c7   :  { %8324 = vst [vmem:[#allocation62_spill] sm:$0xff] %v7636_v58  ;;  %v4672_v34 = vadd.f32 %v4671_v56, %v4648_v17  ;;  %v4650_v29 = vmul.f32 %v7636_v58, %v8288_v62  ;;  %v3537_v5 = vadd.f32 %v8329_v15, %v8328_v49  ;;  %v8335_v49 = vld [vmem:[#allocation49_spill] sm:$0xff] }
 0x5c8   :  { %v3753_v28 = vadd.f32 %v7550_v30, %v3534_v23  ;;  %v3538_v30 = vadd.f32 %v8331_v12, %v8330_v25 }
 0x5c9   :  { %v4673_v38 = vadd.f32 %v4672_v34, %v4649_v26  ;;  %v4150_v34 = vpop.f32.mrf.mxu3  ;;  %v3756_v32 = vadd.f32 %v7561_v31, %v3537_v5 }
 0x5ca   :  { %v3972_v19 = vadd.f32 %v3925_v11, %v3753_v28  ;;  %v3757_v28 = vadd.f32 %v7564_v37, %v3538_v30  ;;  %v3539_v11 = vadd.f32 %v8333_v16, %v8332_v36  ;;  %v4193_v14 = vadd.f32 %v4150_v34, %v3974_v1  ;;  %v8340_v1 = vld [vmem:[#allocation13_spill] sm:$0xff] }
 0x5cb   :  { %v4674_v59 = vadd.f32 %v4673_v38, %v4650_v29 }
 0x5cc   :  { %v4573_v4 = vpop.f32.mrf.mxu1  ;;  %v4191_v23 = vadd.f32 %v4144_v0, %v3972_v19  ;;  %v3758_v12 = vadd.f32 %v7567_v57, %v3539_v11  ;;  %v8336_v19 = vld [vmem:[#allocation55_spill] sm:$0xff]  ;;  %v8337_v0 = vld [vmem:[#allocation53_spill] sm:$0xff] }
 0x5cd   :  { %v7649_v10 = vadd.f32 %v4573_v4, %v7542_v13  ;;  %v4366_v13 = vpop.f32.mrf.mxu0  ;;  %v3934_v62 = vpop.f32.mrf.mxu2  ;;  %v3541_v31 = vadd.f32 %v8337_v0, %v8336_v19 }
 0x5ce   :  { %v3975_v52 = vadd.f32 %v3934_v62, %v3756_v32  ;;  %v4410_v18 = vadd.f32 %v7644_v43, %v4191_v23  ;;  %v4411_v48 = vadd.f32 %v4366_v13, %v4192_v63 }
 0x5cf   :  { %8325 = vst [vmem:[#allocation25_spill] sm:$0xff] %v7649_v10  ;;  %v4651_v45 = vmul.f32 %v7649_v10, %v6697_v39  ;;  %v3760_v43 = vadd.f32 %v7573_v61, %v3541_v31 }
 0x5d1   :  { %v4675_v4 = vadd.f32 %v4674_v59, %v4651_v45  ;;  %v4153_v29 = vpop.f32.mrf.mxu3 }
 0x5d2   :  { %v4194_v37 = vadd.f32 %v4153_v29, %v3975_v52  ;;  %v8342_v29 = vld [vmem:[#allocation57_spill] sm:$0xff]  ;;  %v8344_v52 = vld [vmem:[#allocation44_spill] sm:$0xff] }
 0x5d4   :  { %v4576_v47 = vpop.f32.mrf.mxu1 }
 0x5d5   :  { %v7658_v22 = vadd.f32 %v4576_v47, %v7547_v40  ;;  %v4369_v39 = vpop.f32.mrf.mxu0  ;;  %v3937_v40 = vpop.f32.mrf.mxu2 }
 0x5d6   :  { %v3976_v44 = vadd.f32 %v3937_v40, %v3757_v28  ;;  %v8338_v40 = vld [vmem:[#allocation46_spill] sm:$0xff]  ;;  %v4412_v57 = vadd.f32 %v4369_v39, %v4193_v14 }
 0x5d7   :  { %8326 = vst [vmem:[#allocation26_spill] sm:$0xff] %v7658_v22  ;;  %v4652_v60 = vmul.f32 %v7658_v22, %v8289_v53  ;;  %v3542_v25 = vadd.f32 %v8339_v21, %v8338_v40  ;;  %v8349_v21 = vld [vmem:[#allocation16_spill] sm:$0xff] }
 0x5d9   :  { %v7662_v17 = vadd.f32 %v4675_v4, %v4652_v60  ;;  %v4156_v46 = vpop.f32.mrf.mxu3  ;;  %v3761_v63 = vadd.f32 %v7576_v27, %v3542_v25 }
 0x5dc   :  { %v4579_v56 = vpop.f32.mrf.mxu1 }
 0x5dd   :  { %v7665_v26 = vadd.f32 %v4579_v56, %v7552_v33  ;;  %v4372_v38 = vpop.f32.mrf.mxu0  ;;  %v3940_v53 = vpop.f32.mrf.mxu2 }
 0x5de   :  { %v3977_v9 = vadd.f32 %v3940_v53, %v3758_v12  ;;  %v8341_v53 = vld [vmem:[#allocation59_spill] sm:$0xff]  ;;  %v4413_v28 = vadd.f32 %v4372_v38, %v4194_v37 }
 0x5df   :  { %v4653_v13 = vmul.f32 %v7665_v26, %v8340_v1 }
 0x5e1   :  { %v4159_v45 = vpop.f32.mrf.mxu3 }
 0x5e2   :  { %v4196_v36 = vadd.f32 %v4159_v45, %v3977_v9  ;;  %v8347_v9 = vld [vmem:[#allocation15_spill] sm:$0xff] }
 0x5e4   :  { %v4582_v55 = vpop.f32.mrf.mxu1 }
 0x5e5   :  { %v4375_v51 = vpop.f32.mrf.mxu0  ;;  %v3943_v4 = vpop.f32.mrf.mxu2  ;;  %v7705_v62 = vadd.f32 %v4582_v55, %v4410_v18 }
 0x5e9   :  { %v4162_v56 = vpop.f32.mrf.mxu3 }
 0x5ec   :  { %v4585_v47 = vpop.f32.mrf.mxu1 }
 0x5ed   :  { %v7669_v60 = vpop.f32.mrf.mxu0  ;;  %v3946_v58 = vpop.f32.mrf.mxu2  ;;  %v7712_v32 = vadd.f32 %v4585_v47, %v4411_v48  ;;  %v4677_v47 = vadd.f32 %v7662_v17, %v4653_v13  ;;  %v3544_v17 = vadd.f32 %v7450_v54, %v7448_v3 }
 0x5ee   :  { %v3979_v55 = vadd.f32 %v3946_v58, %v3760_v43 }
 0x5f1   :  { %v4165_v50 = vpop.f32.mrf.mxu3 }
 0x5f2   :  { %v4198_v27 = vadd.f32 %v4165_v50, %v3979_v55  ;;  %v8346_v50 = vld [vmem:[#allocation38_spill] sm:$0xff] }
 0x5f4   :  { %v4588_v10 = vpop.f32.mrf.mxu1 }
 0x5f5   :  { %v7673_v22 = vpop.f32.mrf.mxu0  ;;  %v3949_v7 = vpop.f32.mrf.mxu2 }
 0x5f9   :  { %v4168_v6 = vpop.f32.mrf.mxu3 }
 0x5fc   :  { %v7667_v59 = vpop.f32.mrf.mxu1 }
 0x5fd   :  { %v7685_v8 = vpop.f32.mrf.mxu0  ;;  %v3952_v30 = vpop.f32.mrf.mxu2  ;;  %v7726_v58 = vadd.f32 %v7667_v59, %v4413_v28 }
 0x5ff   :  { %v4657_v12 = vmul.f32 %v7726_v58, %v8346_v50 }
 0x601   :  { %v4171_v45 = vpop.f32.mrf.mxu3 }
 0x604   :  { %v7671_v33 = vpop.f32.mrf.mxu1 }
 0x605   :  { %v4387_v34 = vpop.f32.mrf.mxu0  ;;  %v3955_v48 = vpop.f32.mrf.mxu2 }
 0x60c   :  { %v7675_v20 = vpop.f32.mrf.mxu1 }
 0x60d   :  { %v4390_v31 = vpop.f32.mrf.mxu0 }
 0x614   :  { %v7687_v24 = vpop.f32.mrf.mxu1 }
 0x615   :  { %8327 = vst [vmem:[#allocation58_spill] sm:$0xff] %v7687_v24  ;;  %v8334_v24 = vld [vmem:[#allocation42_spill] sm:$0xff]  ;;  %v4393_v55 = vpop.f32.mrf.mxu0 }
 0x616   :  { %v3540_v15 = vadd.f32 %v8335_v49, %v8334_v24  ;;  %v4195_v24 = vadd.f32 %v4156_v46, %v3976_v44  ;;  %v8343_v46 = vld [vmem:[#allocation35_spill] sm:$0xff]  ;;  %v7719_v44 = vadd.f32 %v4588_v10, %v4412_v57  ;;  %v4655_v49 = vmul.f32 %v7712_v32, %v8344_v52 }
 0x617   :  { %v4654_v61 = vmul.f32 %v7705_v62, %v8343_v46  ;;  %v4415_v10 = vadd.f32 %v7669_v60, %v4196_v36  ;;  %v4417_v60 = vadd.f32 %v7685_v8, %v4198_v27  ;;  %v4174_v8 = vpop.f32.mrf.mxu3 }
 0x618   :  { %v3759_v5 = vadd.f32 %v7570_v41, %v3540_v15  ;;  %v3543_v41 = vadd.f32 %v8342_v29, %v8341_v53  ;;  %v4414_v39 = vadd.f32 %v4375_v51, %v4195_v24  ;;  %v8345_v51 = vld [vmem:[#allocation36_spill] sm:$0xff] }
 0x619   :  { %v4678_v18 = vadd.f32 %v4677_v47, %v4654_v61  ;;  %v7740_v19 = vadd.f32 %v7675_v20, %v4415_v10  ;;  %v8351_v29 = vld [vmem:[#allocation48_spill] sm:$0xff] }
 0x61a   :  { %v3978_v23 = vadd.f32 %v3943_v4, %v3759_v5  ;;  %v3980_v4 = vadd.f32 %v3949_v7, %v3761_v63  ;;  %v3762_v16 = vadd.f32 %v7579_v2, %v3543_v41  ;;  %v4656_v7 = vmul.f32 %v7719_v44, %v8345_v51 }
 0x61b   :  { %v7732_v2 = vadd.f32 %v7671_v33, %v4414_v39  ;;  %v4679_v14 = vadd.f32 %v4678_v18, %v4655_v49  ;;  %v3763_v33 = vadd.f32 %v7582_v35, %v3544_v17  ;;  %v4659_v20 = vmul.f32 %v7740_v19, %v8349_v21  ;;  %v8350_v35 = vld [vmem:[#allocation41_spill] sm:$0xff]  ;;  %v8353_v39 = vld [vmem:[#allocation43_spill] sm:$0xff] }
 0x61c   :  { %v4603_v42 = vpop.f32.mrf.mxu1  ;;  %v4197_v11 = vadd.f32 %v4162_v56, %v3978_v23  ;;  %v3981_v38 = vadd.f32 %v3952_v30, %v3762_v16  ;;  %v4199_v56 = vadd.f32 %v4168_v6, %v3980_v4  ;;  %v8348_v54 = vld [vmem:[#allocation58_spill] sm:$0xff]  ;;  %v8354_v49 = vld [vmem:[#allocation17_spill] sm:$0xff] }
 0x61d   :  { %v4680_v37 = vadd.f32 %v4679_v14, %v4656_v7  ;;  %v4658_v3 = vmul.f32 %v7732_v2, %v8347_v9  ;;  %v3982_v5 = vadd.f32 %v3955_v48, %v3763_v33  ;;  %v7751_v25 = vadd.f32 %v4603_v42, %v4417_v60  ;;  %v8352_v42 = vld [vmem:[#allocation39_spill] sm:$0xff]  ;;  %v8355_v14 = vld [vmem:[#allocation60_spill] sm:$0xff]  ;;  %v8356_v60 = vld [vmem:[#allocation21_spill] sm:$0xff] }
 0x61e   :  { %v4416_v59 = vadd.f32 %v7673_v22, %v4197_v11  ;;  %v4200_v0 = vadd.f32 %v4171_v45, %v3981_v38  ;;  %v4418_v6 = vadd.f32 %v4387_v34, %v4199_v56 }
 0x61f   :  { %v4681_v40 = vadd.f32 %v4680_v37, %v4657_v12  ;;  %v4201_v13 = vadd.f32 %v4174_v8, %v3982_v5  ;;  %v4661_v34 = vmul.f32 %v7751_v25, %v8351_v29 }
 0x620   :  { %v7747_v22 = vadd.f32 %v8348_v54, %v4416_v59  ;;  %v4419_v43 = vadd.f32 %v4390_v31, %v4200_v0  ;;  %v8357_v31 = vld [vmem:[#allocation22_spill] sm:$0xff] }
 0x621   :  { %v4682_v30 = vadd.f32 %v4681_v40, %v4658_v3  ;;  %v4420_v36 = vadd.f32 %v4393_v55, %v4201_v13  ;;  %v8358_v3 = vld [vmem:[#allocation50_spill] sm:$0xff] }
 0x622   :  { %v4660_v57 = vmul.f32 %v7747_v22, %v8350_v35 }
 0x623   :  { %v4683_v53 = vadd.f32 %v4682_v30, %v4659_v20  ;;  %v8360_v20 = vld [vmem:[#allocation65_spill] sm:$0xff]  ;;  %v8362_v30 = vld [vmem:[#allocation63_spill] sm:$0xff] }
 0x624   :  { %v4606_v15 = vpop.f32.mrf.mxu1 }
 0x625   :  { %v7755_v23 = vadd.f32 %v4606_v15, %v4418_v6  ;;  %v4684_v63 = vadd.f32 %v4683_v53, %v4660_v57  ;;  %v8359_v6 = vld [vmem:[#allocation56_spill] sm:$0xff]  ;;  %v8363_v53 = vld [vmem:[#allocation23_spill] sm:$0xff] }
 0x627   :  { %v4662_v28 = vmul.f32 %v7755_v23, %v8352_v42  ;;  %v4685_v61 = vadd.f32 %v4684_v63, %v4661_v34  ;;  %v8364_v63 = vld [vmem:[#allocation71_spill] sm:$0xff] }
 0x629   :  { %v4686_v11 = vadd.f32 %v4685_v61, %v4662_v28  ;;  %v8365_v61 = vld [vmem:[#allocation24_spill] sm:$0xff] }
 0x62c   :  { %v4609_v24 = vpop.f32.mrf.mxu1 }
 0x62d   :  { %v7759_v41 = vadd.f32 %v4609_v24, %v4419_v43  ;;  %v8361_v24 = vld [vmem:[#allocation7_spill] sm:$0xff] }
 0x62f   :  { %v4663_v4 = vmul.f32 %v7759_v41, %v8353_v39 }
 0x631   :  { %v4687_v38 = vadd.f32 %v4686_v11, %v4663_v4  ;;  %v8366_v11 = vld [vmem:[#allocation70_spill] sm:$0xff] }
 0x634   :  { %v4612_v16 = vpop.f32.mrf.mxu1 }
 0x635   :  { %v7765_v47 = vadd.f32 %v4612_v16, %v4420_v36 }
 0x637   :  { %v4664_v27 = vmul.f32 %v7765_v47, %v8354_v49 }
 0x639   :  { %v4688_v45 = vadd.f32 %v4687_v38, %v4664_v27 }
 0x63b   :  { %v4689_v15 = vrot.slane %v4688_v45, 4 }
 0x63d   :  { %v4690_v10 = vadd.f32 %v4689_v15, %v4688_v45  ;;  %v8367_v45 = vld [vmem:[#allocation54_spill] sm:$0xff] }
 0x63f   :  { %v4691_v18 = vrot.slane %v4690_v10, 2 }
 0x641   :  { %v4692_v7 = vadd.f32 %v4691_v18, %v4690_v10  ;;  %v8368_v18 = vld [vmem:[#allocation9_spill] sm:$0xff] }
 0x643   :  { %v4693_v17 = vrot.slane %v4692_v7, 1 }
 0x645   :  { %v4694_v56 = vadd.f32 %v4693_v17, %v4692_v7 }
 0x647   :  { %v7769_v59 = vmul.f32 0.0078125, %v4694_v56  ;;  %v8369_v56 = vld [vmem:[#allocation68_spill] sm:$0xff] }
 0x649   :  { %v4696_v12 = vsub.f32 %v8355_v14, %v7769_v59  ;;  %v4697_v0 = vsub.f32 %v8356_v60, %v7769_v59  ;;  %v4698_v48 = vsub.f32 %v8357_v31, %v7769_v59  ;;  %v4699_v54 = vsub.f32 %v8358_v3, %v7769_v59 }
 0x64a   :  { %v4700_v5 = vsub.f32 %v8359_v6, %v7769_v59  ;;  %v4701_v57 = vsub.f32 %v8362_v30, %v7769_v59  ;;  %v4702_v34 = vsub.f32 %v8363_v53, %v7769_v59  ;;  %v4703_v4 = vsub.f32 %v8365_v61, %v7769_v59 }
 0x64b   :  { %v4721_v33 = vmul.f32 %v4696_v12, %v4696_v12  ;;  %v4722_v37 = vmul.f32 %v4697_v0, %v4697_v0  ;;  %v4723_v40 = vmul.f32 %v4698_v48, %v4698_v48  ;;  %v4724_v13 = vmul.f32 %v4699_v54, %v4699_v54  ;;  %v8370_v0 = vld [vmem:[#allocation8_spill] sm:$0xff] }
 0x64c   :  { %v4725_v55 = vmul.f32 %v4700_v5, %v4700_v5  ;;  %v4726_v16 = vmul.f32 %v4701_v57, %v4701_v57  ;;  %v4704_v15 = vsub.f32 %v8367_v45, %v7769_v59  ;;  %v4727_v10 = vmul.f32 %v4702_v34, %v4702_v34 }
 0x64d   :  { %v4746_v8 = vmul.f32 %v4721_v33, %v8360_v20  ;;  %v4747_v43 = vmul.f32 %v4722_v37, %v8361_v24  ;;  %v4748_v28 = vmul.f32 %v4723_v40, %v8364_v63  ;;  %v4749_v27 = vmul.f32 %v4724_v13, %v8366_v11  ;;  %v8371_v37 = vld [vmem:[#allocation62_spill] sm:$0xff]  ;;  %v8373_v24 = vld [vmem:[#allocation25_spill] sm:$0xff] }
 0x64e   :  { %v4750_v7 = vmul.f32 %v4725_v55, %v8368_v18  ;;  %v4705_v14 = vsub.f32 %v8369_v56, %v7769_v59  ;;  %v4728_v12 = vmul.f32 %v4703_v4, %v4703_v4  ;;  %v4751_v48 = vmul.f32 %v4726_v16, %v8370_v0  ;;  %v8372_v40 = vld [vmem:[#allocation10_spill] sm:$0xff]  ;;  %v8376_v4 = vld [vmem:[#allocation11_spill] sm:$0xff] }
 0x64f   :  { %v4771_v36 = vadd.f32 %v4747_v43, %v4746_v8  ;;  %v4706_v54 = vsub.f32 %v8371_v37, %v7769_v59  ;;  %v4729_v5 = vmul.f32 %v4704_v15, %v4704_v15  ;;  %v4752_v20 = vmul.f32 %v4727_v10, %v8372_v40  ;;  %v8374_v13 = vld [vmem:[#allocation74_spill] sm:$0xff]  ;;  %v8377_v15 = vld [vmem:[#allocation75_spill] sm:$0xff] }
 0x650   :  { %v4707_v43 = vsub.f32 %v8373_v24, %v7769_v59  ;;  %v4730_v57 = vmul.f32 %v4705_v14, %v4705_v14  ;;  %v4753_v34 = vmul.f32 %v4728_v12, %v8374_v13  ;;  %v8375_v63 = vld [vmem:[#allocation26_spill] sm:$0xff]  ;;  %v8378_v14 = vld [vmem:[#allocation40_spill] sm:$0xff] }
 0x651   :  { %v4772_v38 = vadd.f32 %v4771_v36, %v4748_v28  ;;  %v4708_v28 = vsub.f32 %v8375_v63, %v7769_v59  ;;  %v4731_v36 = vmul.f32 %v4706_v54, %v4706_v54  ;;  %v4754_v16 = vmul.f32 %v4729_v5, %v8376_v4  ;;  %v8379_v54 = vld [vmem:[#allocation12_spill] sm:$0xff] }
 0x652   :  { %v4755_v10 = vmul.f32 %v4730_v57, %v8377_v15 }
 0x653   :  { %v4773_v17 = vadd.f32 %v4772_v38, %v4749_v27  ;;  %v4709_v27 = vsub.f32 %v7665_v26, %v7769_v59  ;;  %v4732_v38 = vmul.f32 %v4707_v43, %v4707_v43  ;;  %v4756_v12 = vmul.f32 %v4731_v36, %v8378_v14  ;;  %v8380_v43 = vld [vmem:[#allocation34_spill] sm:$0xff] }
 0x654   :  { %v4714_v36 = vsub.f32 %v7732_v2, %v7769_v59  ;;  %v4717_v14 = vsub.f32 %v7751_v25, %v7769_v59 }
 0x655   :  { %v4774_v33 = vadd.f32 %v4773_v17, %v4750_v7  ;;  %v4710_v7 = vsub.f32 %v7705_v62, %v7769_v59  ;;  %v4733_v17 = vmul.f32 %v4708_v28, %v4708_v28  ;;  %v4757_v5 = vmul.f32 %v4732_v38, %v8379_v54 }
 0x657   :  { %v4775_v8 = vadd.f32 %v4774_v33, %v4751_v48  ;;  %v4711_v48 = vsub.f32 %v7712_v32, %v7769_v59  ;;  %v4734_v33 = vmul.f32 %v4709_v27, %v4709_v27  ;;  %v4758_v57 = vmul.f32 %v4733_v17, %v8380_v43 }
 0x658   :  { %v4715_v27 = vsub.f32 %v7740_v19, %v7769_v59 }
 0x659   :  { %v4776_v55 = vadd.f32 %v4775_v8, %v4752_v20  ;;  %v4712_v20 = vsub.f32 %v7719_v44, %v7769_v59  ;;  %v4735_v8 = vmul.f32 %v4710_v7, %v4710_v7  ;;  %v4759_v63 = vmul.f32 %v4734_v33, %v8340_v1 }
 0x65a   :  { %v4739_v7 = vmul.f32 %v4714_v36, %v4714_v36 }
 0x65b   :  { %v4777_v11 = vadd.f32 %v4776_v55, %v4753_v34  ;;  %v4713_v34 = vsub.f32 %v7726_v58, %v7769_v59  ;;  %v4736_v55 = vmul.f32 %v4711_v48, %v4711_v48  ;;  %v4737_v4 = vmul.f32 %v4712_v20, %v4712_v20 }
 0x65c   :  { %v4718_v48 = vsub.f32 %v7755_v23, %v7769_v59 }
 0x65d   :  { %v4778_v18 = vadd.f32 %v4777_v11, %v4754_v16  ;;  %v4760_v16 = vmul.f32 %v4735_v8, %v8343_v46  ;;  %v4738_v38 = vmul.f32 %v4713_v34, %v4713_v34  ;;  %v4761_v15 = vmul.f32 %v4736_v55, %v8344_v52 }
 0x65e   :  { %v4762_v1 = vmul.f32 %v4737_v4, %v8345_v51  ;;  %v4764_v52 = vmul.f32 %v4739_v7, %v8347_v9  ;;  %v4720_v8 = vsub.f32 %v7765_v47, %v7769_v59  ;;  %v4743_v43 = vmul.f32 %v4718_v48, %v4718_v48 }
 0x65f   :  { %v4779_v0 = vadd.f32 %v4778_v18, %v4755_v10  ;;  %v4716_v18 = vsub.f32 %v7747_v22, %v7769_v59  ;;  %v4763_v46 = vmul.f32 %v4738_v38, %v8346_v50 }
 0x660   :  { %v4745_v9 = vmul.f32 %v4720_v8, %v4720_v8 }
 0x661   :  { %v4780_v40 = vadd.f32 %v4779_v0, %v4756_v12  ;;  %v4740_v12 = vmul.f32 %v4715_v27, %v4715_v27  ;;  %v4741_v33 = vmul.f32 %v4716_v18, %v4716_v18 }
 0x663   :  { %v4781_v13 = vadd.f32 %v4780_v40, %v4757_v5  ;;  %v4719_v5 = vsub.f32 %v7759_v41, %v7769_v59  ;;  %v4742_v40 = vmul.f32 %v4717_v14, %v4717_v14  ;;  %v4765_v51 = vmul.f32 %v4740_v12, %v8349_v21 }
 0x664   :  { %v4766_v50 = vmul.f32 %v4741_v33, %v8350_v35  ;;  %v4770_v21 = vmul.f32 %v4745_v9, %v8354_v49 }
 0x665   :  { %v4782_v28 = vadd.f32 %v4781_v13, %v4758_v57  ;;  %v4744_v13 = vmul.f32 %v4719_v5, %v4719_v5  ;;  %v4767_v34 = vmul.f32 %v4742_v40, %v8351_v29 }
 0x667   :  { %v4783_v11 = vadd.f32 %v4782_v28, %v4759_v63  ;;  %v4768_v63 = vmul.f32 %v4743_v43, %v8352_v42  ;;  %v4769_v36 = vmul.f32 %v4744_v13, %v8353_v39  ;;  %v4802_v39 = vld [vmem:[%s8025_s6] sm:$0x1] }
 0x669   :  { %v4784_v10 = vadd.f32 %v4783_v11, %v4760_v16 }
 0x66b   :  { %v4785_v17 = vadd.f32 %v4784_v10, %v4761_v15 }
 0x66d   :  { %v4786_v0 = vadd.f32 %v4785_v17, %v4762_v1 }
 0x66f   :  { %v4787_v54 = vadd.f32 %v4786_v0, %v4763_v46  ;;  %v4815_v0 = vld [vmem:[%s8026_s7] sm:$0x1] }
 0x671   :  { %v4788_v20 = vadd.f32 %v4787_v54, %v4764_v52 }
 0x673   :  { %v4789_v57 = vadd.f32 %v4788_v20, %v4765_v51 }
 0x675   :  { %v4790_v55 = vadd.f32 %v4789_v57, %v4766_v50 }
 0x677   :  { %v4791_v28 = vadd.f32 %v4790_v55, %v4767_v34 }
 0x679   :  { %v4792_v4 = vadd.f32 %v4791_v28, %v4768_v63 }
 0x67b   :  { %v4793_v16 = vadd.f32 %v4792_v4, %v4769_v36 }
 0x67d   :  { %v4794_v11 = vadd.f32 %v4793_v16, %v4770_v21 }
 0x67f   :  { %v4795_v47 = vrot.slane %v4794_v11, 4 }
 0x681   :  { %v4796_v27 = vadd.f32 %v4795_v47, %v4794_v11 }
 0x683   :  { %v4797_v38 = vrot.slane %v4796_v27, 2 }
 0x685   :  { %v4798_v35 = vadd.f32 %v4797_v38, %v4796_v27 }
 0x687   :  { %v4799_v15 = vrot.slane %v4798_v35, 1 }
 0x689   :  { %v4800_v10 = vadd.f32 %v4799_v15, %v4798_v35 }
 0x68b   :  { %v4801_v18 = vmul.f32 0.0078125, %v4800_v10 }
 0x68d   :  { %v4803_v29 = vadd.f32 1e-05, %v4801_v18 }
 0x68f   :  { %5411 = vrsqrt.f32 %v4803_v29  ;;  %vm4810_vm9 = vweird.f32 %v4803_v29 }
 0x695   :  { %v5412_v7 = vpop.eup %5411 }
 0x696   :  { %v4805_v1 = vmul.f32 %v5412_v7, %v4803_v29  ;;  %vm4811_vm8 = vweird.f32 %v5412_v7 }
 0x697   :  { %vm4812_vm10 = vmor %vm4810_vm9, %vm4811_vm8 }
 0x698   :  { %v4806_v42 = vmul.f32 %v5412_v7, %v4805_v1 }
 0x69a   :  { %v4807_v17 = vmul.f32 0.5, %v4806_v42 }
 0x69c   :  { %v4808_v14 = vsub.f32 1.5, %v4807_v17 }
 0x69e   :  { %v4809_v49 = vmul.f32 %v5412_v7, %v4808_v14 }
 0x6a0   :  { %v4813_v12 = vsel %vm4812_vm10, %v5412_v7, %v4809_v49 }
 0x6a1   :  { %v4814_v46 = vmul.f32 %v4813_v12, %v4802_v39 }
 0x6a3   :  { %v4816_v48 = vmul.f32 %v4814_v46, %v7769_v59  ;;  %v7853_v52 = vperm.slane %v4814_v46, 0 }
 0x6a5   :  { %v4817_v33 = vsub.f32 %v4815_v0, %v4816_v48  ;;  %v4821_v5 = vmul.f32 %v7853_v52, %v8356_v60  ;;  %v4822_v40 = vmul.f32 %v7853_v52, %v8357_v31  ;;  %v4823_v51 = vmul.f32 %v7853_v52, %v8358_v3 }
 0x6a6   :  { %v4824_v59 = vmul.f32 %v7853_v52, %v8359_v6  ;;  %v4825_v50 = vmul.f32 %v7853_v52, %v8362_v30  ;;  %v4826_v60 = vmul.f32 %v7853_v52, %v8363_v53  ;;  %v4827_v34 = vmul.f32 %v7853_v52, %v8365_v61 }
 0x6a7   :  { %v7855_v54 = vperm.slane %v4817_v33, 0  ;;  %v4828_v30 = vmul.f32 %v7853_v52, %v8367_v45  ;;  %v4829_v61 = vmul.f32 %v7853_v52, %v8369_v56  ;;  %v4830_v45 = vmul.f32 %v7853_v52, %v8371_v37 }
 0x6a8   :  { %v4831_v4 = vmul.f32 %v7853_v52, %v8373_v24  ;;  %v4832_v16 = vmul.f32 %v7853_v52, %v7665_v26  ;;  %v4833_v37 = vmul.f32 %v7853_v52, %v7705_v62  ;;  %v4834_v27 = vmul.f32 %v7853_v52, %v7712_v32 }
 0x6a9   :  { %v4846_v20 = vadd.f32 %v7855_v54, %v4821_v5  ;;  %v4847_v8 = vadd.f32 %v7855_v54, %v4822_v40  ;;  %v4848_v43 = vadd.f32 %v7855_v54, %v4823_v51  ;;  %v4849_v31 = vadd.f32 %v7855_v54, %v4824_v59 }
 0x6aa   :  { %v4850_v57 = vadd.f32 %v7855_v54, %v4825_v50  ;;  %v4851_v55 = vadd.f32 %v7855_v54, %v4826_v60  ;;  %v4852_v53 = vadd.f32 %v7855_v54, %v4827_v34  ;;  %v4853_v28 = vadd.f32 %v7855_v54, %v4828_v30 }
 0x6ab   :  { %v4868_v3 = vmax.f32 %v4846_v20, 0.0  ;;  %v4869_v13 = vmax.f32 %v4847_v8, 0.0  ;;  %v4870_v6 = vmax.f32 %v4848_v43, 0.0  ;;  %v4871_v9 = vmax.f32 %v4849_v31, 0.0 }
 0x6ac   :  { %v4872_v63 = vmax.f32 %v4850_v57, 0.0  ;;  %v4873_v36 = vmax.f32 %v4851_v55, 0.0  ;;  %v4854_v21 = vadd.f32 %v7855_v54, %v4829_v61  ;;  %v4874_v56 = vmax.f32 %v4852_v53, 0.0 }
 0x6ad   :  { %4890 = vst [vmem:[%s8027_s8 - $0x3] sm:$0xf8] %v4868_v3  ;;  %v4855_v11 = vadd.f32 %v7855_v54, %v4830_v45  ;;  %v4856_v24 = vadd.f32 %v7855_v54, %v4831_v4  ;;  %v4875_v47 = vmax.f32 %v4853_v28, 0.0  ;;  %v4857_v26 = vadd.f32 %v7855_v54, %v4832_v16 }
 0x6ae   :  { %4891 = vst [vmem:[%s8027_s8 + $0x5] sm:$0x7] %v4869_v13  ;;  %v4835_v38 = vmul.f32 %v7853_v52, %v7719_v44  ;;  %v4858_v62 = vadd.f32 %v7855_v54, %v4833_v37  ;;  %v4876_v35 = vmax.f32 %v4854_v21, 0.0  ;;  %v4859_v15 = vadd.f32 %v7855_v54, %v4834_v27 }
 0x6af   :  { %4892 = vst [vmem:[%s8027_s8 + $0x3] sm:$0xe0] %v4869_v13  ;;  %v4877_v10 = vmax.f32 %v4855_v11, 0.0  ;;  %v4836_v32 = vmul.f32 %v7853_v52, %v7726_v58  ;;  %v4878_v44 = vmax.f32 %v4856_v24, 0.0  ;;  %v4879_v29 = vmax.f32 %v4857_v26, 0.0 }
 0x6b0   :  { %4893 = vst [vmem:[%s8027_s8 + $0xb] sm:$0x1f] %v4870_v6  ;;  %v4860_v18 = vadd.f32 %v7855_v54, %v4835_v38  ;;  %v4837_v7 = vmul.f32 %v7853_v52, %v7732_v2  ;;  %v4880_v42 = vmax.f32 %v4858_v62, 0.0  ;;  %v4881_v58 = vmax.f32 %v4859_v15, 0.0 }
 0x6b1   :  { %4894 = vst [vmem:[%s8027_s8 + $0x9] sm:$0x80] %v4870_v6  ;;  %v4861_v1 = vadd.f32 %v7855_v54, %v4836_v32  ;;  %v4838_v17 = vmul.f32 %v7853_v52, %v7740_v19  ;;  %v4839_v2 = vmul.f32 %v7853_v52, %v7747_v22  ;;  %v4840_v49 = vmul.f32 %v7853_v52, %v7751_v25 }
 0x6b2   :  { %4895 = vst [vmem:[%s8027_s8 + $0x11] sm:$0x7f] %v4871_v9  ;;  %v4862_v14 = vadd.f32 %v7855_v54, %v4837_v7  ;;  %v4882_v39 = vmax.f32 %v4860_v18, 0.0  ;;  %v4841_v22 = vmul.f32 %v7853_v52, %v7755_v23  ;;  %v4842_v25 = vmul.f32 %v7853_v52, %v7759_v41 }
 0x6b3   :  { %4896 = vst [vmem:[%s8027_s8 + $0x17] sm:$0xfe] %v4872_v63  ;;  %v4863_v12 = vadd.f32 %v7855_v54, %v4838_v17  ;;  %v4883_v19 = vmax.f32 %v4861_v1, 0.0  ;;  %v4864_v46 = vadd.f32 %v7855_v54, %v4839_v2  ;;  %v4865_v0 = vadd.f32 %v7855_v54, %v4840_v49 }
 0x6b4   :  { %4897 = vst [vmem:[%s8027_s8 + $0x1f] sm:$0x1] %v4873_v36  ;;  %v4884_v48 = vmax.f32 %v4862_v14, 0.0  ;;  %v4866_v33 = vadd.f32 %v7855_v54, %v4841_v22  ;;  %v4867_v40 = vadd.f32 %v7855_v54, %v4842_v25 }
 0x6b5   :  { %4898 = vst [vmem:[%s8027_s8 + $0x1d] sm:$0xf8] %v4873_v36  ;;  %v4885_v5 = vmax.f32 %v4863_v12, 0.0  ;;  %v4886_v23 = vmax.f32 %v4864_v46, 0.0  ;;  %v4887_v51 = vmax.f32 %v4865_v0, 0.0 }
 0x6b6   :  { %4899 = vst [vmem:[%s8027_s8 + $0x25] sm:$0x7] %v4874_v56  ;;  %v4888_v41 = vmax.f32 %v4866_v33, 0.0  ;;  %v4889_v52 = vmax.f32 %v4867_v40, 0.0 }
 0x6b7   :  { %4900 = vst [vmem:[%s8027_s8 + $0x23] sm:$0xe0] %v4874_v56 }
 0x6b8   :  { %4901 = vst [vmem:[%s8027_s8 + $0x2b] sm:$0x1f] %v4875_v47 }
 0x6b9   :  { %4902 = vst [vmem:[%s8027_s8 + $0x29] sm:$0x80] %v4875_v47 }
 0x6ba   :  { %4903 = vst [vmem:[%s8027_s8 + $0x31] sm:$0x7f] %v4876_v35 }
 0x6bb   :  { %4904 = vst [vmem:[%s8027_s8 + $0x37] sm:$0xfe] %v4877_v10 }
 0x6bc   :  { %4905 = vst [vmem:[%s8027_s8 + $0x3f] sm:$0x1] %v4878_v44 }
 0x6bd   :  { %4906 = vst [vmem:[%s8027_s8 + $0x39] sm:$0x80] %v4879_v29 }
 0x6be   :  { %4907 = vst [vmem:[%s8027_s8 + $0x41] sm:$0x7f] %v4880_v42 }
 0x6bf   :  { %4908 = vst [vmem:[%s8027_s8 + $0x47] sm:$0xfe] %v4881_v58 }
 0x6c0   :  { %4909 = vst [vmem:[%s8027_s8 + $0x4f] sm:$0x1] %v4882_v39 }
 0x6c1   :  { %4910 = vst [vmem:[%s8027_s8 + $0x4d] sm:$0xf8] %v4882_v39 }
 0x6c2   :  { %4911 = vst [vmem:[%s8027_s8 + $0x55] sm:$0x7] %v4883_v19 }
 0x6c3   :  { %4912 = vst [vmem:[%s8027_s8 + $0x53] sm:$0xe0] %v4883_v19 }
 0x6c4   :  { %4913 = vst [vmem:[%s8027_s8 + $0x5b] sm:$0x1f] %v4884_v48 }
 0x6c5   :  { %4914 = vst [vmem:[%s8027_s8 + $0x59] sm:$0x80] %v4884_v48 }
 0x6c6   :  { %4915 = vst [vmem:[%s8027_s8 + $0x61] sm:$0x7f] %v4885_v5 }
 0x6c7   :  { %4916 = vst [vmem:[%s8027_s8 + $0x67] sm:$0xfe] %v4886_v23 }
 0x6c8   :  { %4917 = vst [vmem:[%s8027_s8 + $0x6f] sm:$0x1] %v4887_v51 }
 0x6c9   :  { %4918 = vst [vmem:[%s8027_s8 + $0x6d] sm:$0xf8] %v4887_v51 }
 0x6ca   :  { %4919 = vst [vmem:[%s8027_s8 + $0x75] sm:$0x7] %v4888_v41 }
 0x6cb   :  { %4920 = vst [vmem:[%s8027_s8 + $0x73] sm:$0xe0] %v4888_v41 }
 0x6cc   :  { %4921 = vst [vmem:[%s8027_s8 + $0x7b] sm:$0x1f] %v4889_v52 }

</bundles_post_ra>
